<compile_context>
chip_gen: v5e
topology: v5e:2x2
jax: 0.10.0
libtpu: 0.0.40
codegen_flags: <defaults>
</compile_context>

<pallas_src>
import functools

import jax
import jax.numpy as jnp
import numpy as np
from jax import lax
from jax.experimental import pallas as pl
from jax.experimental.pallas import tpu as pltpu


def conv_super_kernel(x_ref, w_ref, b_ref, o_ref, *, K):
    # x_ref: (1, Hp, Wp, Cin)     spatially padded input, one batch element
    # w_ref: (K*K, Cin, Cco)      weights, tap-major
    # b_ref: (1, Cco)             bias (f32)
    # o_ref: (1, H, W, Cout_sup)  channel-padded output
    H = o_ref.shape[1]
    W = o_ref.shape[2]
    C_out_super = o_ref.shape[3]
    Cin = x_ref.shape[3]
    Cco = w_ref.shape[2]

    # One MXU matmul per (kh, kw) tap, f32 accumulation into a single slab.
    acc = jnp.zeros((H * W, Cco), jnp.float32)
    for kh in range(K):
        for kw in range(K):
            win = x_ref[0, kh:kh + H, kw:kw + W, :]            # (H, W, Cin)
            win2d = win.reshape(H * W, Cin)                    # collapse rows (lane dim unchanged)
            acc = acc + jnp.dot(win2d, w_ref[kh * K + kw],
                                preferred_element_type=jnp.float32)

    acc = acc + b_ref[...]                                     # single bias add
    o_ref[0, :, :, 0:Cco] = acc.reshape(H, W, Cco).astype(o_ref.dtype)
    if Cco < C_out_super:
        # channel-padded tail is pure zeros: write it, never compute it
        o_ref[0, :, :, Cco:] = jnp.zeros((H, W, C_out_super - Cco), o_ref.dtype)


def conv_super_forward(x_nchw, weight_super, bias_super, *,
                       channel_choice_in, channel_choice_out, kernel_choice,
                       compute_dtype=jnp.bfloat16):
    N, _, H, W = x_nchw.shape
    C_out_super = weight_super.shape[0]
    K = kernel_choice
    assert K in (3, 5, 7), f"ConvSuper 'same' padding assumes K in (3,5,7); got {K}"
    pad = {3: 1, 5: 2, 7: 3}[K]
    Cci = channel_choice_in
    Cco = channel_choice_out

    # --- glue: ConvSuper.get_weights_and_bias + layout (fused under jit) ---
    w = weight_super[:Cco, :Cci, :K, :K]                       # (Cco, Cci, K, K)
    w_taps = jnp.transpose(w, (2, 3, 1, 0)).reshape(K * K, Cci, Cco)
    w_taps = w_taps.astype(compute_dtype)                      # MXU input dtype
    b2d = bias_super[:Cco].astype(jnp.float32).reshape(1, Cco)

    x = jnp.transpose(x_nchw[:, :Cci, :, :], (0, 2, 3, 1))     # NCHW -> NHWC
    x = x.astype(compute_dtype)
    x_padded = jnp.pad(x, ((0, 0), (pad, pad), (pad, pad), (0, 0)))
    Hp, Wp = H + 2 * pad, W + 2 * pad

    itemsize = jnp.dtype(compute_dtype).itemsize
    out_itemsize = jnp.dtype(x_nchw.dtype).itemsize
    cost = pl.CostEstimate(
        flops=2 * N * H * W * K * K * Cci * Cco,
        transcendentals=0,
        bytes_accessed=(N * Hp * Wp * Cci * itemsize
                        + K * K * Cci * Cco * itemsize + Cco * 4
                        + N * H * W * C_out_super * out_itemsize))

    # NOTE: at realistic H/W/C add an H-tiling grid axis (halo of K-1 rows via the
    # index_map) to respect v7x's 64 MiB VMEM; unnecessary at these shapes.
    out_nhwc = pl.pallas_call(
        functools.partial(conv_super_kernel, K=K),
        out_shape=jax.ShapeDtypeStruct((N, H, W, C_out_super), x_nchw.dtype),
        grid_spec=pltpu.PrefetchScalarGridSpec(
            num_scalar_prefetch=0,
            grid=(N,),
            in_specs=[
                pl.BlockSpec((1, Hp, Wp, Cci), lambda n: (n, 0, 0, 0)),
                pl.BlockSpec((K * K, Cci, Cco), lambda n: (0, 0, 0)),
                pl.BlockSpec((1, Cco), lambda n: (0, 0)),
            ],
            out_specs=pl.BlockSpec((1, H, W, C_out_super),
                                   lambda n: (n, 0, 0, 0)),
        ),
        compiler_params=pltpu.CompilerParams(
            dimension_semantics=("parallel",)),
        cost_estimate=cost,
    )(x_padded, w_taps, b2d)

    return jnp.transpose(out_nhwc, (0, 3, 1, 2))               # NHWC -> NCHW


if __name__ == "__main__":
    # Super-op (nn.Conv2d) config and the "choice" slicing config.
    N, C_in_super, H, W = 2, 8, 16, 16
    C_out_super, K_super = 8, 7
    channel_choice_in, channel_choice_out, kernel_choice = 4, 6, 3

    key = jax.random.PRNGKey(0)
    kx, kw, kb = jax.random.split(key, 3)
    x = jax.random.normal(kx, (N, C_in_super, H, W), jnp.float32)
    # Deterministic Conv2d-style init (uniform in +-1/sqrt(fan_in)).
    bound = 1.0 / float(np.sqrt(C_in_super * K_super * K_super))
    weight_super = jax.random.uniform(
        kw, (C_out_super, C_in_super, K_super, K_super), jnp.float32, -bound, bound)
    bias_super = jax.random.uniform(kb, (C_out_super,), jnp.float32, -bound, bound)

    fwd = jax.jit(functools.partial(
        conv_super_forward,
        channel_choice_in=channel_choice_in,
        channel_choice_out=channel_choice_out,
        kernel_choice=kernel_choice,
        compute_dtype=jnp.bfloat16))
    out = jax.block_until_ready(fwd(x, weight_super, bias_super))

    # Pure-JAX reference with the same bf16 MXU inputs / f32 accumulation
    # (same semantics as the PyTorch forward, matched to the kernel's MXU dtype).
    xb = x[:, :channel_choice_in].astype(jnp.bfloat16)
    wb = weight_super[:channel_choice_out, :channel_choice_in,
                      :kernel_choice, :kernel_choice].astype(jnp.bfloat16)
    ref = lax.conv_general_dilated(
        xb, wb, window_strides=(1, 1), padding=[(1, 1), (1, 1)],
        dimension_numbers=("NCHW", "OIHW", "NCHW"),
        preferred_element_type=jnp.float32)
    ref = ref + bias_super[:channel_choice_out][None, :, None, None]
    ref = jnp.pad(ref, ((0, 0), (0, C_out_super - channel_choice_out),
                        (0, 0), (0, 0)))

    assert out.shape == (N, C_out_super, H, W)
    np.testing.assert_allclose(np.asarray(out), np.asarray(ref),
                               atol=1e-4, rtol=1e-4)
    print("KERNEL_OK")
</pallas_src>

<mosaic_0001>
module attributes {stable_mosaic.version = 11 : i64} {
  func.func @conv_super_kernel(%arg0: i32, %arg1: memref<1x18x18x4xbf16, #tpu.memory_space<vmem>>, %arg2: memref<9x4x6xbf16, #tpu.memory_space<vmem>>, %arg3: memref<1x6xf32, #tpu.memory_space<vmem>>, %arg4: memref<1x16x16x8xf32, #tpu.memory_space<vmem>>) attributes {dimension_semantics = [#tpu.dimension_semantics<parallel>], iteration_bounds = array<i64: 2>, scalar_prefetch = 0 : i64, scratch_operands = 0 : i64, tpu.core_type = #tpu.core_type<tc>, window_params = [{transform_indices = @transform_0, window_bounds = array<i64: 1, 18, 18, 4>}, {pipeline_mode = #tpu.pipeline_mode<synchronous>, transform_indices = @transform_1, window_bounds = array<i64: 9, 4, 6>}, {pipeline_mode = #tpu.pipeline_mode<synchronous>, transform_indices = @transform_2, window_bounds = array<i64: 1, 6>}, {transform_indices = @transform_3, window_bounds = array<i64: 1, 16, 16, 8>}]} {
    %cst = arith.constant 0.000000e+00 : f32
    %0 = vector.broadcast %cst : f32 to vector<256x6xf32>
    %c0 = arith.constant 0 : index
    %c0_0 = arith.constant 0 : index
    %c0_1 = arith.constant 0 : index
    %c0_2 = arith.constant 0 : index
    %1 = vector.load %arg1[%c0, %c0_0, %c0_1, %c0_2] : memref<1x18x18x4xbf16, #tpu.memory_space<vmem>>, vector<1x16x16x4xbf16>
    %2 = vector.shape_cast %1 : vector<1x16x16x4xbf16> to vector<16x16x4xbf16>
    %3 = vector.shape_cast %2 : vector<16x16x4xbf16> to vector<256x4xbf16>
    %c0_3 = arith.constant 0 : index
    %c0_4 = arith.constant 0 : index
    %c0_5 = arith.constant 0 : index
    %4 = vector.load %arg2[%c0_3, %c0_4, %c0_5] : memref<9x4x6xbf16, #tpu.memory_space<vmem>>, vector<1x4x6xbf16>
    %5 = vector.shape_cast %4 : vector<1x4x6xbf16> to vector<4x6xbf16>
    %cst_6 = arith.constant dense<0.000000e+00> : vector<256x6xf32>
    %6 = tpu.matmul %3, %5, %cst_6 {dimension_numbers = #tpu.dot_dimension_numbers<[1], [0], [0], [1], [0, 0, 1, 1], [], []>} : vector<256x4xbf16>, vector<4x6xbf16>, vector<256x6xf32> -> vector<256x6xf32>
    %7 = arith.addf %0, %6 : vector<256x6xf32>
    %c0_7 = arith.constant 0 : index
    %c0_8 = arith.constant 0 : index
    %c1 = arith.constant 1 : index
    %c0_9 = arith.constant 0 : index
    %8 = vector.load %arg1[%c0_7, %c0_8, %c1, %c0_9] : memref<1x18x18x4xbf16, #tpu.memory_space<vmem>>, vector<1x16x16x4xbf16>
    %9 = vector.shape_cast %8 : vector<1x16x16x4xbf16> to vector<16x16x4xbf16>
    %10 = vector.shape_cast %9 : vector<16x16x4xbf16> to vector<256x4xbf16>
    %c1_10 = arith.constant 1 : index
    %c0_11 = arith.constant 0 : index
    %c0_12 = arith.constant 0 : index
    %11 = vector.load %arg2[%c1_10, %c0_11, %c0_12] : memref<9x4x6xbf16, #tpu.memory_space<vmem>>, vector<1x4x6xbf16>
    %12 = vector.shape_cast %11 : vector<1x4x6xbf16> to vector<4x6xbf16>
    %cst_13 = arith.constant dense<0.000000e+00> : vector<256x6xf32>
    %13 = tpu.matmul %10, %12, %cst_13 {dimension_numbers = #tpu.dot_dimension_numbers<[1], [0], [0], [1], [0, 0, 1, 1], [], []>} : vector<256x4xbf16>, vector<4x6xbf16>, vector<256x6xf32> -> vector<256x6xf32>
    %14 = arith.addf %7, %13 : vector<256x6xf32>
    %c0_14 = arith.constant 0 : index
    %c0_15 = arith.constant 0 : index
    %c2 = arith.constant 2 : index
    %c0_16 = arith.constant 0 : index
    %15 = vector.load %arg1[%c0_14, %c0_15, %c2, %c0_16] : memref<1x18x18x4xbf16, #tpu.memory_space<vmem>>, vector<1x16x16x4xbf16>
    %16 = vector.shape_cast %15 : vector<1x16x16x4xbf16> to vector<16x16x4xbf16>
    %17 = vector.shape_cast %16 : vector<16x16x4xbf16> to vector<256x4xbf16>
    %c2_17 = arith.constant 2 : index
    %c0_18 = arith.constant 0 : index
    %c0_19 = arith.constant 0 : index
    %18 = vector.load %arg2[%c2_17, %c0_18, %c0_19] : memref<9x4x6xbf16, #tpu.memory_space<vmem>>, vector<1x4x6xbf16>
    %19 = vector.shape_cast %18 : vector<1x4x6xbf16> to vector<4x6xbf16>
    %cst_20 = arith.constant dense<0.000000e+00> : vector<256x6xf32>
    %20 = tpu.matmul %17, %19, %cst_20 {dimension_numbers = #tpu.dot_dimension_numbers<[1], [0], [0], [1], [0, 0, 1, 1], [], []>} : vector<256x4xbf16>, vector<4x6xbf16>, vector<256x6xf32> -> vector<256x6xf32>
    %21 = arith.addf %14, %20 : vector<256x6xf32>
    %c0_21 = arith.constant 0 : index
    %c1_22 = arith.constant 1 : index
    %c0_23 = arith.constant 0 : index
    %c0_24 = arith.constant 0 : index
    %22 = vector.load %arg1[%c0_21, %c1_22, %c0_23, %c0_24] : memref<1x18x18x4xbf16, #tpu.memory_space<vmem>>, vector<1x16x16x4xbf16>
    %23 = vector.shape_cast %22 : vector<1x16x16x4xbf16> to vector<16x16x4xbf16>
    %24 = vector.shape_cast %23 : vector<16x16x4xbf16> to vector<256x4xbf16>
    %c3 = arith.constant 3 : index
    %c0_25 = arith.constant 0 : index
    %c0_26 = arith.constant 0 : index
    %25 = vector.load %arg2[%c3, %c0_25, %c0_26] : memref<9x4x6xbf16, #tpu.memory_space<vmem>>, vector<1x4x6xbf16>
    %26 = vector.shape_cast %25 : vector<1x4x6xbf16> to vector<4x6xbf16>
    %cst_27 = arith.constant dense<0.000000e+00> : vector<256x6xf32>
    %27 = tpu.matmul %24, %26, %cst_27 {dimension_numbers = #tpu.dot_dimension_numbers<[1], [0], [0], [1], [0, 0, 1, 1], [], []>} : vector<256x4xbf16>, vector<4x6xbf16>, vector<256x6xf32> -> vector<256x6xf32>
    %28 = arith.addf %21, %27 : vector<256x6xf32>
    %c0_28 = arith.constant 0 : index
    %c1_29 = arith.constant 1 : index
    %c1_30 = arith.constant 1 : index
    %c0_31 = arith.constant 0 : index
    %29 = vector.load %arg1[%c0_28, %c1_29, %c1_30, %c0_31] : memref<1x18x18x4xbf16, #tpu.memory_space<vmem>>, vector<1x16x16x4xbf16>
    %30 = vector.shape_cast %29 : vector<1x16x16x4xbf16> to vector<16x16x4xbf16>
    %31 = vector.shape_cast %30 : vector<16x16x4xbf16> to vector<256x4xbf16>
    %c4 = arith.constant 4 : index
    %c0_32 = arith.constant 0 : index
    %c0_33 = arith.constant 0 : index
    %32 = vector.load %arg2[%c4, %c0_32, %c0_33] : memref<9x4x6xbf16, #tpu.memory_space<vmem>>, vector<1x4x6xbf16>
    %33 = vector.shape_cast %32 : vector<1x4x6xbf16> to vector<4x6xbf16>
    %cst_34 = arith.constant dense<0.000000e+00> : vector<256x6xf32>
    %34 = tpu.matmul %31, %33, %cst_34 {dimension_numbers = #tpu.dot_dimension_numbers<[1], [0], [0], [1], [0, 0, 1, 1], [], []>} : vector<256x4xbf16>, vector<4x6xbf16>, vector<256x6xf32> -> vector<256x6xf32>
    %35 = arith.addf %28, %34 : vector<256x6xf32>
    %c0_35 = arith.constant 0 : index
    %c1_36 = arith.constant 1 : index
    %c2_37 = arith.constant 2 : index
    %c0_38 = arith.constant 0 : index
    %36 = vector.load %arg1[%c0_35, %c1_36, %c2_37, %c0_38] : memref<1x18x18x4xbf16, #tpu.memory_space<vmem>>, vector<1x16x16x4xbf16>
    %37 = vector.shape_cast %36 : vector<1x16x16x4xbf16> to vector<16x16x4xbf16>
    %38 = vector.shape_cast %37 : vector<16x16x4xbf16> to vector<256x4xbf16>
    %c5 = arith.constant 5 : index
    %c0_39 = arith.constant 0 : index
    %c0_40 = arith.constant 0 : index
    %39 = vector.load %arg2[%c5, %c0_39, %c0_40] : memref<9x4x6xbf16, #tpu.memory_space<vmem>>, vector<1x4x6xbf16>
    %40 = vector.shape_cast %39 : vector<1x4x6xbf16> to vector<4x6xbf16>
    %cst_41 = arith.constant dense<0.000000e+00> : vector<256x6xf32>
    %41 = tpu.matmul %38, %40, %cst_41 {dimension_numbers = #tpu.dot_dimension_numbers<[1], [0], [0], [1], [0, 0, 1, 1], [], []>} : vector<256x4xbf16>, vector<4x6xbf16>, vector<256x6xf32> -> vector<256x6xf32>
    %42 = arith.addf %35, %41 : vector<256x6xf32>
    %c0_42 = arith.constant 0 : index
    %c2_43 = arith.constant 2 : index
    %c0_44 = arith.constant 0 : index
    %c0_45 = arith.constant 0 : index
    %43 = vector.load %arg1[%c0_42, %c2_43, %c0_44, %c0_45] : memref<1x18x18x4xbf16, #tpu.memory_space<vmem>>, vector<1x16x16x4xbf16>
    %44 = vector.shape_cast %43 : vector<1x16x16x4xbf16> to vector<16x16x4xbf16>
    %45 = vector.shape_cast %44 : vector<16x16x4xbf16> to vector<256x4xbf16>
    %c6 = arith.constant 6 : index
    %c0_46 = arith.constant 0 : index
    %c0_47 = arith.constant 0 : index
    %46 = vector.load %arg2[%c6, %c0_46, %c0_47] : memref<9x4x6xbf16, #tpu.memory_space<vmem>>, vector<1x4x6xbf16>
    %47 = vector.shape_cast %46 : vector<1x4x6xbf16> to vector<4x6xbf16>
    %cst_48 = arith.constant dense<0.000000e+00> : vector<256x6xf32>
    %48 = tpu.matmul %45, %47, %cst_48 {dimension_numbers = #tpu.dot_dimension_numbers<[1], [0], [0], [1], [0, 0, 1, 1], [], []>} : vector<256x4xbf16>, vector<4x6xbf16>, vector<256x6xf32> -> vector<256x6xf32>
    %49 = arith.addf %42, %48 : vector<256x6xf32>
    %c0_49 = arith.constant 0 : index
    %c2_50 = arith.constant 2 : index
    %c1_51 = arith.constant 1 : index
    %c0_52 = arith.constant 0 : index
    %50 = vector.load %arg1[%c0_49, %c2_50, %c1_51, %c0_52] : memref<1x18x18x4xbf16, #tpu.memory_space<vmem>>, vector<1x16x16x4xbf16>
    %51 = vector.shape_cast %50 : vector<1x16x16x4xbf16> to vector<16x16x4xbf16>
    %52 = vector.shape_cast %51 : vector<16x16x4xbf16> to vector<256x4xbf16>
    %c7 = arith.constant 7 : index
    %c0_53 = arith.constant 0 : index
    %c0_54 = arith.constant 0 : index
    %53 = vector.load %arg2[%c7, %c0_53, %c0_54] : memref<9x4x6xbf16, #tpu.memory_space<vmem>>, vector<1x4x6xbf16>
    %54 = vector.shape_cast %53 : vector<1x4x6xbf16> to vector<4x6xbf16>
    %cst_55 = arith.constant dense<0.000000e+00> : vector<256x6xf32>
    %55 = tpu.matmul %52, %54, %cst_55 {dimension_numbers = #tpu.dot_dimension_numbers<[1], [0], [0], [1], [0, 0, 1, 1], [], []>} : vector<256x4xbf16>, vector<4x6xbf16>, vector<256x6xf32> -> vector<256x6xf32>
    %56 = arith.addf %49, %55 : vector<256x6xf32>
    %c0_56 = arith.constant 0 : index
    %c2_57 = arith.constant 2 : index
    %c2_58 = arith.constant 2 : index
    %c0_59 = arith.constant 0 : index
    %57 = vector.load %arg1[%c0_56, %c2_57, %c2_58, %c0_59] : memref<1x18x18x4xbf16, #tpu.memory_space<vmem>>, vector<1x16x16x4xbf16>
    %58 = vector.shape_cast %57 : vector<1x16x16x4xbf16> to vector<16x16x4xbf16>
    %59 = vector.shape_cast %58 : vector<16x16x4xbf16> to vector<256x4xbf16>
    %c8 = arith.constant 8 : index
    %c0_60 = arith.constant 0 : index
    %c0_61 = arith.constant 0 : index
    %60 = vector.load %arg2[%c8, %c0_60, %c0_61] : memref<9x4x6xbf16, #tpu.memory_space<vmem>>, vector<1x4x6xbf16>
    %61 = vector.shape_cast %60 : vector<1x4x6xbf16> to vector<4x6xbf16>
    %cst_62 = arith.constant dense<0.000000e+00> : vector<256x6xf32>
    %62 = tpu.matmul %59, %61, %cst_62 {dimension_numbers = #tpu.dot_dimension_numbers<[1], [0], [0], [1], [0, 0, 1, 1], [], []>} : vector<256x4xbf16>, vector<4x6xbf16>, vector<256x6xf32> -> vector<256x6xf32>
    %63 = arith.addf %56, %62 : vector<256x6xf32>
    %c0_63 = arith.constant 0 : index
    %c0_64 = arith.constant 0 : index
    %64 = vector.load %arg3[%c0_63, %c0_64] : memref<1x6xf32, #tpu.memory_space<vmem>>, vector<1x6xf32>
    %65 = vector.broadcast %64 : vector<1x6xf32> to vector<256x6xf32>
    %66 = arith.addf %63, %65 : vector<256x6xf32>
    %67 = vector.shape_cast %66 : vector<256x6xf32> to vector<16x16x6xf32>
    %c0_65 = arith.constant 0 : index
    %c0_66 = arith.constant 0 : index
    %c0_67 = arith.constant 0 : index
    %c0_68 = arith.constant 0 : index
    %68 = vector.load %arg4[%c0_65, %c0_66, %c0_67, %c0_68] : memref<1x16x16x8xf32, #tpu.memory_space<vmem>>, vector<1x16x16x6xf32>
    %69 = vector.shape_cast %68 : vector<1x16x16x6xf32> to vector<16x16x6xf32>
    %70 = vector.shape_cast %67 : vector<16x16x6xf32> to vector<1x16x16x6xf32>
    tpu.vector_store %arg4[%c0_65, %c0_66, %c0_67, %c0_68], %70 {strides = array<i32>} : memref<1x16x16x8xf32, #tpu.memory_space<vmem>>, vector<1x16x16x6xf32>,
    %cst_69 = arith.constant 0.000000e+00 : f32
    %71 = vector.broadcast %cst_69 : f32 to vector<16x16x2xf32>
    %c0_70 = arith.constant 0 : index
    %c0_71 = arith.constant 0 : index
    %c0_72 = arith.constant 0 : index
    %c6_73 = arith.constant 6 : index
    %72 = vector.load %arg4[%c0_70, %c0_71, %c0_72, %c6_73] : memref<1x16x16x8xf32, #tpu.memory_space<vmem>>, vector<1x16x16x2xf32>
    %73 = vector.shape_cast %72 : vector<1x16x16x2xf32> to vector<16x16x2xf32>
    %74 = vector.shape_cast %71 : vector<16x16x2xf32> to vector<1x16x16x2xf32>
    tpu.vector_store %arg4[%c0_70, %c0_71, %c0_72, %c6_73], %74 {strides = array<i32>} : memref<1x16x16x8xf32, #tpu.memory_space<vmem>>, vector<1x16x16x2xf32>,
    return
  }
  func.func @transform_0(%arg0: i32) -> (i32, i32, i32, i32) {
    %c0_i32 = arith.constant 0 : i32
    %c0_i32_0 = arith.constant 0 : i32
    %c0_i32_1 = arith.constant 0 : i32
    %c0_i32_2 = arith.constant 0 : i32
    return %arg0, %c0_i32, %c0_i32_0, %c0_i32_1 : i32, i32, i32, i32
  }
  func.func @transform_1(%arg0: i32) -> (i32, i32, i32) {
    %c0_i32 = arith.constant 0 : i32
    %c0_i32_0 = arith.constant 0 : i32
    %c0_i32_1 = arith.constant 0 : i32
    %c0_i32_2 = arith.constant 0 : i32
    return %c0_i32, %c0_i32_0, %c0_i32_1 : i32, i32, i32
  }
  func.func @transform_2(%arg0: i32) -> (i32, i32) {
    %c0_i32 = arith.constant 0 : i32
    %c0_i32_0 = arith.constant 0 : i32
    %c0_i32_1 = arith.constant 0 : i32
    return %c0_i32, %c0_i32_0 : i32, i32
  }
  func.func @transform_3(%arg0: i32) -> (i32, i32, i32, i32) {
    %c0_i32 = arith.constant 0 : i32
    %c0_i32_0 = arith.constant 0 : i32
    %c0_i32_1 = arith.constant 0 : i32
    %c0_i32_2 = arith.constant 0 : i32
    return %arg0, %c0_i32, %c0_i32_0, %c0_i32_1 : i32, i32, i32, i32
  }
}

</mosaic_0001>

<bundles_post_ra>
// kernel: conv_super_forward.1
= control target key start
LH: loop header
LB: loop body
LE: loop exit
PB: predicated region body
PF: predicated region fallthrough
CT: control target
= control target key end

     0   :  { %s4977_s12 = smov 0   ;;  %s6478_s0 = inlined_call_operand.vmem [shape: bf16[2,18,18,4], index: 0, kind: input, shape index: {}]   ;;  %s6479_s1 = inlined_call_operand.vmem [shape: bf16[9,4,6], index: 1, kind: input, shape index: {}]   ;;  %s6480_s2 = inlined_call_operand.vmem [shape: f32[1,6], index: 2, kind: input, shape index: {}]   ;;  %s6481_s3 = inlined_call_operand.vmem [shape: f32[2,16,16,8], index: 3, kind: output, shape index: {}]  }
   0x1 LB: > { %s4240_s13 = sadd.s32 4294967295, %s4954_s12   ;;  %p4244_p0 = scmp.ge.s32.totalorder %s4954_s12, 1  ;;  %s4954_s12 = sphi %s4977_s12, %s13_s12  }
   0x2   : > { %p137_p1 = scmp.lt.s32.totalorder %s4954_s12, 3 }
   0x4   : > { %p138_p2 = pnand %p4244_p0, %p137_p1 }
   0x6   : > { %141 = sbr.rel (%p138_p2) target bundleno = 757 (0x2f5), region = 32 }
   0xb   : > { %v4248_v0 = vld [vmem:[%s6479_s1 + $0x2] sm:$0x3]  ;;  %vm707_vm0 = vcmask 1041408   ;;  %p161_p3 = scmp.lt.s32.totalorder %s4240_s13, 1  ;;  %v4361_v2 = vld [vmem:[%s6479_s1 + $0x4] sm:$0x3] }
   0xc   : > { %v709_v1 = vsel %vm707_vm0, %v4248_v0, 0  ;;  %v1282_v3 = vsel %vm707_vm0, %v4361_v2, 0  ;;  %v4410_v4 = vld [vmem:[%s6479_s1 + $0x6] sm:$0x3]  ;;  %v204_v5 = vld [vmem:[%s6479_s1] sm:$0x3] }
   0xd   : > { %4883 = vmatpush.bf16.msra.mxu1 %v709_v1  ;;  %4884 = vmatpush.bf16.msra.mxu2 %v709_v1  ;;  %s6491_s13 = smov (!%p161_p3, %s4240_s13), 1  ;;  %v4539_v6 = vld [vmem:[%s6479_s1 + $0x8] sm:$0x3]  ;;  %v1569_v7 = vsel %vm707_vm0, %v4410_v4, 0  ;;  %v929_v8 = vsel %vm707_vm0, %v204_v5, 0  ;;  %vm658_vm4 = vcmask 31744  }
   0xe   : > { %4885 = vmatpush.bf16.msra.mxu3 %v709_v1  ;;  %718 = vmatpush.bf16.msra.mxu0 %v709_v1  ;;  %s4886_s24 = smul.u32 216, %s6491_s13  ;;  %v2223_v9 = vsel %vm707_vm0, %v4539_v6, 0  ;;  %vm221_vm1 = vsmask.f32 3328  ;;  %vm222_vm2 = vsmask.f32 7440 }
   0xf   : > { %vm5023_vm3 = vmor %vm221_vm1, %vm222_vm2  ;;  %vm1068_vm5 = vcmask 1042432   ;;  %vm1069_vm6 = vcmask 1046532   ;;  %vm4119_vm8 = vcmask 48128   ;;  %vm4152_vm9 = vcmask 64560   ;;  %s4834_s11 = sshll.u32 %s6491_s13, 8 }
  0x10   : > { %s5011_s27 = scalar_lea.vmem %s6478_s0, %s4886_s24  ;;  %vm5197_vm7 = vmor %vm1068_vm5, %vm1069_vm6  ;;  %s6040_s15 = scalar_lea.vmem %s6481_s3, %s4834_s11 }
  0x11   : > { %1291 = vmatpush.bf16.msrb.mxu2 %v1282_v3  ;;  %938 = vmatpush.bf16.msrb.mxu1 %v929_v8  ;;  %v180_v10 = vld [vmem:[%s5011_s27 + $0x30] sm:$0xf]  ;;  %v181_v11 = vld [vmem:[%s5011_s27 + $0x34] sm:$0xf]  ;;  %v209_v12 = vld [vmem:[%s5011_s27 + $0x38] sm:$0x1] }
  0x12   : > { %1578 = vmatpush.bf16.msrb.mxu3 %v1569_v7  ;;  %2232 = vmatpush.bf16.msrb.mxu0 %v2223_v9  ;;  %v321_v13 = vshrl.u32 %v180_v10, 16  ;;  %v324_v14 = vshll.u32 %v180_v10, 16  ;;  %v330_v15 = vshll.u32 %v181_v11, 16  ;;  %v334_v16 = vshrl.u32 %v181_v11, 16  ;;  %v188_v17 = vld [vmem:[%s5011_s27 + $0x60] sm:$0xf] }
  0x13   : > { %v340_v18 = vshll.u32 %v209_v12, 16  ;;  %v189_v19 = vld [vmem:[%s5011_s27 + $0x64] sm:$0xf]  ;;  %v213_v20 = vld [vmem:[%s5011_s27 + $0x68] sm:$0x1]  ;;  %v417_v21 = vshrl.u32 %v188_v17, 16 }
  0x14   : > { %v323_v22 = vrot.slane %v321_v13, 4  ;;  %v326_v23 = vrot.slane %v324_v14, 5  ;;  %v332_v24 = vrot.slane %v330_v15, 5  ;;  %v336_v25 = vrot.slane %v334_v16, 4  ;;  %v196_v26 = vld [vmem:[%s5011_s27 + $0x90] sm:$0xf] }
  0x15   : > { %v342_v27 = vrot.slane %v340_v18, 5  ;;  %v419_v28 = vrot.slane %v417_v21, 4  ;;  %v420_v29 = vshll.u32 %v188_v17, 16  ;;  %v426_v30 = vshll.u32 %v189_v19, 16  ;;  %v197_v35 = vld [vmem:[%s5011_s27 + $0x94] sm:$0xf] }
  0x16   : > { %v327_v31 = vor.u32 %v326_v23, %v323_v22  ;;  %v337_v32 = vor.u32 %v336_v25, %v332_v24  ;;  %v430_v33 = vshrl.u32 %v189_v19, 16  ;;  %v436_v34 = vshll.u32 %v213_v20, 16  ;;  %v217_v45 = vld [vmem:[%s5011_s27 + $0x98] sm:$0x1]  ;;  %v172_v61 = vld [vmem:[%s5011_s27] sm:$0xf] }
  0x17   : > { %v422_v37 = vrot.slane %v420_v29, 5  ;;  %v428_v38 = vrot.slane %v426_v30, 5  ;;  %v513_v39 = vshrl.u32 %v196_v26, 16  ;;  %v516_v47 = vshll.u32 %v196_v26, 16  ;;  %v5036_v1 = vld [vmem:[%s5011_s27 + $0x4] sm:$0xf] }
  0x18   : > { %v328_v40 = vrot.slane %v327_v31, 4  ;;  %v338_v41 = vrot.slane %v337_v32, 4  ;;  %v432_v42 = vrot.slane %v430_v33, 4  ;;  %v438_v43 = vrot.slane %v436_v34, 5  ;;  %v5039_v2 = vld [vmem:[%s5011_s27 + $0x8] sm:$0x1] }
  0x19   : > { %v423_v44 = vor.u32 %v422_v37, %v419_v28  ;;  %v515_v46 = vrot.slane %v513_v39, 4  ;;  %v522_v48 = vshll.u32 %v197_v35, 16  ;;  %v526_v52 = vshrl.u32 %v197_v35, 16  ;;  %v182_v19 = vld [vmem:[%s5011_s27 + $0x3c] sm:$0xf] }
  0x1a   : > { %v333_v49 = vsel %vm5023_vm3, %v328_v40, %v332_v24  ;;  %v343_v50 = vsel %vm5023_vm3, %v338_v41, %v342_v27  ;;  %v433_v51 = vor.u32 %v432_v42, %v428_v38  ;;  %v518_v56 = vrot.slane %v516_v47, 5  ;;  %v5051_v20 = vld [vmem:[%s5011_s27 + $0x40] sm:$0xf]  ;;  %v5056_v25 = vld [vmem:[%s5011_s27 + $0x44] sm:$0x1] }
  0x1b   : > { %v618_v53 = vunpack.c.l.b16 %v333_v49  ;;  %v619_v54 = vunpack.c.l.b16 %v343_v50  ;;  %v424_v55 = vrot.slane %v423_v44, 4  ;;  %v524_v58 = vrot.slane %v522_v48, 5  ;;  %v190_v33 = vld [vmem:[%s5011_s27 + $0x6c] sm:$0xf]  ;;  %v214_v47 = vld [vmem:[%s5011_s27 + $0x74] sm:$0x1] }
  0x1c   : > { %v434_v57 = vrot.slane %v433_v51, 4  ;;  %v528_v59 = vrot.slane %v526_v52, 4  ;;  %v532_v60 = vshll.u32 %v217_v45, 16  ;;  %v519_v0 = vor.u32 %v518_v56, %v515_v46 }
  0x1d   : > { %v646_v62 = vpack.c.b16 %v619_v54, %v618_v53  ;;  %v429_v63 = vsel %vm5023_vm3, %v424_v55, %v428_v38  ;;  %v225_v9 = vshrl.u32 %v172_v61, 16  ;;  %v228_v10 = vshll.u32 %v172_v61, 16  ;;  %v198_v61 = vld [vmem:[%s5011_s27 + $0x9c] sm:$0xf] }
  0x1e   : > { %v439_v3 = vsel %vm5023_vm3, %v434_v57, %v438_v43  ;;  %v626_v4 = vunpack.c.l.b16 %v429_v63  ;;  %v529_v5 = vor.u32 %v528_v59, %v524_v58  ;;  %v534_v6 = vrot.slane %v532_v60, 5  ;;  %v191_v43 = vld [vmem:[%s5011_s27 + $0x70] sm:$0xf] }
  0x1f   : > { %4253 = vmatmul.msk.bf16.vlgmr.msra.gmra.mxu1 %vm658_vm4, %v646_v62  ;;  %v627_v7 = vunpack.c.l.b16 %v439_v3  ;;  %v520_v8 = vrot.slane %v519_v0, 4  ;;  %v234_v12 = vshll.u32 %v5036_v1, 16  ;;  %v238_v13 = vshrl.u32 %v5036_v1, 16  ;;  %v199_v3 = vld [vmem:[%s5011_s27 + $0xa0] sm:$0xf] }
  0x20   : > { %v530_v11 = vrot.slane %v529_v5, 4  ;;  %v244_v14 = vshll.u32 %v5039_v2, 16  ;;  %v227_v17 = vrot.slane %v225_v9, 4  ;;  %v230_v18 = vrot.slane %v228_v10, 5 }
  0x21   : > { %v650_v15 = vpack.c.b16 %v627_v7, %v626_v4  ;;  %v525_v16 = vsel %vm5023_vm3, %v520_v8, %v524_v58  ;;  %v236_v23 = vrot.slane %v234_v12, 5  ;;  %v240_v24 = vrot.slane %v238_v13, 4  ;;  %v218_v8 = vld [vmem:[%s5011_s27 + $0xa4] sm:$0x1] }
  0x22   : > { %v535_v21 = vsel %vm5023_vm3, %v530_v11, %v534_v6  ;;  %v634_v22 = vunpack.c.l.b16 %v525_v16  ;;  %v231_v27 = vor.u32 %v230_v18, %v227_v17  ;;  %v246_v28 = vrot.slane %v244_v14, 5 }
  0x23   : > { %4257 = vmatmul.msk.bf16.vlgmr.msra.gmra.mxu2 %vm658_vm4, %v650_v15  ;;  %v635_v26 = vunpack.c.l.b16 %v535_v21  ;;  %v241_v29 = vor.u32 %v240_v24, %v236_v23  ;;  %v345_v30 = vshrl.u32 %v182_v19, 16  ;;  %v348_v31 = vshll.u32 %v182_v19, 16 }
  0x24   : > { %v354_v32 = vshll.u32 %v5051_v20, 16  ;;  %v232_v35 = vrot.slane %v231_v27, 4  ;;  %v358_v37 = vshrl.u32 %v5051_v20, 16  ;;  %v364_v38 = vshll.u32 %v5056_v25, 16 }
  0x25   : > { %v654_v34 = vpack.c.b16 %v635_v26, %v634_v22  ;;  %v242_v39 = vrot.slane %v241_v29, 4  ;;  %v347_v40 = vrot.slane %v345_v30, 4  ;;  %v350_v41 = vrot.slane %v348_v31, 5  ;;  %v174_v22 = vld [vmem:[%s5011_s27 + $0xc] sm:$0xf] }
  0x26   : > { %v356_v42 = vrot.slane %v354_v32, 5  ;;  %v237_v44 = vsel %vm5023_vm3, %v232_v35, %v236_v23  ;;  %v360_v45 = vrot.slane %v358_v37, 4  ;;  %v366_v46 = vrot.slane %v364_v38, 5  ;;  %v5085_v32 = vld [vmem:[%s5011_s27 + $0x14] sm:$0x1] }
  0x27   : > { %4261 = vmatmul.msk.bf16.vlgmr.msra.gmra.mxu3 %vm658_vm4, %v654_v34  ;;  %v441_v48 = vshrl.u32 %v190_v33, 16  ;;  %v247_v49 = vsel %vm5023_vm3, %v242_v39, %v246_v28  ;;  %v610_v50 = vunpack.c.l.b16 %v237_v44  ;;  %v351_v51 = vor.u32 %v350_v41, %v347_v40  ;;  %v5082_v28 = vld [vmem:[%s5011_s27 + $0x10] sm:$0xf] }
  0x28   : > { %v444_v52 = vshll.u32 %v190_v33, 16  ;;  %v611_v53 = vunpack.c.l.b16 %v247_v49  ;;  %v361_v54 = vor.u32 %v360_v45, %v356_v42  ;;  %v450_v56 = vshll.u32 %v191_v43, 16 }
  0x29   : > { %v443_v55 = vrot.slane %v441_v48, 4  ;;  %v352_v57 = vrot.slane %v351_v51, 4  ;;  %v454_v59 = vshrl.u32 %v191_v43, 16  ;;  %v460_v60 = vshll.u32 %v214_v47, 16  ;;  %v5095_v47 = vld [vmem:[%s5011_s27 + $0x4c] sm:$0xf] }
  0x2a   : > { %v446_v58 = vrot.slane %v444_v52, 5  ;;  %v642_v62 = vpack.c.b16 %v611_v53, %v610_v50  ;;  %v362_v63 = vrot.slane %v361_v54, 4  ;;  %v452_v0 = vrot.slane %v450_v56, 5  ;;  %v5100_v56 = vld [vmem:[%s5011_s27 + $0x50] sm:$0x1] }
  0x2b   : > { %v357_v4 = vsel %vm5023_vm3, %v352_v57, %v356_v42  ;;  %v456_v6 = vrot.slane %v454_v59, 4  ;;  %v462_v7 = vrot.slane %v460_v60, 5  ;;  %v537_v11 = vshrl.u32 %v198_v61, 16  ;;  %v184_v42 = vld [vmem:[%s5011_s27 + $0x48] sm:$0xf] }
  0x2c   : > { %v447_v5 = vor.u32 %v446_v58, %v443_v55  ;;  %4249 = vmatmul.msk.bf16.vlgmr.msra.gmra.mxu0 %vm658_vm4, %v642_v62  ;;  %v367_v9 = vsel %vm5023_vm3, %v362_v63, %v366_v46  ;;  %v620_v10 = vunpack.c.l.b16 %v357_v4  ;;  %v540_v12 = vshll.u32 %v198_v61, 16 }
  0x2d   : > { %v621_v13 = vunpack.c.l.b16 %v367_v9  ;;  %v457_v15 = vor.u32 %v456_v6, %v452_v0  ;;  %v546_v16 = vshll.u32 %v199_v3, 16  ;;  %v539_v17 = vrot.slane %v537_v11, 4 }
  0x2e   : > { %v448_v14 = vrot.slane %v447_v5, 4  ;;  %v542_v18 = vrot.slane %v540_v12, 5  ;;  %v550_v19 = vshrl.u32 %v199_v3, 16  ;;  %v556_v21 = vshll.u32 %v218_v8, 16  ;;  %v192_v3 = vld [vmem:[%s5011_s27 + $0x78] sm:$0xf] }
  0x2f   : > { %v647_v23 = vpack.c.b16 %v621_v13, %v620_v10  ;;  %v458_v26 = vrot.slane %v457_v15, 4  ;;  %v548_v27 = vrot.slane %v546_v16, 5  ;;  %v249_v35 = vshrl.u32 %v174_v22, 16  ;;  %v193_v8 = vld [vmem:[%s5011_s27 + $0x7c] sm:$0xf] }
  0x30   : > { %v453_v24 = vsel %vm5023_vm3, %v448_v14, %v452_v0  ;;  %v543_v30 = vor.u32 %v542_v18, %v539_v17  ;;  %v552_v31 = vrot.slane %v550_v19, 4  ;;  %v558_v34 = vrot.slane %v556_v21, 5  ;;  %v215_v16 = vld [vmem:[%s5011_s27 + $0x80] sm:$0x1] }
  0x31   : > { %v628_v29 = vunpack.c.l.b16 %v453_v24  ;;  %4254 = vmatmul.msk.bf16.gmra.mxu1 %vm658_vm4, %v647_v23  ;;  %v463_v33 = vsel %vm5023_vm3, %v458_v26, %v462_v7  ;;  %v252_v37 = vshll.u32 %v174_v22, 16  ;;  %v258_v41 = vshll.u32 %v5082_v28, 16 }
  0x32   : > { %v629_v38 = vunpack.c.l.b16 %v463_v33  ;;  %v544_v39 = vrot.slane %v543_v30, 4  ;;  %v553_v40 = vor.u32 %v552_v31, %v548_v27  ;;  %v251_v43 = vrot.slane %v249_v35, 4 }
  0x33   : > { %v254_v44 = vrot.slane %v252_v37, 5  ;;  %v262_v45 = vshrl.u32 %v5082_v28, 16  ;;  %v268_v46 = vshll.u32 %v5085_v32, 16  ;;  %v260_v51 = vrot.slane %v258_v41, 5 }
  0x34   : > { %v651_v48 = vpack.c.b16 %v629_v38, %v628_v29  ;;  %v549_v49 = vsel %vm5023_vm3, %v544_v39, %v548_v27  ;;  %v554_v50 = vrot.slane %v553_v40, 4  ;;  %v369_v58 = vshrl.u32 %v184_v42, 16  ;;  %v201_v39 = vld [vmem:[%s5011_s27 + $0xac] sm:$0xf]  ;;  %v219_v40 = vld [vmem:[%s5011_s27 + $0xb0] sm:$0x1] }
  0x35   : > { %v636_v52 = vunpack.c.l.b16 %v549_v49  ;;  %v255_v53 = vor.u32 %v254_v44, %v251_v43  ;;  %v264_v54 = vrot.slane %v262_v45, 4  ;;  %v270_v55 = vrot.slane %v268_v46, 5 }
  0x36   : > { %4258 = vmatmul.msk.bf16.gmra.mxu2 %vm658_vm4, %v651_v48  ;;  %v559_v57 = vsel %vm5023_vm3, %v554_v50, %v558_v34  ;;  %v372_v59 = vshll.u32 %v184_v42, 16  ;;  %v378_v60 = vshll.u32 %v5095_v47, 16  ;;  %v382_v0 = vshrl.u32 %v5095_v47, 16  ;;  %v200_v34 = vld [vmem:[%s5011_s27 + $0xa8] sm:$0xf] }
  0x37   : > { %v637_v61 = vunpack.c.l.b16 %v559_v57  ;;  %v256_v62 = vrot.slane %v255_v53, 4  ;;  %v265_v63 = vor.u32 %v264_v54, %v260_v51  ;;  %v371_v4 = vrot.slane %v369_v58, 4 }
  0x38   : > { %v374_v5 = vrot.slane %v372_v59, 5  ;;  %v380_v6 = vrot.slane %v378_v60, 5  ;;  %v388_v7 = vshll.u32 %v5100_v56, 16  ;;  %v384_v12 = vrot.slane %v382_v0, 4  ;;  %v176_v59 = vld [vmem:[%s5011_s27 + $0x18] sm:$0xf] }
  0x39   : > { %v655_v9 = vpack.c.b16 %v637_v61, %v636_v52  ;;  %v261_v10 = vsel %vm5023_vm3, %v256_v62, %v260_v51  ;;  %v266_v11 = vrot.slane %v265_v63, 4  ;;  %v465_v17 = vshrl.u32 %v192_v3, 16  ;;  %v5128_v63 = vld [vmem:[%s5011_s27 + $0x1c] sm:$0xf]  ;;  %v5131_v0 = vld [vmem:[%s5011_s27 + $0x20] sm:$0x1] }
  0x3a   : > { %v612_v13 = vunpack.c.l.b16 %v261_v10  ;;  %v375_v14 = vor.u32 %v374_v5, %v371_v4  ;;  %v390_v15 = vrot.slane %v388_v7, 5  ;;  %v385_v19 = vor.u32 %v384_v12, %v380_v6 }
  0x3b   : > { %4262 = vmatmul.msk.bf16.gmra.mxu3 %vm658_vm4, %v655_v9  ;;  %v271_v18 = vsel %vm5023_vm3, %v266_v11, %v270_v55  ;;  %v468_v21 = vshll.u32 %v192_v3, 16  ;;  %v474_v22 = vshll.u32 %v193_v8, 16  ;;  %v467_v26 = vrot.slane %v465_v17, 4 }
  0x3c   : > { %v613_v23 = vunpack.c.l.b16 %v271_v18  ;;  %v376_v24 = vrot.slane %v375_v14, 4  ;;  %v478_v27 = vshrl.u32 %v193_v8, 16  ;;  %v386_v29 = vrot.slane %v385_v19, 4 }
  0x3d   : > { %v470_v30 = vrot.slane %v468_v21, 5  ;;  %v476_v31 = vrot.slane %v474_v22, 5  ;;  %v484_v33 = vshll.u32 %v215_v16, 16  ;;  %v561_v48 = vshrl.u32 %v200_v34, 16  ;;  %v5141_v21 = vld [vmem:[%s5011_s27 + $0x58] sm:$0xf] }
  0x3e   : > { %v643_v35 = vpack.c.b16 %v613_v23, %v612_v13  ;;  %v381_v37 = vsel %vm5023_vm3, %v376_v24, %v380_v6  ;;  %v480_v38 = vrot.slane %v478_v27, 4  ;;  %v391_v41 = vsel %vm5023_vm3, %v386_v29, %v390_v15  ;;  %v186_v15 = vld [vmem:[%s5011_s27 + $0x54] sm:$0xf]  ;;  %v5146_v27 = vld [vmem:[%s5011_s27 + $0x5c] sm:$0x1] }
  0x3f   : > { %v622_v42 = vunpack.c.l.b16 %v381_v37  ;;  %v471_v43 = vor.u32 %v470_v30, %v467_v26  ;;  %v486_v44 = vrot.slane %v484_v33, 5  ;;  %v623_v45 = vunpack.c.l.b16 %v391_v41 }
  0x40   : > { %4250 = vmatmul.msk.bf16.gmra.mxu0 %vm658_vm4, %v643_v35  ;;  %v481_v46 = vor.u32 %v480_v38, %v476_v31  ;;  %v564_v49 = vshll.u32 %v200_v34, 16  ;;  %v570_v51 = vshll.u32 %v201_v39, 16  ;;  %v574_v52 = vshrl.u32 %v201_v39, 16  ;;  %v194_v39 = vld [vmem:[%s5011_s27 + $0x84] sm:$0xf] }
  0x41   : > { %v472_v50 = vrot.slane %v471_v43, 4  ;;  %v580_v53 = vshll.u32 %v219_v40, 16  ;;  %v648_v54 = vpack.c.b16 %v623_v45, %v622_v42  ;;  %v563_v57 = vrot.slane %v561_v48, 4 }
  0x42   : > { %v482_v55 = vrot.slane %v481_v46, 4  ;;  %v566_v58 = vrot.slane %v564_v49, 5  ;;  %v572_v61 = vrot.slane %v570_v51, 5  ;;  %v576_v62 = vrot.slane %v574_v52, 4  ;;  %v195_v49 = vld [vmem:[%s5011_s27 + $0x88] sm:$0xf] }
  0x43   : > { %v477_v60 = vsel %vm5023_vm3, %v472_v50, %v476_v31  ;;  %4255 = vmatmul.msk.bf16.gmra.mxu1 %vm658_vm4, %v648_v54  ;;  %v582_v6 = vrot.slane %v580_v53, 5  ;;  %v273_v9 = vshrl.u32 %v176_v59, 16  ;;  %v276_v10 = vshll.u32 %v176_v59, 16  ;;  %v216_v53 = vld [vmem:[%s5011_s27 + $0x8c] sm:$0x1] }
  0x44   : > { %v487_v3 = vsel %vm5023_vm3, %v482_v55, %v486_v44  ;;  %v630_v4 = vunpack.c.l.b16 %v477_v60  ;;  %v567_v5 = vor.u32 %v566_v58, %v563_v57  ;;  %v577_v8 = vor.u32 %v576_v62, %v572_v61 }
  0x45   : > { %v631_v7 = vunpack.c.l.b16 %v487_v3  ;;  %v282_v12 = vshll.u32 %v5128_v63, 16  ;;  %v286_v13 = vshrl.u32 %v5128_v63, 16  ;;  %v292_v14 = vshll.u32 %v5131_v0, 16 }
  0x46   : > { %v568_v11 = vrot.slane %v567_v5, 4  ;;  %v578_v17 = vrot.slane %v577_v8, 4  ;;  %v275_v18 = vrot.slane %v273_v9, 4  ;;  %v278_v19 = vrot.slane %v276_v10, 5  ;;  %v202_v8 = vld [vmem:[%s5011_s27 + $0xb4] sm:$0xf] }
  0x47   : > { %v652_v16 = vpack.c.b16 %v631_v7, %v630_v4  ;;  %v284_v23 = vrot.slane %v282_v12, 5  ;;  %v288_v24 = vrot.slane %v286_v13, 4  ;;  %v294_v26 = vrot.slane %v292_v14, 5  ;;  %v203_v12 = vld [vmem:[%s5011_s27 + $0xb8] sm:$0xf] }
  0x48   : > { %v573_v22 = vsel %vm5023_vm3, %v568_v11, %v572_v61  ;;  %v583_v29 = vsel %vm5023_vm3, %v578_v17, %v582_v6  ;;  %v279_v31 = vor.u32 %v278_v19, %v275_v18  ;;  %v393_v33 = vshrl.u32 %v186_v15, 16  ;;  %v220_v17 = vld [vmem:[%s5011_s27 + $0xbc] sm:$0x1] }
  0x49   : > { %4259 = vmatmul.msk.bf16.gmra.mxu2 %vm658_vm4, %v652_v16  ;;  %v638_v30 = vunpack.c.l.b16 %v573_v22  ;;  %v639_v34 = vunpack.c.l.b16 %v583_v29  ;;  %v289_v35 = vor.u32 %v288_v24, %v284_v23  ;;  %v396_v37 = vshll.u32 %v186_v15, 16 }
  0x4a   : > { %v402_v38 = vshll.u32 %v5141_v21, 16  ;;  %v280_v40 = vrot.slane %v279_v31, 4  ;;  %v395_v41 = vrot.slane %v393_v33, 4  ;;  %v406_v42 = vshrl.u32 %v5141_v21, 16 }
  0x4b   : > { %v412_v43 = vshll.u32 %v5146_v27, 16  ;;  %v656_v44 = vpack.c.b16 %v639_v34, %v638_v30  ;;  %v290_v45 = vrot.slane %v289_v35, 4  ;;  %v398_v46 = vrot.slane %v396_v37, 5  ;;  %v178_v37 = vld [vmem:[%s5011_s27 + $0x24] sm:$0xf] }
  0x4c   : > { %v404_v48 = vrot.slane %v402_v38, 5  ;;  %v285_v50 = vsel %vm5023_vm3, %v280_v40, %v284_v23  ;;  %v408_v51 = vrot.slane %v406_v42, 4  ;;  %v489_v54 = vshrl.u32 %v194_v39, 16  ;;  %v5174_v42 = vld [vmem:[%s5011_s27 + $0x28] sm:$0xf] }
  0x4d   : > { %v414_v52 = vrot.slane %v412_v43, 5  ;;  %4263 = vmatmul.msk.bf16.gmra.mxu3 %vm658_vm4, %v656_v44  ;;  %v295_v55 = vsel %vm5023_vm3, %v290_v45, %v294_v26  ;;  %v614_v57 = vunpack.c.l.b16 %v285_v50  ;;  %v399_v58 = vor.u32 %v398_v46, %v395_v41 }
  0x4e   : > { %v492_v59 = vshll.u32 %v194_v39, 16  ;;  %v615_v60 = vunpack.c.l.b16 %v295_v55  ;;  %v409_v61 = vor.u32 %v408_v51, %v404_v48  ;;  %v491_v62 = vrot.slane %v489_v54, 4 }
  0x4f   : > { %v498_v3 = vshll.u32 %v195_v49, 16  ;;  %v400_v4 = vrot.slane %v399_v58, 4  ;;  %v502_v6 = vshrl.u32 %v195_v49, 16  ;;  %v508_v7 = vshll.u32 %v216_v53, 16 }
  0x50   : > { %v494_v5 = vrot.slane %v492_v59, 5  ;;  %v644_v9 = vpack.c.b16 %v615_v60, %v614_v57  ;;  %v410_v10 = vrot.slane %v409_v61, 4  ;;  %v585_v22 = vshrl.u32 %v202_v8, 16  ;;  %v1020_v61 = vld [vmem:[%s5011_s27] sm:$0xe] }
  0x51   : > { %v500_v11 = vrot.slane %v498_v3, 5  ;;  %v405_v13 = vsel %vm5023_vm3, %v400_v4, %v404_v48  ;;  %v504_v15 = vrot.slane %v502_v6, 4  ;;  %v510_v16 = vrot.slane %v508_v7, 5  ;;  %v5178_v48 = vld [vmem:[%s5011_s27 + $0x2c] sm:$0x1] }
  0x52   : > { %v495_v14 = vor.u32 %v494_v5, %v491_v62  ;;  %4251 = vmatmul.msk.bf16.gmra.mxu0 %vm658_vm4, %v644_v9  ;;  %v415_v18 = vsel %vm5023_vm3, %v410_v10, %v414_v52  ;;  %v624_v19 = vunpack.c.l.b16 %v405_v13  ;;  %v588_v23 = vshll.u32 %v202_v8, 16  ;;  %v4491_v6 = vld [vmem:[%s5011_s27 + $0xc] sm:$0xf] }
  0x53   : > { %v625_v24 = vunpack.c.l.b16 %v415_v18  ;;  %v505_v29 = vor.u32 %v504_v15, %v500_v11  ;;  %v594_v30 = vshll.u32 %v203_v12, 16  ;;  %v587_v31 = vrot.slane %v585_v22, 4 }
  0x54   : > { %v496_v26 = vrot.slane %v495_v14, 4  ;;  %v590_v33 = vrot.slane %v588_v23, 5  ;;  %v598_v34 = vshrl.u32 %v203_v12, 16  ;;  %v604_v35 = vshll.u32 %v220_v17, 16  ;;  %v4492_v12 = vld [vmem:[%s5011_s27 + $0x10] sm:$0xf] }
  0x55   : > { %v649_v38 = vpack.c.b16 %v625_v24, %v624_v19  ;;  %v506_v40 = vrot.slane %v505_v29, 4  ;;  %v596_v41 = vrot.slane %v594_v30, 5  ;;  %v1076_v43 = vrot.slane %v5039_v2, 5 }
  0x56   : > { %v501_v39 = vsel %vm5023_vm3, %v496_v26, %v500_v11  ;;  %v591_v45 = vor.u32 %v590_v33, %v587_v31  ;;  %v600_v46 = vrot.slane %v598_v34, 4  ;;  %v606_v50 = vrot.slane %v604_v35, 5  ;;  %v4637_v11 = vld [vmem:[%s6479_s1 + $0xc] sm:$0x3] }
  0x57   : > { %v632_v44 = vunpack.c.l.b16 %v501_v39  ;;  %4256 = vmatmul.msk.bf16.gmra.mxu1 %vm658_vm4, %v649_v38  ;;  %v511_v49 = vsel %vm5023_vm3, %v506_v40, %v510_v16  ;;  %v297_v51 = vshrl.u32 %v178_v37, 16  ;;  %v300_v52 = vshll.u32 %v178_v37, 16  ;;  %v4493_v38 = vld [vmem:[%s5011_s27 + $0x14] sm:$0x1] }
  0x58   : > { %v633_v53 = vunpack.c.l.b16 %v511_v49  ;;  %v592_v54 = vrot.slane %v591_v45, 4  ;;  %v601_v55 = vor.u32 %v600_v46, %v596_v41  ;;  %v306_v2 = vshll.u32 %v5174_v42, 16  ;;  %v4766_v45 = vld [vmem:[%s6479_s1 + $0xe] sm:$0x3] }
  0x59   : > { %v299_v57 = vrot.slane %v297_v51, 4  ;;  %v302_v58 = vrot.slane %v300_v52, 5  ;;  %v310_v59 = vshrl.u32 %v5174_v42, 16  ;;  %v316_v60 = vshll.u32 %v5178_v48, 16  ;;  %v4835_v51 = vld [vmem:[%s5011_s27] sm:$0xff] }
  0x5a   : > { %v653_v62 = vpack.c.b16 %v633_v53, %v632_v44  ;;  %v597_v3 = vsel %vm5023_vm3, %v592_v54, %v596_v41  ;;  %v602_v4 = vrot.slane %v601_v55, 4  ;;  %v308_v5 = vrot.slane %v306_v2, 5  ;;  %v4815_v2 = vld [vmem:[%s6479_s1 + $0x10] sm:$0x3] }
  0x5b   : > { %v640_v7 = vunpack.c.l.b16 %v597_v3  ;;  %v303_v8 = vor.u32 %v302_v58, %v299_v57  ;;  %v312_v9 = vrot.slane %v310_v59, 4  ;;  %v318_v10 = vrot.slane %v316_v60, 5 }
  0x5c   : > { %4260 = vmatmul.msk.bf16.gmra.mxu2 %vm658_vm4, %v653_v62  ;;  %v607_v13 = vsel %vm5023_vm3, %v602_v4, %v606_v50  ;;  %v4345_v14 = vrot.slane %v1020_v61, 9  ;;  %v1073_v19 = vrot.slane %v5036_v1, 5  ;;  %v2908_v22 = vsel %vm707_vm0, %v4637_v11, 0  ;;  %v4588_v50 = vld [vmem:[%s6479_s1 + $0xa] sm:$0x3] }
  0x5d   : > { %v641_v15 = vunpack.c.l.b16 %v607_v13  ;;  %v304_v16 = vrot.slane %v303_v8, 4  ;;  %v313_v17 = vor.u32 %v312_v9, %v308_v5  ;;  %v1741_v23 = vshrl.u32 %v4491_v6, 16  ;;  %2917 = vmatpush.bf16.msra.mxu2 %v2908_v22  ;;  %v1021_v8 = vld [vmem:[%s5011_s27 + $0xc] sm:$0xe] }
  0x5e   : > { %v1744_v24 = vshll.u32 %v4491_v6, 16  ;;  %v1750_v26 = vshll.u32 %v4492_v12, 16  ;;  %v1074_v33 = vsel %vm5197_vm7, %v4345_v14, %v1073_v19  ;;  %v1075_v35 = vrot.slane %v1073_v19, 4  ;;  %v4495_v6 = vld [vmem:[%s5011_s27 + $0x1c] sm:$0xf] }
  0x5f   : > { %v657_v29 = vpack.c.b16 %v641_v15, %v640_v7  ;;  %v309_v30 = vsel %vm5023_vm3, %v304_v16, %v308_v5  ;;  %v314_v31 = vrot.slane %v313_v17, 4  ;;  %v1185_v37 = vunpack.c.l.b16 %v1074_v33  ;;  %v4494_v5 = vld [vmem:[%s5011_s27 + $0x18] sm:$0xf]  ;;  %v4851_v15 = vld [vmem:[%s5011_s27 + $0xc] sm:$0xff] }
  0x60   : > { %v616_v34 = vunpack.c.l.b16 %v309_v30  ;;  %v1743_v1 = vrot.slane %v1741_v23, 4  ;;  %v1746_v40 = vrot.slane %v1744_v24, 5  ;;  %v1752_v41 = vrot.slane %v1750_v26, 5  ;;  %v4496_v30 = vld [vmem:[%s5011_s27 + $0x20] sm:$0x1] }
  0x61   : > { %4264 = vmatmul.msk.bf16.gmra.mxu3 %vm658_vm4, %v657_v29  ;;  %v319_v39 = vsel %vm5023_vm3, %v314_v31, %v318_v10  ;;  %v1754_v44 = vshrl.u32 %v4492_v12, 16  ;;  %v1077_v49 = vsel %vm5197_vm7, %v1075_v35, %v1076_v43  ;;  %v1760_v55 = vshll.u32 %v4493_v38, 16 }
  0x62   : > { %v617_v46 = vunpack.c.l.b16 %v319_v39  ;;  %v1186_v52 = vunpack.c.l.b16 %v1077_v49  ;;  %v1747_v53 = vor.u32 %v1746_v40, %v1743_v1  ;;  %v3562_v58 = vsel %vm707_vm0, %v4766_v45, 0  ;;  %v4497_v45 = vld [vmem:[%s5011_s27 + $0x24] sm:$0xf]  ;;  %v4498_v49 = vld [vmem:[%s5011_s27 + $0x28] sm:$0xf] }
  0x63   : > { %v1756_v54 = vrot.slane %v1754_v44, 4  ;;  %3571 = vmatpush.bf16.msra.mxu3 %v3562_v58  ;;  %v2621_v60 = vsel %vm707_vm0, %v4588_v50, 0  ;;  %v3960_v61 = vsel %vm707_vm0, %v4815_v2, 0  ;;  %v1762_v4 = vrot.slane %v1760_v55, 5  ;;  %v4852_v58 = vld [vmem:[%s5011_s27 + $0x18] sm:$0xff] }
  0x64   : > { %v645_v57 = vpack.c.b16 %v617_v46, %v616_v34  ;;  %v1217_v43 = vpack.c.b16 %v1186_v52, %v1185_v37  ;;  %2630 = vmatpush.bf16.msra.mxu1 %v2621_v60  ;;  %v1748_v62 = vrot.slane %v1747_v53, 4  ;;  %3969 = vmatpush.bf16.msra.mxu0 %v3960_v61  ;;  %v1080_v7 = vrot.slane %v5082_v28, 5  ;;  %v1022_v52 = vld [vmem:[%s5011_s27 + $0x18] sm:$0xe] }
  0x65   : > { %v1757_v59 = vor.u32 %v1756_v54, %v1752_v41  ;;  %v1765_v9 = vshrl.u32 %v4494_v5, 16  ;;  %v1768_v10 = vshll.u32 %v4494_v5, 16  ;;  %v1774_v13 = vshll.u32 %v4495_v6, 16 }
  0x66   : > { %4252 = vmatmul.msk.bf16.gmra.mxu0 %vm658_vm4, %v645_v57  ;;  %v1753_v11 = vsel %vm5023_vm3, %v1748_v62, %v1752_v41  ;;  %v1778_v14 = vshrl.u32 %v4495_v6, 16  ;;  %v4346_v16 = vrot.slane %v1021_v8, 9  ;;  %v1082_v17 = vrot.slane %v1080_v7, 4  ;;  %v4499_v6 = vld [vmem:[%s5011_s27 + $0x2c] sm:$0x1] }
  0x67   : > { %4329 = vmatmul.msk.bf16.vlgmr.msrb.gmra.mxu1 %vm658_vm4, %v4835_v51  ;;  %v1758_v3 = vrot.slane %v1757_v59, 4  ;;  %v1083_v28 = vrot.slane %v5085_v32, 5  ;;  %v2126_v19 = vunpack.c.l.b16 %v1753_v11  ;;  %v1767_v23 = vrot.slane %v1765_v9, 4  ;;  %v4836_v32 = vld [vmem:[%s5011_s27 + $0xc] sm:$0xff] }
  0x68   : > { %v1770_v24 = vrot.slane %v1768_v10, 5  ;;  %v1776_v26 = vrot.slane %v1774_v13, 5  ;;  %v1780_v29 = vrot.slane %v1778_v14, 4  ;;  %v1081_v31 = vsel %vm5197_vm7, %v4346_v16, %v1080_v7  ;;  %v4501_v16 = vld [vmem:[%s5011_s27 + $0x34] sm:$0xf] }
  0x69   : > { %v1763_v12 = vsel %vm5023_vm3, %v1758_v3, %v1762_v4  ;;  %v1084_v33 = vsel %vm5197_vm7, %v1082_v17, %v1083_v28  ;;  %v1784_v38 = vshll.u32 %v4496_v30, 16  ;;  %v1187_v1 = vunpack.c.l.b16 %v1081_v31 }
  0x6a   : > { %v2127_v22 = vunpack.c.l.b16 %v1763_v12  ;;  %v1771_v35 = vor.u32 %v1770_v24, %v1767_v23  ;;  %v1781_v37 = vor.u32 %v1780_v29, %v1776_v26  ;;  %v1188_v39 = vunpack.c.l.b16 %v1084_v33  ;;  %v1023_v24 = vld [vmem:[%s5011_s27 + $0x24] sm:$0xe] }
  0x6b   : > { %v1786_v44 = vrot.slane %v1784_v38, 5  ;;  %v1087_v50 = vrot.slane %v5128_v63, 5  ;;  %v1789_v53 = vshrl.u32 %v4497_v45, 16  ;;  %v1792_v55 = vshll.u32 %v4497_v45, 16  ;;  %v4502_v45 = vld [vmem:[%s5011_s27 + $0x38] sm:$0x1] }
  0x6c   : > { %4362 = vmatmul.msk.bf16.vlgmr.msrb.gmra.mxu2 %vm658_vm4, %v1217_v43  ;;  %v2158_v34 = vpack.c.b16 %v2127_v22, %v2126_v19  ;;  %v1772_v40 = vrot.slane %v1771_v35, 4  ;;  %v1782_v41 = vrot.slane %v1781_v37, 4  ;;  %v1218_v46 = vpack.c.b16 %v1188_v39, %v1187_v1 }
  0x6d   : > { %v1798_v2 = vshll.u32 %v4498_v49, 16  ;;  %v1802_v57 = vshrl.u32 %v4498_v49, 16  ;;  %v4347_v43 = vrot.slane %v1022_v52, 9  ;;  %v1089_v59 = vrot.slane %v1087_v50, 4 }
  0x6e   : > { %v1777_v51 = vsel %vm5023_vm3, %v1772_v40, %v1776_v26  ;;  %v1787_v54 = vsel %vm5023_vm3, %v1782_v41, %v1786_v44  ;;  %v1090_v63 = vrot.slane %v5131_v0, 5  ;;  %v1791_v62 = vrot.slane %v1789_v53, 4  ;;  %v4837_v0 = vld [vmem:[%s5011_s27 + $0x18] sm:$0xff]  ;;  %v4838_v53 = vld [vmem:[%s5011_s27 + $0x24] sm:$0xff] }
  0x6f   : > { %v2128_v60 = vunpack.c.l.b16 %v1777_v51  ;;  %v2129_v61 = vunpack.c.l.b16 %v1787_v54  ;;  %v1794_v3 = vrot.slane %v1792_v55, 5  ;;  %v1800_v4 = vrot.slane %v1798_v2, 5 }
  0x70   : > { %v1804_v5 = vrot.slane %v1802_v57, 4  ;;  %v1088_v7 = vsel %vm5197_vm7, %v4347_v43, %v1087_v50  ;;  %v1091_v8 = vsel %vm5197_vm7, %v1089_v59, %v1090_v63  ;;  %v1808_v12 = vshll.u32 %v4499_v6, 16  ;;  %v4503_v43 = vld [vmem:[%s5011_s27 + $0x3c] sm:$0xf]  ;;  %v4504_v59 = vld [vmem:[%s5011_s27 + $0x40] sm:$0xf] }
  0x71   : > { %4475 = vmatmul.msk.bf16.vlgmr.msrb.gmra.mxu3 %vm658_vm4, %v4851_v15  ;;  %v2159_v9 = vpack.c.b16 %v2129_v61, %v2128_v60  ;;  %v1795_v10 = vor.u32 %v1794_v3, %v1791_v62  ;;  %v1189_v13 = vunpack.c.l.b16 %v1088_v7  ;;  %v1190_v14 = vunpack.c.l.b16 %v1091_v8  ;;  %v4500_v15 = vld [vmem:[%s5011_s27 + $0x30] sm:$0xf]  ;;  %v4897_v62 = vld [vmem:[%s5011_s27 + $0x34] sm:$0xf] }
  0x72   : > { %v1805_v11 = vor.u32 %v1804_v5, %v1800_v4  ;;  %v1810_v19 = vrot.slane %v1808_v12, 5  ;;  %v1094_v23 = vrot.slane %v5174_v42, 5  ;;  %v1813_v26 = vshrl.u32 %v4500_v15, 16  ;;  %v4853_v42 = vld [vmem:[%s5011_s27 + $0x24] sm:$0xff]  ;;  %v1024_v5 = vld [vmem:[%s5011_s27 + $0x30] sm:$0xe] }
  0x73   : > { %v1796_v17 = vrot.slane %v1795_v10, 4  ;;  %v1219_v22 = vpack.c.b16 %v1190_v14, %v1189_v13  ;;  %v1816_v29 = vshll.u32 %v4500_v15, 16  ;;  %v1822_v30 = vshll.u32 %v4501_v16, 16  ;;  %v4854_v10 = vld [vmem:[%s5011_s27 + $0x30] sm:$0xff]  ;;  %v4898_v14 = vld [vmem:[%s5011_s27 + $0x38] sm:$0x1] }
  0x74   : > { %v1806_v28 = vrot.slane %v1805_v11, 4  ;;  %v1826_v31 = vshrl.u32 %v4501_v16, 16  ;;  %v4348_v35 = vrot.slane %v1023_v24, 9  ;;  %v1097_v37 = vrot.slane %v5178_v48, 5 }
  0x75   : > { %v1801_v33 = vsel %vm5023_vm3, %v1796_v17, %v1800_v4  ;;  %v1815_v38 = vrot.slane %v1813_v26, 4  ;;  %v1818_v1 = vrot.slane %v1816_v29, 5  ;;  %v1824_v39 = vrot.slane %v1822_v30, 5 }
  0x76   : > { %4540 = vmatmul.msk.bf16.vlgmr.msrb.gmra.mxu0 %vm658_vm4, %v2158_v34  ;;  %v1811_v34 = vsel %vm5023_vm3, %v1806_v28, %v1810_v19  ;;  %v1828_v40 = vrot.slane %v1826_v31, 4  ;;  %v2130_v41 = vunpack.c.l.b16 %v1801_v33  ;;  %v1832_v51 = vshll.u32 %v4502_v45, 16  ;;  %v4839_v33 = vld [vmem:[%s5011_s27 + $0x30] sm:$0xff] }
  0x77   : > { %4330 = vmatmul.msk.bf16.gmra.mxu1 %vm658_vm4, %v4836_v32  ;;  %v1096_v32 = vrot.slane %v1094_v23, 4  ;;  %v2131_v44 = vunpack.c.l.b16 %v1811_v34  ;;  %v1819_v48 = vor.u32 %v1818_v1, %v1815_v38  ;;  %v1101_v3 = vrot.slane %v4897_v62, 5 }
  0x78   : > { %v1829_v50 = vor.u32 %v1828_v40, %v1824_v39  ;;  %v1837_v6 = vshrl.u32 %v4503_v43, 16  ;;  %v1840_v7 = vshll.u32 %v4503_v43, 16  ;;  %v1846_v8 = vshll.u32 %v4504_v59, 16 }
  0x79   : > { %v1098_v49 = vsel %vm5197_vm7, %v1096_v32, %v1097_v37  ;;  %v2160_v52 = vpack.c.b16 %v2131_v44, %v2130_v41  ;;  %v1820_v2 = vrot.slane %v1819_v48, 4  ;;  %v4349_v12 = vrot.slane %v1024_v5, 9  ;;  %v4506_v41 = vld [vmem:[%s5011_s27 + $0x48] sm:$0xf]  ;;  %v4507_v44 = vld [vmem:[%s5011_s27 + $0x4c] sm:$0xf] }
  0x7a   : > { %v1192_v55 = vunpack.c.l.b16 %v1098_v49  ;;  %v1830_v57 = vrot.slane %v1829_v50, 4  ;;  %v1103_v13 = vrot.slane %v1101_v3, 4  ;;  %v1104_v15 = vrot.slane %v4898_v14, 5  ;;  %v1025_v50 = vld [vmem:[%s5011_s27 + $0x3c] sm:$0xe] }
  0x7b   : > { %v1825_v60 = vsel %vm5023_vm3, %v1820_v2, %v1824_v39  ;;  %v1839_v16 = vrot.slane %v1837_v6, 4  ;;  %v1842_v17 = vrot.slane %v1840_v7, 5  ;;  %v1848_v28 = vrot.slane %v1846_v8, 5  ;;  %v4508_v5 = vld [vmem:[%s5011_s27 + $0x50] sm:$0x1] }
  0x7c   : > { %4363 = vmatmul.msk.bf16.gmra.mxu2 %vm658_vm4, %v1218_v46  ;;  %v1095_v46 = vsel %vm5197_vm7, %v4348_v35, %v1094_v23  ;;  %v1102_v23 = vsel %vm5197_vm7, %v4349_v12, %v1101_v3  ;;  %v1105_v24 = vsel %vm5197_vm7, %v1103_v13, %v1104_v15  ;;  %v1880_v12 = vshll.u32 %v4508_v5, 16  ;;  %v4509_v15 = vld [vmem:[%s5011_s27 + $0x54] sm:$0xf] }
  0x7d   : > { %v1191_v54 = vunpack.c.l.b16 %v1095_v46  ;;  %v1843_v29 = vor.u32 %v1842_v17, %v1839_v16  ;;  %v1193_v35 = vunpack.c.l.b16 %v1102_v23  ;;  %v1194_v32 = vunpack.c.l.b16 %v1105_v24  ;;  %v4510_v16 = vld [vmem:[%s5011_s27 + $0x58] sm:$0xf] }
  0x7e   : > { %v1108_v46 = vrot.slane %v5051_v20, 5  ;;  %v1111_v20 = vrot.slane %v5056_v25, 5 }
  0x7f   : > { %v1220_v63 = vpack.c.b16 %v1192_v55, %v1191_v54  ;;  %v1221_v40 = vpack.c.b16 %v1194_v32, %v1193_v35  ;;  %v1874_v54 = vshrl.u32 %v4507_v44, 16  ;;  %v4855_v55 = vld [vmem:[%s5011_s27 + $0x3c] sm:$0xff]  ;;  %v1026_v35 = vld [vmem:[%s5011_s27 + $0x48] sm:$0xe] }
  0x81   : > { %4476 = vmatmul.msk.bf16.gmra.mxu3 %vm658_vm4, %v4852_v58  ;;  %v1834_v58 = vrot.slane %v1832_v51, 5  ;;  %v1861_v51 = vshrl.u32 %v4506_v41, 16  ;;  %v1876_v3 = vrot.slane %v1874_v54, 4 }
  0x83   : > { %v1835_v61 = vsel %vm5023_vm3, %v1830_v57, %v1834_v58  ;;  %v4350_v57 = vrot.slane %v1025_v50, 9  ;;  %v1110_v58 = vrot.slane %v1108_v46, 4 }
  0x84   : > { %v2133_v11 = vunpack.c.l.b16 %v1835_v61 }
  0x85   : > { %v1109_v6 = vsel %vm5197_vm7, %v4350_v57, %v1108_v46  ;;  %v1112_v7 = vsel %vm5197_vm7, %v1110_v58, %v1111_v20 }
  0x86   : > { %4541 = vmatmul.msk.bf16.gmra.mxu0 %vm658_vm4, %v2159_v9  ;;  %v1850_v9 = vshrl.u32 %v4504_v59, 16  ;;  %v1195_v13 = vunpack.c.l.b16 %v1109_v6  ;;  %v1196_v14 = vunpack.c.l.b16 %v1112_v7 }
  0x87   : > { %4331 = vmatmul.msk.bf16.gmra.mxu1 %vm658_vm4, %v4837_v0  ;;  %v2132_v0 = vunpack.c.l.b16 %v1825_v60  ;;  %v1863_v60 = vrot.slane %v1861_v51, 4 }
  0x88   : > { %v1852_v19 = vrot.slane %v1850_v9, 4  ;;  %v1222_v23 = vpack.c.b16 %v1196_v14, %v1195_v13  ;;  %v1122_v14 = vrot.slane %v5141_v21, 5  ;;  %v1125_v21 = vrot.slane %v5146_v27, 5 }
  0x89   : > { %v2161_v26 = vpack.c.b16 %v2133_v11, %v2132_v0  ;;  %v4840_v0 = vld [vmem:[%s5011_s27 + $0x3c] sm:$0xff] }
  0x8a   : > { %v1853_v30 = vor.u32 %v1852_v19, %v1848_v28 }
  0x8c   : > { %4364 = vmatmul.msk.bf16.gmra.mxu2 %vm658_vm4, %v1219_v22  ;;  %v4505_v22 = vld [vmem:[%s5011_s27 + $0x44] sm:$0x1]  ;;  %v1854_v38 = vrot.slane %v1853_v30, 4  ;;  %v1894_v30 = vshll.u32 %v4510_v16, 16 }
  0x8d   : > { %v1856_v31 = vshll.u32 %v4505_v22, 16  ;;  %v1882_v22 = vrot.slane %v1880_v12, 5 }
  0x8f   : > { %v1858_v1 = vrot.slane %v1856_v31, 5  ;;  %v1115_v31 = vrot.slane %v5095_v47, 5  ;;  %v4351_v47 = vrot.slane %v1026_v35, 9  ;;  %v1124_v35 = vrot.slane %v1122_v14, 4 }
  0x91   : > { %4477 = vmatmul.msk.bf16.gmra.mxu3 %vm658_vm4, %v4853_v42  ;;  %v1844_v42 = vrot.slane %v1843_v29, 4  ;;  %v1859_v48 = vsel %vm5023_vm3, %v1854_v38, %v1858_v1  ;;  %v1888_v29 = vshll.u32 %v4509_v15, 16  ;;  %v1116_v58 = vsel %vm5197_vm7, %v4351_v47, %v1115_v31 }
  0x92   : > { %v2135_v59 = vunpack.c.l.b16 %v1859_v48  ;;  %v1118_v48 = vrot.slane %v5100_v56, 5 }
  0x93   : > { %v1849_v49 = vsel %vm5023_vm3, %v1844_v42, %v1848_v28 }
  0x94   : > { %v2134_v43 = vunpack.c.l.b16 %v1849_v49  ;;  %v1117_v49 = vrot.slane %v1115_v31, 4 }
  0x96   : > { %4542 = vmatmul.msk.bf16.gmra.mxu0 %vm658_vm4, %v2160_v52  ;;  %v1864_v52 = vshll.u32 %v4506_v41, 16  ;;  %v2162_v25 = vpack.c.b16 %v2135_v59, %v2134_v43  ;;  %v1896_v41 = vrot.slane %v1894_v30, 5  ;;  %v1119_v20 = vsel %vm5197_vm7, %v1117_v49, %v1118_v48  ;;  %v4857_v30 = vld [vmem:[%s5011_s27 + $0x54] sm:$0xff] }
  0x97   : > { %4332 = vmatmul.msk.bf16.gmra.mxu1 %vm658_vm4, %v4838_v53  ;;  %v1870_v53 = vshll.u32 %v4507_v44, 16  ;;  %v4856_v44 = vld [vmem:[%s5011_s27 + $0x48] sm:$0xff]  ;;  %v1126_v48 = vsel %vm5197_vm7, %v1124_v35, %v1125_v21 }
  0x98   : > { %v1866_v61 = vrot.slane %v1864_v52, 5 }
  0x99   : > { %v1872_v62 = vrot.slane %v1870_v53, 5  ;;  %v4511_v53 = vld [vmem:[%s5011_s27 + $0x5c] sm:$0x1] }
  0x9a   : > { %v1904_v43 = vshll.u32 %v4511_v53, 16  ;;  %v4842_v53 = vld [vmem:[%s5011_s27 + $0x54] sm:$0xff] }
  0x9b   : > { %v1877_v11 = vor.u32 %v1876_v3, %v1872_v62 }
  0x9c   : > { %v5295_v4 = vpop.f32.mrf.mxu1  ;;  %4365 = vmatmul.msk.bf16.gmra.mxu2 %vm658_vm4, %v1220_v63  ;;  %v1906_v7 = vrot.slane %v1904_v43, 5 }
  0x9d   : > { %v1878_v19 = vrot.slane %v1877_v11, 4 }
  0x9f   : > { %v1883_v42 = vsel %vm5023_vm3, %v1878_v19, %v1882_v22 }
  0xa0   : > { %v2137_v52 = vunpack.c.l.b16 %v1883_v42 }
  0xa1   : > { %4478 = vmatmul.msk.bf16.gmra.mxu3 %vm658_vm4, %v4854_v10  ;;  %v1867_v10 = vor.u32 %v1866_v61, %v1863_v60  ;;  %v4841_v60 = vld [vmem:[%s5011_s27 + $0x48] sm:$0xff]  ;;  %v1197_v61 = vunpack.c.l.b16 %v1116_v58 }
  0xa3   : > { %v1868_v28 = vrot.slane %v1867_v10, 4  ;;  %v4513_v10 = vld [vmem:[%s5011_s27 + $0x64] sm:$0xf] }
  0xa4   : > { %v5308_v34 = vpop.f32.mrf.mxu1  ;;  %v1918_v22 = vshll.u32 %v4513_v10, 16 }
  0xa5   : > { %v1873_v32 = vsel %vm5023_vm3, %v1868_v28, %v1872_v62  ;;  %v1198_v62 = vunpack.c.l.b16 %v1119_v20  ;;  %v1200_v20 = vunpack.c.l.b16 %v1126_v48 }
  0xa6   : > { %v5310_v37 = vpop.f32.mrf.mxu2  ;;  %4543 = vmatmul.msk.bf16.gmra.mxu0 %vm658_vm4, %v2161_v26  ;;  %v1885_v26 = vshrl.u32 %v4509_v15, 16  ;;  %v2136_v51 = vunpack.c.l.b16 %v1873_v32 }
  0xa7   : > { %4333 = vmatmul.msk.bf16.gmra.mxu1 %vm658_vm4, %v4839_v33  ;;  %v1898_v33 = vshrl.u32 %v4510_v16, 16  ;;  %v1223_v11 = vpack.c.b16 %v1198_v62, %v1197_v61  ;;  %v1027_v16 = vld [vmem:[%s5011_s27 + $0x54] sm:$0xe]  ;;  %v4515_v62 = vld [vmem:[%s5011_s27 + $0x6c] sm:$0xf] }
  0xa8   : > { %v1887_v1 = vrot.slane %v1885_v26, 4  ;;  %v2163_v59 = vpack.c.b16 %v2137_v52, %v2136_v51 }
  0xa9   : > { %v5314_v39 = vpop.f32.mrf.mxu0  ;;  %v1900_v50 = vrot.slane %v1898_v33, 4  ;;  %v4352_v33 = vrot.slane %v1027_v16, 9  ;;  %v1936_v16 = vshll.u32 %v4515_v62, 16 }
  0xaa   : > { %v5318_v45 = vpop.f32.mrf.mxu3 }
  0xab   : > { %v1901_v56 = vor.u32 %v1900_v50, %v1896_v41  ;;  %v1123_v49 = vsel %vm5197_vm7, %v4352_v33, %v1122_v14  ;;  %v1933_v14 = vshrl.u32 %v4515_v62, 16 }
  0xac   : > { %4366 = vmatmul.msk.bf16.gmra.mxu2 %vm658_vm4, %v1221_v40  ;;  %v1890_v40 = vrot.slane %v1888_v29, 5  ;;  %v1199_v58 = vunpack.c.l.b16 %v1123_v49  ;;  %v4517_v49 = vld [vmem:[%s5011_s27 + $0x74] sm:$0x1] }
  0xad   : > { %v1902_v6 = vrot.slane %v1901_v56, 4 }
  0xae   : > { %v5328_v2 = vpop.f32.mrf.mxu1  ;;  %v5331_v63 = vpop.f32.mrf.mxu2  ;;  %v1224_v61 = vpack.c.b16 %v1200_v20, %v1199_v58  ;;  %v1952_v20 = vshll.u32 %v4517_v49, 16  ;;  %v4859_v49 = vld [vmem:[%s5011_s27 + $0x6c] sm:$0xff] }
  0xaf   : > { %v1907_v13 = vsel %vm5023_vm3, %v1902_v6, %v1906_v7  ;;  %v4899_v7 = vld [vmem:[%s5011_s27 + $0x64] sm:$0xf] }
  0xb0   : > { %v2139_v31 = vunpack.c.l.b16 %v1907_v13  ;;  %v1028_v13 = vld [vmem:[%s5011_s27 + $0x60] sm:$0xe] }
  0xb1   : > { %4479 = vmatmul.msk.bf16.gmra.mxu3 %vm658_vm4, %v4855_v55  ;;  %v5339_v8 = vpop.f32.mrf.mxu0  ;;  %v1891_v55 = vor.u32 %v1890_v40, %v1887_v1  ;;  %v1920_v1 = vrot.slane %v1918_v22, 5 }
  0xb2   : > { %v5341_v9 = vpop.f32.mrf.mxu3 }
  0xb3   : > { %v1892_v5 = vrot.slane %v1891_v55, 4 }
  0xb5   : > { %v1897_v12 = vsel %vm5023_vm3, %v1892_v5, %v1896_v41  ;;  %v4516_v5 = vld [vmem:[%s5011_s27 + $0x70] sm:$0xf] }
  0xb6   : > { %4544 = vmatmul.msk.bf16.gmra.mxu0 %vm658_vm4, %v2162_v25  ;;  %v5347_v17 = vpop.f32.mrf.mxu1  ;;  %v2138_v29 = vunpack.c.l.b16 %v1897_v12 }
  0xb7   : > { %4334 = vmatmul.msk.bf16.gmra.mxu1 %vm658_vm4, %v4840_v0  ;;  %v4512_v0 = vld [vmem:[%s5011_s27 + $0x60] sm:$0xf] }
  0xb8   : > { %v1909_v28 = vshrl.u32 %v4512_v0, 16  ;;  %v1912_v19 = vshll.u32 %v4512_v0, 16  ;;  %v2164_v50 = vpack.c.b16 %v2139_v31, %v2138_v29  ;;  %v1129_v0 = vrot.slane %v4899_v7, 5 }
  0xb9   : > { %v5350_v24 = vpop.f32.mrf.mxu2  ;;  %v4353_v31 = vrot.slane %v1028_v13, 9 }
  0xba   : > { %v1911_v32 = vrot.slane %v1909_v28, 4  ;;  %v1914_v42 = vrot.slane %v1912_v19, 5  ;;  %v1942_v28 = vshll.u32 %v4516_v5, 16  ;;  %v1946_v19 = vshrl.u32 %v4516_v5, 16 }
  0xbb   : > { %v1131_v33 = vrot.slane %v1129_v0, 4  ;;  %v1130_v48 = vsel %vm5197_vm7, %v4353_v31, %v1129_v0 }
  0xbc   : > { %4367 = vmatmul.msk.bf16.gmra.mxu2 %vm658_vm4, %v1222_v23  ;;  %v1922_v23 = vshrl.u32 %v4513_v10, 16  ;;  %v1915_v27 = vor.u32 %v1914_v42, %v1911_v32  ;;  %v1935_v42 = vrot.slane %v1933_v14, 4  ;;  %v4519_v14 = vld [vmem:[%s5011_s27 + $0x7c] sm:$0xf] }
  0xbd   : > { %v5358_v38 = vpop.f32.mrf.mxu0 }
  0xbe   : > { %v5362_v46 = vpop.f32.mrf.mxu3  ;;  %v1924_v40 = vrot.slane %v1922_v23, 4  ;;  %v1916_v43 = vrot.slane %v1915_v27, 4  ;;  %v4900_v23 = vld [vmem:[%s5011_s27 + $0x68] sm:$0x1] }
  0xbf   : > { %v1132_v29 = vrot.slane %v4900_v23, 5 }
  0xc0   : > { %v5366_v54 = vpop.f32.mrf.mxu1  ;;  %v1925_v51 = vor.u32 %v1924_v40, %v1920_v1  ;;  %v1944_v40 = vrot.slane %v1942_v28, 5 }
  0xc1   : > { %4480 = vmatmul.msk.bf16.gmra.mxu3 %vm658_vm4, %v4856_v44  ;;  %v5369_v57 = vpop.f32.mrf.mxu2  ;;  %v4514_v44 = vld [vmem:[%s5011_s27 + $0x68] sm:$0x1] }
  0xc2   : > { %v1928_v52 = vshll.u32 %v4514_v44, 16  ;;  %v1948_v44 = vrot.slane %v1946_v19, 4  ;;  %v1029_v19 = vld [vmem:[%s5011_s27 + $0x6c] sm:$0xe] }
  0xc4   : > { %v1949_v58 = vor.u32 %v1948_v44, %v1944_v40 }
  0xc5   : > { %v5376_v3 = vpop.f32.mrf.mxu0 }
  0xc6   : > { %4545 = vmatmul.msk.bf16.gmra.mxu0 %vm658_vm4, %v2163_v59  ;;  %v5379_v25 = vpop.f32.mrf.mxu3  ;;  %v1926_v59 = vrot.slane %v1925_v51, 4  ;;  %v1950_v0 = vrot.slane %v1949_v58, 4 }
  0xc7   : > { %4335 = vmatmul.msk.bf16.gmra.mxu1 %vm658_vm4, %v4841_v60  ;;  %v1930_v60 = vrot.slane %v1928_v52, 5  ;;  %v4843_v52 = vld [vmem:[%s5011_s27 + $0x60] sm:$0xff] }
  0xc8   : > { %v5389_v15 = vpop.f32.mrf.mxu1 }
  0xc9   : > { %v1931_v12 = vsel %vm5023_vm3, %v1926_v59, %v1930_v60  ;;  %v1201_v60 = vunpack.c.l.b16 %v1130_v48 }
  0xca   : > { %v2141_v21 = vunpack.c.l.b16 %v1931_v12  ;;  %v4518_v12 = vld [vmem:[%s5011_s27 + $0x78] sm:$0xf] }
  0xcb   : > { %v1957_v23 = vshrl.u32 %v4518_v12, 16 }
  0xcc   : > { %v5392_v26 = vpop.f32.mrf.mxu2  ;;  %4368 = vmatmul.msk.bf16.gmra.mxu2 %vm658_vm4, %v1223_v11  ;;  %v1921_v11 = vsel %vm5023_vm3, %v1916_v43, %v1920_v1  ;;  %v1938_v1 = vrot.slane %v1936_v16, 5  ;;  %v4901_v16 = vld [vmem:[%s5011_s27 + $0x70] sm:$0xf] }
  0xcd   : > { %v2140_v35 = vunpack.c.l.b16 %v1921_v11  ;;  %v1954_v11 = vrot.slane %v1952_v20, 5  ;;  %v1136_v28 = vrot.slane %v4901_v16, 5 }
  0xcf   : > { %v5397_v41 = vpop.f32.mrf.mxu0  ;;  %v2165_v27 = vpack.c.b16 %v2141_v21, %v2140_v35  ;;  %v1955_v31 = vsel %vm5023_vm3, %v1950_v0, %v1954_v11  ;;  %v1970_v35 = vshrl.u32 %v4519_v14, 16 }
  0xd0   : > { %v5400_v47 = vpop.f32.mrf.mxu3 }
  0xd1   : > { %4481 = vmatmul.msk.bf16.gmra.mxu3 %vm658_vm4, %v4857_v30  ;;  %v4858_v30 = vld [vmem:[%s5011_s27 + $0x60] sm:$0xff] }
  0xd4   : > { %v5408_v55 = vpop.f32.mrf.mxu1  ;;  %v5410_v56 = vpop.f32.mrf.mxu2 }
  0xd6   : > { %4546 = vmatmul.msk.bf16.gmra.mxu0 %vm658_vm4, %v2164_v50  ;;  %v1133_v50 = vsel %vm5197_vm7, %v1131_v33, %v1132_v29  ;;  %v1960_v29 = vshll.u32 %v4518_v12, 16  ;;  %v1966_v33 = vshll.u32 %v4519_v14, 16  ;;  %v4844_v14 = vld [vmem:[%s5011_s27 + $0x6c] sm:$0xff] }
  0xd7   : > { %4336 = vmatmul.msk.bf16.gmra.mxu1 %vm658_vm4, %v4842_v53  ;;  %v5416_v6 = vpop.f32.mrf.mxu0  ;;  %v1939_v53 = vor.u32 %v1938_v1, %v1935_v42  ;;  %v4902_v1 = vld [vmem:[%s5011_s27 + $0x74] sm:$0x1] }
  0xd8   : > { %v5419_v10 = vpop.f32.mrf.mxu3  ;;  %v1139_v44 = vrot.slane %v4902_v1, 5  ;;  %v1962_v58 = vrot.slane %v1960_v29, 5 }
  0xd9   : > { %v1940_v7 = vrot.slane %v1939_v53, 4  ;;  %v1959_v53 = vrot.slane %v1957_v23, 4 }
  0xdb   : > { %v1963_v12 = vor.u32 %v1962_v58, %v1959_v53  ;;  %v1030_v58 = vld [vmem:[%s5011_s27 + $0x78] sm:$0xe] }
  0xdc   : > { %4369 = vmatmul.msk.bf16.gmra.mxu2 %vm658_vm4, %v1224_v61  ;;  %v5427_v22 = vpop.f32.mrf.mxu1  ;;  %v1202_v61 = vunpack.c.l.b16 %v1133_v50  ;;  %v4354_v50 = vrot.slane %v1029_v19, 9 }
  0xde   : > { %v1225_v13 = vpack.c.b16 %v1202_v61, %v1201_v60  ;;  %v1972_v60 = vrot.slane %v1970_v35, 4  ;;  %v1137_v0 = vsel %vm5197_vm7, %v4354_v50, %v1136_v28 }
  0xdf   : > { %v5431_v32 = vpop.f32.mrf.mxu2 }
  0xe1   : > { %4482 = vmatmul.msk.bf16.gmra.mxu3 %vm658_vm4, %v4858_v30  ;;  %v1945_v30 = vsel %vm5023_vm3, %v1940_v7, %v1944_v40  ;;  %v4520_v7 = vld [vmem:[%s5011_s27 + $0x80] sm:$0x1] }
  0xe2   : > { %v2142_v40 = vunpack.c.l.b16 %v1945_v30  ;;  %v1976_v19 = vshll.u32 %v4520_v7, 16 }
  0xe3   : > { %v5439_v51 = vpop.f32.mrf.mxu0 }
  0xe4   : > { %v5442_v43 = vpop.f32.mrf.mxu3  ;;  %v940_v59 = vpop.f32.mrf.mxu1  ;;  %v1978_v1 = vrot.slane %v1976_v19, 5  ;;  %v4355_v19 = vrot.slane %v1030_v58, 9 }
  0xe5   : > { %v941_v62 = vadd.f32 %v940_v59, %v5314_v39  ;;  %v1968_v59 = vrot.slane %v1966_v33, 5  ;;  %v1964_v33 = vrot.slane %v1963_v12, 4 }
  0xe6   : > { %4547 = vmatmul.msk.bf16.gmra.mxu0 %vm658_vm4, %v2165_v27  ;;  %v1138_v27 = vrot.slane %v1136_v28, 4 }
  0xe7   : > { %v5446_v5 = vpop.f32.mrf.mxu2  ;;  %4337 = vmatmul.msk.bf16.gmra.mxu1 %vm658_vm4, %v4843_v52  ;;  %v2143_v52 = vunpack.c.l.b16 %v1955_v31  ;;  %v1973_v16 = vor.u32 %v1972_v60, %v1968_v59 }
  0xe9   : > { %v2166_v11 = vpack.c.b16 %v2143_v52, %v2142_v40  ;;  %v4522_v40 = vld [vmem:[%s5011_s27 + $0x88] sm:$0xf]  ;;  %v4903_v52 = vld [vmem:[%s5011_s27 + $0x7c] sm:$0xf] }
  0xea   : > { %v1143_v53 = vrot.slane %v4903_v52, 5 }
  0xeb   : > { %v5453_v39 = vpop.f32.mrf.mxu0 }
  0xec   : > { %v5459_v21 = vpop.f32.mrf.mxu3  ;;  %4370 = vmatmul.msk.bf16.gmra.mxu2 %vm658_vm4, %v1225_v13  ;;  %v942_v42 = vpop.f32.mrf.mxu1 }
  0xed   : > { %v943_v48 = vadd.f32 %v942_v42, %v5339_v8  ;;  %v1140_v8 = vsel %vm5197_vm7, %v1138_v27, %v1139_v44  ;;  %v1974_v42 = vrot.slane %v1973_v16, 4  ;;  %v4521_v44 = vld [vmem:[%s5011_s27 + $0x84] sm:$0xf]  ;;  %v4860_v16 = vld [vmem:[%s5011_s27 + $0x78] sm:$0xff] }
  0xee   : > { %v1204_v30 = vunpack.c.l.b16 %v1140_v8  ;;  %v1984_v7 = vshll.u32 %v4521_v44, 16  ;;  %v1994_v8 = vshrl.u32 %v4522_v40, 16 }
  0xef   : > { %v1293_v20 = vpop.f32.mrf.mxu2 }
  0xf0   : > { %v1373_v61 = vadd.f32 %v1293_v20, %v941_v62  ;;  %v1203_v62 = vunpack.c.l.b16 %v1137_v0  ;;  %v1981_v20 = vshrl.u32 %v4521_v44, 16  ;;  %v1990_v0 = vshll.u32 %v4522_v40, 16 }
  0xf1   : > { %4483 = vmatmul.msk.bf16.gmra.mxu3 %vm658_vm4, %v4859_v49 }
  0xf2   : > { %v1226_v27 = vpack.c.b16 %v1204_v30, %v1203_v62  ;;  %v1983_v30 = vrot.slane %v1981_v20, 4 }
  0xf3   : > { %v2234_v13 = vpop.f32.mrf.mxu0 }
  0xf4   : > { %v1580_v23 = vpop.f32.mrf.mxu3  ;;  %v945_v29 = vpop.f32.mrf.mxu1 }
  0xf5   : > { %v1660_v31 = vadd.f32 %v1580_v23, %v1373_v61  ;;  %v946_v28 = vadd.f32 %v945_v29, %v5358_v38  ;;  %v1969_v38 = vsel %vm5023_vm3, %v1964_v33, %v1968_v59  ;;  %v1979_v61 = vsel %vm5023_vm3, %v1974_v42, %v1978_v1 }
  0xf6   : > { %4548 = vmatmul.msk.bf16.gmra.mxu0 %vm658_vm4, %v2166_v11  ;;  %v4904_v11 = vld [vmem:[%s5011_s27 + $0x80] sm:$0x1]  ;;  %v1145_v23 = vrot.slane %v1143_v53, 4  ;;  %v2144_v29 = vunpack.c.l.b16 %v1969_v38  ;;  %v2145_v62 = vunpack.c.l.b16 %v1979_v61  ;;  %v1986_v33 = vrot.slane %v1984_v7, 5  ;;  %v4845_v38 = vld [vmem:[%s5011_s27 + $0x78] sm:$0xff] }
  0xf7   : > { %v1295_v35 = vpop.f32.mrf.mxu2  ;;  %4338 = vmatmul.msk.bf16.gmra.mxu1 %vm658_vm4, %v4844_v14  ;;  %v5476_v49 = vadd.f32 %v2234_v13, %v1660_v31  ;;  %v1146_v12 = vrot.slane %v4904_v11, 5  ;;  %v1996_v42 = vrot.slane %v1994_v8, 4 }
  0xf8   : > { %v1374_v50 = vadd.f32 %v1295_v35, %v943_v48  ;;  %v1992_v35 = vrot.slane %v1990_v0, 5  ;;  %v2167_v40 = vpack.c.b16 %v2145_v62, %v2144_v29  ;;  %v1987_v58 = vor.u32 %v1986_v33, %v1983_v30  ;;  %v4525_v29 = vld [vmem:[%s5011_s27 + $0x94] sm:$0xf]  ;;  %v4905_v62 = vld [vmem:[%s5011_s27 + $0x88] sm:$0xf] }
  0xf9   : > { %v1150_v30 = vrot.slane %v4905_v62, 5 }
  0xfa   : > { %v1997_v20 = vor.u32 %v1996_v42, %v1992_v35 }
  0xfb   : > { %v2236_v60 = vpop.f32.mrf.mxu0 }
  0xfc   : > { %v1582_v48 = vpop.f32.mrf.mxu3  ;;  %4371 = vmatmul.msk.bf16.gmra.mxu2 %vm658_vm4, %v1226_v27  ;;  %v947_v13 = vpop.f32.mrf.mxu1  ;;  %v4523_v27 = vld [vmem:[%s5011_s27 + $0x8c] sm:$0x1] }
  0xfd   : > { %v1661_v14 = vadd.f32 %v1582_v48, %v1374_v50  ;;  %v948_v59 = vadd.f32 %v947_v13, %v5376_v3  ;;  %v1144_v50 = vsel %vm5197_vm7, %v4355_v19, %v1143_v53  ;;  %v1147_v3 = vsel %vm5197_vm7, %v1145_v23, %v1146_v12 }
  0xfe   : > { %v2000_v61 = vshll.u32 %v4523_v27, 16  ;;  %v1206_v0 = vunpack.c.l.b16 %v1147_v3  ;;  %v1988_v12 = vrot.slane %v1987_v58, 4  ;;  %v1998_v48 = vrot.slane %v1997_v20, 4  ;;  %v4861_v20 = vld [vmem:[%s5011_s27 + $0x84] sm:$0xff] }
  0xff   : > { %v1298_v31 = vpop.f32.mrf.mxu2  ;;  %v5489_v1 = vadd.f32 %v2236_v60, %v1661_v14  ;;  %v4524_v14 = vld [vmem:[%s5011_s27 + $0x90] sm:$0xf]  ;;  %v2018_v3 = vshrl.u32 %v4525_v29, 16 }
 0x100   : > { %v1375_v44 = vadd.f32 %v1298_v31, %v946_v28  ;;  %v1205_v28 = vunpack.c.l.b16 %v1144_v50  ;;  %v2002_v13 = vrot.slane %v2000_v61, 5  ;;  %v1031_v31 = vld [vmem:[%s5011_s27 + $0x84] sm:$0xe]  ;;  %v2008_v33 = vshll.u32 %v4524_v14, 16 }
 0x101   : > { %4484 = vmatmul.msk.bf16.gmra.mxu3 %vm658_vm4, %v4860_v16  ;;  %v2014_v50 = vshll.u32 %v4525_v29, 16 }
 0x102   : > { %v1227_v23 = vpack.c.b16 %v1206_v0, %v1205_v28  ;;  %v2003_v27 = vsel %vm5023_vm3, %v1998_v48, %v2002_v13  ;;  %v2020_v48 = vrot.slane %v2018_v3, 4 }
 0x103   : > { %v2239_v52 = vpop.f32.mrf.mxu0 }
 0x104   : > { %v1585_v7 = vpop.f32.mrf.mxu3  ;;  %v950_v60 = vpop.f32.mrf.mxu1 }
 0x105   : > { %v1662_v8 = vadd.f32 %v1585_v7, %v1375_v44  ;;  %v951_v53 = vadd.f32 %v950_v60, %v5397_v41  ;;  %v2005_v41 = vshrl.u32 %v4524_v14, 16  ;;  %v1993_v44 = vsel %vm5023_vm3, %v1988_v12, %v1992_v35 }
 0x106   : > { %4549 = vmatmul.msk.bf16.gmra.mxu0 %vm658_vm4, %v2167_v40  ;;  %v4906_v40 = vld [vmem:[%s5011_s27 + $0x8c] sm:$0x1]  ;;  %v4356_v7 = vrot.slane %v1031_v31, 9  ;;  %v1152_v60 = vrot.slane %v1150_v30, 4  ;;  %v2146_v28 = vunpack.c.l.b16 %v1993_v44  ;;  %v2147_v35 = vunpack.c.l.b16 %v2003_v27 }
 0x107   : > { %v1300_v11 = vpop.f32.mrf.mxu2  ;;  %4339 = vmatmul.msk.bf16.gmra.mxu1 %vm658_vm4, %v4845_v38  ;;  %v5502_v16 = vadd.f32 %v2239_v52, %v1662_v8  ;;  %v1153_v52 = vrot.slane %v4906_v40, 5  ;;  %v2007_v0 = vrot.slane %v2005_v41, 4  ;;  %v2010_v8 = vrot.slane %v2008_v33, 5  ;;  %v4846_v41 = vld [vmem:[%s5011_s27 + $0x84] sm:$0xff] }
 0x108   : > { %v1376_v19 = vadd.f32 %v1300_v11, %v948_v59  ;;  %v2016_v12 = vrot.slane %v2014_v50, 5  ;;  %v2168_v29 = vpack.c.b16 %v2147_v35, %v2146_v28  ;;  %v4528_v28 = vld [vmem:[%s5011_s27 + $0xa0] sm:$0xf]  ;;  %v4907_v35 = vld [vmem:[%s5011_s27 + $0x94] sm:$0xf] }
 0x109   : > { %v2011_v62 = vor.u32 %v2010_v8, %v2007_v0  ;;  %v1157_v0 = vrot.slane %v4907_v35, 5  ;;  %v1032_v8 = vld [vmem:[%s5011_s27 + $0x90] sm:$0xe] }
 0x10a   : > { %v2021_v33 = vor.u32 %v2020_v48, %v2016_v12 }
 0x10b   : > { %v2241_v42 = vpop.f32.mrf.mxu0  ;;  %v2012_v40 = vrot.slane %v2011_v62, 4 }
 0x10c   : > { %v1587_v59 = vpop.f32.mrf.mxu3  ;;  %4372 = vmatmul.msk.bf16.gmra.mxu2 %vm658_vm4, %v1227_v23  ;;  %v952_v38 = vpop.f32.mrf.mxu1  ;;  %v4526_v23 = vld [vmem:[%s5011_s27 + $0x98] sm:$0x1] }
 0x10d   : > { %v1663_v58 = vadd.f32 %v1587_v59, %v1376_v19  ;;  %v953_v61 = vadd.f32 %v952_v38, %v5416_v6  ;;  %v1151_v19 = vsel %vm5197_vm7, %v4356_v7, %v1150_v30  ;;  %v1154_v6 = vsel %vm5197_vm7, %v1152_v60, %v1153_v52 }
 0x10e   : > { %v2024_v44 = vshll.u32 %v4526_v23, 16  ;;  %v1208_v50 = vunpack.c.l.b16 %v1154_v6  ;;  %v2022_v59 = vrot.slane %v2021_v33, 4  ;;  %v2042_v6 = vshrl.u32 %v4528_v28, 16  ;;  %v4862_v33 = vld [vmem:[%s5011_s27 + $0x90] sm:$0xff] }
 0x10f   : > { %v1303_v11 = vpop.f32.mrf.mxu2  ;;  %v5515_v13 = vadd.f32 %v2241_v42, %v1663_v58  ;;  %v4527_v58 = vld [vmem:[%s5011_s27 + $0x9c] sm:$0xf] }
 0x110   : > { %v1377_v14 = vadd.f32 %v1303_v11, %v951_v53  ;;  %v1207_v53 = vunpack.c.l.b16 %v1151_v19  ;;  %v2026_v38 = vrot.slane %v2024_v44, 5  ;;  %v2029_v11 = vshrl.u32 %v4527_v58, 16 }
 0x111   : > { %4485 = vmatmul.msk.bf16.gmra.mxu3 %vm658_vm4, %v4861_v20  ;;  %v2032_v23 = vshll.u32 %v4527_v58, 16  ;;  %v2038_v19 = vshll.u32 %v4528_v28, 16  ;;  %v4357_v44 = vrot.slane %v1032_v8, 9 }
 0x112   : > { %v1228_v60 = vpack.c.b16 %v1208_v50, %v1207_v53  ;;  %v2031_v50 = vrot.slane %v2029_v11, 4 }
 0x113   : > { %v2244_v31 = vpop.f32.mrf.mxu0 }
 0x114   : > { %v1590_v27 = vpop.f32.mrf.mxu3  ;;  %v955_v42 = vpop.f32.mrf.mxu1 }
 0x115   : > { %v1664_v3 = vadd.f32 %v1590_v27, %v1377_v14  ;;  %v956_v30 = vadd.f32 %v955_v42, %v5439_v51  ;;  %v2017_v51 = vsel %vm5023_vm3, %v2012_v40, %v2016_v12  ;;  %v2027_v14 = vsel %vm5023_vm3, %v2022_v59, %v2026_v38 }
 0x116   : > { %4550 = vmatmul.msk.bf16.gmra.mxu0 %vm658_vm4, %v2168_v29  ;;  %v4908_v29 = vld [vmem:[%s5011_s27 + $0x98] sm:$0x1]  ;;  %v1159_v27 = vrot.slane %v1157_v0, 4  ;;  %v2148_v42 = vunpack.c.l.b16 %v2017_v51  ;;  %v2149_v53 = vunpack.c.l.b16 %v2027_v14  ;;  %v2034_v40 = vrot.slane %v2032_v23, 5  ;;  %v4847_v51 = vld [vmem:[%s5011_s27 + $0x90] sm:$0xff] }
 0x117   : > { %v1305_v52 = vpop.f32.mrf.mxu2  ;;  %4340 = vmatmul.msk.bf16.gmra.mxu1 %vm658_vm4, %v4846_v41  ;;  %v5528_v20 = vadd.f32 %v2244_v31, %v1664_v3  ;;  %v1160_v62 = vrot.slane %v4908_v29, 5  ;;  %v2044_v59 = vrot.slane %v2042_v6, 4  ;;  %v4530_v29 = vld [vmem:[%s5011_s27 + $0xa8] sm:$0xf] }
 0x118   : > { %v1378_v7 = vadd.f32 %v1305_v52, %v953_v61  ;;  %v2040_v52 = vrot.slane %v2038_v19, 5  ;;  %v2169_v28 = vpack.c.b16 %v2149_v53, %v2148_v42  ;;  %v2035_v8 = vor.u32 %v2034_v40, %v2031_v50  ;;  %v4909_v53 = vld [vmem:[%s5011_s27 + $0xa0] sm:$0xf]  ;;  %v1033_v40 = vld [vmem:[%s5011_s27 + $0x9c] sm:$0xe] }
 0x119   : > { %v2053_v42 = vshrl.u32 %v4530_v29, 16  ;;  %v1164_v50 = vrot.slane %v4909_v53, 5 }
 0x11a   : > { %v2045_v11 = vor.u32 %v2044_v59, %v2040_v52 }
 0x11b   : > { %v2246_v48 = vpop.f32.mrf.mxu0 }
 0x11c   : > { %v1592_v61 = vpop.f32.mrf.mxu3  ;;  %4373 = vmatmul.msk.bf16.gmra.mxu2 %vm658_vm4, %v1228_v60  ;;  %v957_v31 = vpop.f32.mrf.mxu1  ;;  %v4529_v60 = vld [vmem:[%s5011_s27 + $0xa4] sm:$0x1] }
 0x11d   : > { %v1665_v41 = vadd.f32 %v1592_v61, %v1378_v7  ;;  %v958_v12 = vadd.f32 %v957_v31, %v5453_v39  ;;  %v1158_v39 = vsel %vm5197_vm7, %v4357_v44, %v1157_v0  ;;  %v1161_v7 = vsel %vm5197_vm7, %v1159_v27, %v1160_v62  ;;  %v4531_v27 = vld [vmem:[%s5011_s27 + $0xac] sm:$0xf] }
 0x11e   : > { %v2048_v14 = vshll.u32 %v4529_v60, 16  ;;  %v1210_v19 = vunpack.c.l.b16 %v1161_v7  ;;  %v2036_v62 = vrot.slane %v2035_v8, 4  ;;  %v2046_v61 = vrot.slane %v2045_v11, 4 }
 0x11f   : > { %v1308_v3 = vpop.f32.mrf.mxu2  ;;  %v5541_v38 = vadd.f32 %v2246_v48, %v1665_v41  ;;  %v2066_v7 = vshrl.u32 %v4531_v27, 16  ;;  %v2055_v8 = vrot.slane %v2053_v42, 4 }
 0x120   : > { %v1379_v58 = vadd.f32 %v1308_v3, %v956_v30  ;;  %v1209_v30 = vunpack.c.l.b16 %v1158_v39  ;;  %v2050_v31 = vrot.slane %v2048_v14, 5  ;;  %v2056_v3 = vshll.u32 %v4530_v29, 16  ;;  %v4863_v14 = vld [vmem:[%s5011_s27 + $0x9c] sm:$0xff] }
 0x121   : > { %4486 = vmatmul.msk.bf16.gmra.mxu3 %vm658_vm4, %v4862_v33  ;;  %v2062_v39 = vshll.u32 %v4531_v27, 16 }
 0x122   : > { %v1229_v44 = vpack.c.b16 %v1210_v19, %v1209_v30  ;;  %v2051_v60 = vsel %vm5023_vm3, %v2046_v61, %v2050_v31  ;;  %v1166_v30 = vrot.slane %v1164_v50, 4  ;;  %v2058_v19 = vrot.slane %v2056_v3, 5  ;;  %v4848_v3 = vld [vmem:[%s5011_s27 + $0x9c] sm:$0xff] }
 0x123   : > { %v2249_v35 = vpop.f32.mrf.mxu0  ;;  %v2151_v29 = vunpack.c.l.b16 %v2051_v60  ;;  %v2068_v61 = vrot.slane %v2066_v7, 4 }
 0x124   : > { %v1595_v48 = vpop.f32.mrf.mxu3  ;;  %v960_v23 = vpop.f32.mrf.mxu1  ;;  %v2059_v53 = vor.u32 %v2058_v19, %v2055_v8 }
 0x125   : > { %v1666_v6 = vadd.f32 %v1595_v48, %v1379_v58  ;;  %v2041_v58 = vsel %vm5023_vm3, %v2036_v62, %v2040_v52  ;;  %v4358_v48 = vrot.slane %v1033_v40, 9  ;;  %v961_v52 = vadd.f32 %v960_v23, %v5295_v4 }
 0x126   : > { %4551 = vmatmul.msk.bf16.gmra.mxu0 %vm658_vm4, %v2169_v28  ;;  %v4910_v28 = vld [vmem:[%s5011_s27 + $0xa4] sm:$0x1]  ;;  %v2064_v62 = vrot.slane %v2062_v39, 5 }
 0x127   : > { %v1310_v0 = vpop.f32.mrf.mxu2  ;;  %4341 = vmatmul.msk.bf16.gmra.mxu1 %vm658_vm4, %v4847_v51  ;;  %v5553_v41 = vadd.f32 %v2249_v35, %v1666_v6  ;;  %v1167_v35 = vrot.slane %v4910_v28, 5  ;;  %v2150_v6 = vunpack.c.l.b16 %v2041_v58 }
 0x128   : > { %v1380_v33 = vadd.f32 %v1310_v0, %v958_v12  ;;  %v2069_v40 = vor.u32 %v2068_v61, %v2064_v62 }
 0x129   : > { %v1168_v42 = vsel %vm5197_vm7, %v1166_v30, %v1167_v35  ;;  %v2170_v4 = vpack.c.b16 %v2151_v29, %v2150_v6 }
 0x12a   : > { %v1212_v7 = vunpack.c.l.b16 %v1168_v42  ;;  %v2070_v8 = vrot.slane %v2069_v40, 4 }
 0x12b   : > { %v2251_v59 = vpop.f32.mrf.mxu0 }
 0x12c   : > { %v1597_v12 = vpop.f32.mrf.mxu3  ;;  %4374 = vmatmul.msk.bf16.gmra.mxu2 %vm658_vm4, %v1229_v44  ;;  %v962_v51 = vpop.f32.mrf.mxu1  ;;  %v4532_v44 = vld [vmem:[%s5011_s27 + $0xb0] sm:$0x1] }
 0x12d   : > { %v1667_v11 = vadd.f32 %v1597_v12, %v1380_v33  ;;  %v1165_v33 = vsel %vm5197_vm7, %v4358_v48, %v1164_v50  ;;  %v2072_v58 = vshll.u32 %v4532_v44, 16  ;;  %v2060_v12 = vrot.slane %v2059_v53, 4  ;;  %v4534_v48 = vld [vmem:[%s5011_s27 + $0xb8] sm:$0xf]  ;;  %v4912_v53 = vld [vmem:[%s5011_s27 + $0xb0] sm:$0x1] }
 0x12e   : > { %v1211_v39 = vunpack.c.l.b16 %v1165_v33  ;;  %v963_v50 = vadd.f32 %v962_v51, %v5308_v34  ;;  %v1034_v34 = vld [vmem:[%s5011_s27 + $0xa8] sm:$0xe]  ;;  %v2086_v51 = vshll.u32 %v4534_v48, 16  ;;  %v2090_v44 = vshrl.u32 %v4534_v48, 16 }
 0x12f   : > { %v1313_v0 = vpop.f32.mrf.mxu2  ;;  %v5566_v31 = vadd.f32 %v2251_v59, %v1667_v11  ;;  %v4533_v11 = vld [vmem:[%s5011_s27 + $0xb4] sm:$0xf]  ;;  %v2065_v29 = vsel %vm5023_vm3, %v2060_v12, %v2064_v62 }
 0x130   : > { %v1381_v27 = vadd.f32 %v1313_v0, %v961_v52  ;;  %v1230_v52 = vpack.c.b16 %v1212_v7, %v1211_v39  ;;  %v2077_v6 = vshrl.u32 %v4533_v11, 16  ;;  %v4911_v0 = vld [vmem:[%s5011_s27 + $0xac] sm:$0xf]  ;;  %v4359_v39 = vrot.slane %v1034_v34, 9 }
 0x131   : > { %4487 = vmatmul.msk.bf16.gmra.mxu3 %vm658_vm4, %v4863_v14  ;;  %v2074_v14 = vrot.slane %v2072_v58, 5  ;;  %v1171_v61 = vrot.slane %v4911_v0, 5  ;;  %v4849_v34 = vld [vmem:[%s5011_s27 + $0xa8] sm:$0xff] }
 0x132   : > { %v2079_v62 = vrot.slane %v2077_v6, 4 }
 0x133   : > { %v2254_v23 = vpop.f32.mrf.mxu0  ;;  %v2075_v42 = vsel %vm5023_vm3, %v2070_v8, %v2074_v14  ;;  %v1173_v7 = vrot.slane %v1171_v61, 4  ;;  %v4535_v14 = vld [vmem:[%s5011_s27 + $0xbc] sm:$0x1] }
 0x134   : > { %v1600_v59 = vpop.f32.mrf.mxu3  ;;  %v965_v60 = vpop.f32.mrf.mxu1 }
 0x135   : > { %v1668_v28 = vadd.f32 %v1600_v59, %v1381_v27  ;;  %v2080_v27 = vshll.u32 %v4533_v11, 16  ;;  %v4864_v59 = vld [vmem:[%s5011_s27 + $0xa8] sm:$0xff]  ;;  %v966_v12 = vadd.f32 %v965_v60, %v5328_v2  ;;  %v2153_v11 = vunpack.c.l.b16 %v2075_v42 }
 0x136   : > { %4552 = vmatmul.msk.bf16.gmra.mxu0 %vm658_vm4, %v2170_v4  ;;  %v1174_v4 = vrot.slane %v4912_v53, 5 }
 0x137   : > { %v1315_v35 = vpop.f32.mrf.mxu2  ;;  %4342 = vmatmul.msk.bf16.gmra.mxu1 %vm658_vm4, %v4848_v3  ;;  %v5580_v30 = vadd.f32 %v2254_v23, %v1668_v28  ;;  %v2152_v3 = vunpack.c.l.b16 %v2065_v29  ;;  %v2082_v28 = vrot.slane %v2080_v27, 5  ;;  %v2096_v29 = vshll.u32 %v4535_v14, 16 }
 0x138   : > { %v1382_v19 = vadd.f32 %v1315_v35, %v963_v50  ;;  %v2088_v50 = vrot.slane %v2086_v51, 5  ;;  %v2092_v35 = vrot.slane %v2090_v44, 4 }
 0x139   : > { %v2083_v6 = vor.u32 %v2082_v28, %v2079_v62  ;;  %v2171_v2 = vpack.c.b16 %v2153_v11, %v2152_v3  ;;  %v2098_v3 = vrot.slane %v2096_v29, 5  ;;  %v4913_v62 = vld [vmem:[%s5011_s27 + $0x10] sm:$0xf]  ;;  %v1035_v11 = vld [vmem:[%s5011_s27 + $0xb4] sm:$0xe] }
 0x13a   : > { %v2093_v60 = vor.u32 %v2092_v35, %v2088_v50  ;;  %v4914_v35 = vld [vmem:[%s5011_s27 + $0xb8] sm:$0xf] }
 0x13b   : > { %v2256_v33 = vpop.f32.mrf.mxu0 }
 0x13c   : > { %v1602_v23 = vpop.f32.mrf.mxu3  ;;  %4375 = vmatmul.msk.bf16.gmra.mxu2 %vm658_vm4, %v1230_v52  ;;  %v967_v40 = vpop.f32.mrf.mxu1  ;;  %v1175_v52 = vsel %vm5197_vm7, %v1173_v7, %v1174_v4  ;;  %v4537_v7 = vld [vmem:[%s5011_s27 + $0xc4] sm:$0xf] }
 0x13d   : > { %v1669_v58 = vadd.f32 %v1602_v23, %v1382_v19  ;;  %v1172_v19 = vsel %vm5197_vm7, %v4359_v39, %v1171_v61  ;;  %v1214_v42 = vunpack.c.l.b16 %v1175_v52  ;;  %v2084_v61 = vrot.slane %v2083_v6, 4  ;;  %v4536_v39 = vld [vmem:[%s5011_s27 + $0xc0] sm:$0xf] }
 0x13e   : > { %v968_v4 = vadd.f32 %v967_v40, %v5347_v17  ;;  %v2094_v23 = vrot.slane %v2093_v60, 4  ;;  %v2110_v52 = vshll.u32 %v4537_v7, 16 }
 0x13f   : > { %v1318_v8 = vpop.f32.mrf.mxu2  ;;  %v5593_v48 = vadd.f32 %v2256_v33, %v1669_v58  ;;  %v1213_v33 = vunpack.c.l.b16 %v1172_v19  ;;  %v2412_v58 = vrot.slane %v4913_v62, 5  ;;  %v2089_v17 = vsel %vm5023_vm3, %v2084_v61, %v2088_v50  ;;  %v4556_v61 = vld [vmem:[%s5011_s27 + $0xc] sm:$0xe] }
 0x140   : > { %v1383_v0 = vadd.f32 %v1318_v8, %v966_v12  ;;  %v1178_v8 = vrot.slane %v4914_v35, 5  ;;  %v2099_v40 = vsel %vm5023_vm3, %v2094_v23, %v2098_v3  ;;  %v2104_v19 = vshll.u32 %v4536_v39, 16  ;;  %v4865_v23 = vld [vmem:[%s5011_s27 + $0xb4] sm:$0xff] }
 0x141   : > { %4488 = vmatmul.msk.bf16.gmra.mxu3 %vm658_vm4, %v4864_v59  ;;  %v1231_v12 = vpack.c.b16 %v1214_v42, %v1213_v33  ;;  %v2414_v6 = vrot.slane %v2412_v58, 4  ;;  %v4916_v33 = vld [vmem:[%s5011_s27 + $0xbc] sm:$0x1]  ;;  %v2154_v3 = vunpack.c.l.b16 %v2089_v17  ;;  %v2155_v62 = vunpack.c.l.b16 %v2099_v40 }
 0x143   : > { %v2259_v27 = vpop.f32.mrf.mxu0 }
 0x144   : > { %v1605_v51 = vpop.f32.mrf.mxu3  ;;  %v970_v44 = vpop.f32.mrf.mxu1 }
 0x145   : > { %v1670_v53 = vadd.f32 %v1605_v51, %v1383_v0  ;;  %v2101_v0 = vshrl.u32 %v4536_v39, 16  ;;  %v2114_v51 = vshrl.u32 %v4537_v7, 16  ;;  %v971_v39 = vadd.f32 %v970_v44, %v5366_v54  ;;  %v4538_v54 = vld [vmem:[%s5011_s27 + $0xc8] sm:$0x1] }
 0x146   : > { %4553 = vmatmul.msk.bf16.gmra.mxu0 %vm658_vm4, %v2171_v2  ;;  %v4915_v2 = vld [vmem:[%s5011_s27 + $0x14] sm:$0x1]  ;;  %v2112_v7 = vrot.slane %v2110_v52, 5 }
 0x147   : > { %v1320_v59 = vpop.f32.mrf.mxu2  ;;  %4343 = vmatmul.msk.bf16.gmra.mxu1 %vm658_vm4, %v4849_v34  ;;  %v5609_v14 = vadd.f32 %v2259_v27, %v1670_v53  ;;  %v2415_v60 = vrot.slane %v4915_v2, 5  ;;  %v4360_v34 = vrot.slane %v1035_v11, 9  ;;  %v1181_v27 = vrot.slane %v4916_v33, 5 }
 0x148   : > { %v1384_v28 = vadd.f32 %v1320_v59, %v968_v4  ;;  %v1180_v53 = vrot.slane %v1178_v8, 4  ;;  %v4572_v59 = vrot.slane %v4556_v61, 9  ;;  %v2103_v35 = vrot.slane %v2101_v0, 4  ;;  %v4850_v61 = vld [vmem:[%s5011_s27 + $0xb4] sm:$0xff] }
 0x149   : > { %v2106_v11 = vrot.slane %v2104_v19, 5  ;;  %v1179_v33 = vsel %vm5197_vm7, %v4360_v34, %v1178_v8  ;;  %v2416_v17 = vsel %vm5197_vm7, %v2414_v6, %v2415_v60  ;;  %v4718_v19 = vld [vmem:[%s5011_s27 + $0x18] sm:$0xf]  ;;  %v2172_v8 = vpack.c.b16 %v2155_v62, %v2154_v3 }
 0x14a   : > { %v2525_v0 = vunpack.c.l.b16 %v2416_v17  ;;  %v1215_v6 = vunpack.c.l.b16 %v1179_v33  ;;  %v3083_v17 = vshll.u32 %v4718_v19, 16 }
 0x14b   : > { %v2261_v29 = vpop.f32.mrf.mxu0  ;;  %v2107_v52 = vor.u32 %v2106_v11, %v2103_v35 }
 0x14c   : > { %v1607_v42 = vpop.f32.mrf.mxu3  ;;  %4376 = vmatmul.msk.bf16.gmra.mxu2 %vm658_vm4, %v1231_v12  ;;  %v972_v50 = vpop.f32.mrf.mxu1  ;;  %v2116_v12 = vrot.slane %v2114_v51, 4 }
 0x14d   : > { %v1671_v4 = vadd.f32 %v1607_v42, %v1384_v28  ;;  %v2413_v28 = vsel %vm5197_vm7, %v4572_v59, %v2412_v58  ;;  %v1182_v42 = vsel %vm5197_vm7, %v1180_v53, %v1181_v27  ;;  %v5638_v27 = vld [vmem:[%s5011_s27 + $0x1c] sm:$0xf]  ;;  %v973_v3 = vadd.f32 %v972_v50, %v5389_v15 }
 0x14e   : > { %v2524_v44 = vunpack.c.l.b16 %v2413_v28  ;;  %v1216_v60 = vunpack.c.l.b16 %v1182_v42  ;;  %v2117_v59 = vor.u32 %v2116_v12, %v2112_v7  ;;  %v3080_v28 = vshrl.u32 %v4718_v19, 16 }
 0x14f   : > { %v1323_v2 = vpop.f32.mrf.mxu2  ;;  %v5634_v51 = vadd.f32 %v2261_v29, %v1671_v4  ;;  %v2108_v62 = vrot.slane %v2107_v52, 4  ;;  %v3089_v29 = vshll.u32 %v5638_v27, 16  ;;  %v3093_v4 = vshrl.u32 %v5638_v27, 16  ;;  %v4720_v52 = vld [vmem:[%s5011_s27 + $0x20] sm:$0x1] }
 0x150   : > { %v1385_v40 = vadd.f32 %v1323_v2, %v971_v39  ;;  %v5632_v34 = vpack.c.b16 %v2525_v0, %v2524_v44  ;;  %v2120_v39 = vshll.u32 %v4538_v54, 16  ;;  %v1232_v11 = vpack.c.b16 %v1216_v60, %v1215_v6 }
 0x151   : > { %4489 = vmatmul.msk.bf16.gmra.mxu3 %vm658_vm4, %v4865_v23  ;;  %v2118_v33 = vrot.slane %v2117_v59, 4  ;;  %v3082_v54 = vrot.slane %v3080_v28, 4  ;;  %v2113_v15 = vsel %vm5023_vm3, %v2108_v62, %v2112_v7  ;;  %v3091_v50 = vrot.slane %v3089_v29, 5 }
 0x152   : > { %v2122_v12 = vrot.slane %v2120_v39, 5  ;;  %v3095_v0 = vrot.slane %v3093_v4, 4  ;;  %v2156_v39 = vunpack.c.l.b16 %v2113_v15 }
 0x153   : > { %v2264_v58 = vpop.f32.mrf.mxu0 }
 0x154   : > { %v1610_v53 = vpop.f32.mrf.mxu3  ;;  %v975_v2 = vpop.f32.mrf.mxu1  ;;  %v3096_v28 = vor.u32 %v3095_v0, %v3091_v50  ;;  %v4917_v0 = vld [vmem:[%s5011_s27 + $0x1c] sm:$0xf] }
 0x155   : > { %v1672_v23 = vadd.f32 %v1610_v53, %v1385_v40  ;;  %v3085_v40 = vrot.slane %v3083_v17, 5  ;;  %v976_v53 = vadd.f32 %v975_v2, %v5408_v55  ;;  %v3099_v17 = vshll.u32 %v4720_v52, 16  ;;  %v5662_v2 = vld [vmem:[%s5011_s27 + $0x28] sm:$0xf] }
 0x156   : > { %4554 = vmatmul.msk.bf16.gmra.mxu0 %vm658_vm4, %v2172_v8  ;;  %v2123_v8 = vsel %vm5023_vm3, %v2118_v33, %v2122_v12  ;;  %v3097_v4 = vrot.slane %v3096_v28, 4  ;;  %v4721_v33 = vld [vmem:[%s5011_s27 + $0x24] sm:$0xf]  ;;  %v3751_v55 = vrot.slane %v5638_v27, 5 }
 0x157   : > { %v1325_v35 = vpop.f32.mrf.mxu2  ;;  %4344 = vmatmul.msk.bf16.gmra.mxu1 %vm658_vm4, %v4850_v61  ;;  %v5645_v44 = vadd.f32 %v2264_v58, %v1672_v23  ;;  %v3086_v60 = vor.u32 %v3085_v40, %v3082_v54  ;;  %v4866_v58 = vld [vmem:[%s5011_s27 + $0xc0] sm:$0xff]  ;;  %v2157_v7 = vunpack.c.l.b16 %v2123_v8  ;;  %v2419_v8 = vrot.slane %v4917_v0, 5 }
 0x158   : > { %v1386_v42 = vadd.f32 %v1325_v35, %v973_v3  ;;  %v3101_v35 = vrot.slane %v3099_v17, 5 }
 0x159   : > { %6486 = vst [vmem:[#allocation2_spill] sm:$0xff] %v5645_v44  ;;  %v3087_v62 = vrot.slane %v3086_v60, 4  ;;  %v2173_v29 = vpack.c.b16 %v2157_v7, %v2156_v39  ;;  %v3104_v39 = vshrl.u32 %v4721_v33, 16  ;;  %v3117_v7 = vshrl.u32 %v5662_v2, 16 }
 0x15b   : > { %v2266_v19 = vpop.f32.mrf.mxu0  ;;  %v3092_v15 = vsel %vm5023_vm3, %v3087_v62, %v3091_v50  ;;  %v4918_v50 = vld [vmem:[%s5011_s27 + $0x20] sm:$0x1] }
 0x15c   : > { %v1612_v61 = vpop.f32.mrf.mxu3  ;;  %4377 = vmatmul.msk.bf16.gmra.mxu2 %vm658_vm4, %v1232_v11  ;;  %v977_v6 = vpop.f32.mrf.mxu1  ;;  %v4783_v11 = vld [vmem:[%s5011_s27 + $0x18] sm:$0xe]  ;;  %v2422_v28 = vrot.slane %v4918_v50, 5 }
 0x15d   : > { %v1673_v59 = vadd.f32 %v1612_v61, %v1386_v42  ;;  %v4799_v60 = vrot.slane %v4783_v11, 9  ;;  %v978_v27 = vadd.f32 %v977_v6, %v5427_v22  ;;  %v2421_v22 = vrot.slane %v2419_v8, 4 }
 0x15f   : > { %v1328_v23 = vpop.f32.mrf.mxu2  ;;  %v5658_v12 = vadd.f32 %v2266_v19, %v1673_v59  ;;  %v3107_v19 = vshll.u32 %v4721_v33, 16  ;;  %v3102_v59 = vsel %vm5023_vm3, %v3097_v4, %v3101_v35  ;;  %v3465_v4 = vunpack.c.l.b16 %v3092_v15 }
 0x160   : > { %v1387_v3 = vadd.f32 %v1328_v23, %v976_v53  ;;  %v3113_v53 = vshll.u32 %v5662_v2, 16  ;;  %v3753_v23 = vrot.slane %v3751_v55, 4  ;;  %v3466_v35 = vunpack.c.l.b16 %v3102_v59 }
 0x161   : > { %4490 = vmatmul.msk.bf16.gmra.mxu3 %vm658_vm4, %v4866_v58  ;;  %6487 = vst [vmem:[#allocation3_spill] sm:$0xff] %v5658_v12  ;;  %v4557_v58 = vld [vmem:[%s5011_s27 + $0x18] sm:$0xe]  ;;  %v3106_v33 = vrot.slane %v3104_v39, 4  ;;  %v3752_v0 = vsel %vm5197_vm7, %v4799_v60, %v3751_v55  ;;  %v3119_v12 = vrot.slane %v3117_v7, 4 }
 0x162   : > { %v4573_v11 = vrot.slane %v4557_v58, 9  ;;  %v3115_v50 = vrot.slane %v3113_v53, 5  ;;  %v3497_v60 = vpack.c.b16 %v3466_v35, %v3465_v4  ;;  %v3863_v58 = vunpack.c.l.b16 %v3752_v0  ;;  %v4724_v4 = vld [vmem:[%s5011_s27 + $0x30] sm:$0xf] }
 0x163   : > { %v2269_v42 = vpop.f32.mrf.mxu0  ;;  %v3758_v35 = vrot.slane %v5662_v2, 5 }
 0x164   : > { %v1615_v54 = vpop.f32.mrf.mxu3  ;;  %v980_v40 = vpop.f32.mrf.mxu1  ;;  %v2420_v15 = vsel %vm5197_vm7, %v4573_v11, %v2419_v8  ;;  %v3120_v53 = vor.u32 %v3119_v12, %v3115_v50 }
 0x165   : > { %v1674_v61 = vadd.f32 %v1615_v54, %v1387_v3  ;;  %v3754_v3 = vrot.slane %v4720_v52, 5  ;;  %v3109_v54 = vrot.slane %v3107_v19, 5  ;;  %v5685_v52 = vld [vmem:[%s5011_s27 + $0x2c] sm:$0x1]  ;;  %v981_v19 = vadd.f32 %v980_v40, %v5310_v37 }
 0x166   : > { %4555 = vmatmul.msk.bf16.gmra.mxu0 %vm658_vm4, %v2173_v29  ;;  %v4867_v29 = vld [vmem:[%s5011_s27 + $0x18] sm:$0xff]  ;;  %v3123_v7 = vshll.u32 %v5685_v52, 16  ;;  %v3121_v11 = vrot.slane %v3120_v53, 4  ;;  %v4920_v53 = vld [vmem:[%s5011_s27 + $0x2c] sm:$0x1] }
 0x167   : > { %v1330_v17 = vpop.f32.mrf.mxu2  ;;  %4589 = vmatmul.msk.bf16.vlgmr.msra.gmra.mxu1 %vm658_vm4, %v5632_v34  ;;  %v5678_v6 = vadd.f32 %v2269_v42, %v1674_v61  ;;  %v3755_v34 = vsel %vm5197_vm7, %v3753_v23, %v3754_v3  ;;  %v2423_v61 = vsel %vm5197_vm7, %v2421_v22, %v2422_v28  ;;  %v3110_v39 = vor.u32 %v3109_v54, %v3106_v33  ;;  %v5701_v33 = vld [vmem:[%s5011_s27 + $0x34] sm:$0xf] }
 0x168   : > { %v1388_v62 = vadd.f32 %v1330_v17, %v978_v27  ;;  %v3864_v59 = vunpack.c.l.b16 %v3755_v34  ;;  %v2526_v23 = vunpack.c.l.b16 %v2420_v15  ;;  %v2527_v3 = vunpack.c.l.b16 %v2423_v61 }
 0x169   : > { %v3111_v28 = vrot.slane %v3110_v39, 4  ;;  %v3125_v22 = vrot.slane %v3123_v7, 5  ;;  %v2429_v7 = vrot.slane %v4920_v53, 5 }
 0x16a   : > { %v2557_v40 = vpack.c.b16 %v2527_v3, %v2526_v23  ;;  %v3761_v23 = vrot.slane %v5685_v52, 5  ;;  %v5724_v52 = vld [vmem:[%s5011_s27 + $0x38] sm:$0x1] }
 0x16b   : > { %v2271_v44 = vpop.f32.mrf.mxu0  ;;  %v3126_v39 = vsel %vm5023_vm3, %v3121_v11, %v3125_v22 }
 0x16c   : > { %v1617_v27 = vpop.f32.mrf.mxu3  ;;  %4702 = vmatmul.msk.bf16.vlgmr.msra.gmra.mxu2 %vm658_vm4, %v4867_v29  ;;  %v982_v42 = vpop.f32.mrf.mxu1  ;;  %v3895_v29 = vpack.c.b16 %v3864_v59, %v3863_v58  ;;  %v4558_v58 = vld [vmem:[%s5011_s27 + $0x24] sm:$0xe]  ;;  %v3141_v59 = vshrl.u32 %v5701_v33, 16 }
 0x16d   : > { %v1675_v55 = vadd.f32 %v1617_v27, %v1388_v62  ;;  %v4784_v62 = vld [vmem:[%s5011_s27 + $0x24] sm:$0xe]  ;;  %v4919_v27 = vld [vmem:[%s5011_s27 + $0x28] sm:$0xf]  ;;  %v983_v2 = vadd.f32 %v982_v42, %v5331_v63 }
 0x16e   : > { %v4800_v34 = vrot.slane %v4784_v62, 9  ;;  %v2426_v15 = vrot.slane %v4919_v27, 5  ;;  %v3143_v27 = vrot.slane %v3141_v59, 4  ;;  %v3147_v59 = vshll.u32 %v5724_v52, 16 }
 0x16f   : > { %v1333_v17 = vpop.f32.mrf.mxu2  ;;  %v5697_v37 = vadd.f32 %v2271_v44, %v1675_v55  ;;  %v3128_v44 = vshrl.u32 %v4724_v4, 16  ;;  %v3131_v55 = vshll.u32 %v4724_v4, 16 }
 0x170   : > { %v1389_v8 = vadd.f32 %v1333_v17, %v981_v19  ;;  %v3137_v19 = vshll.u32 %v5701_v33, 16  ;;  %v2428_v63 = vrot.slane %v2426_v15, 4  ;;  %v3759_v4 = vsel %vm5197_vm7, %v4800_v34, %v3758_v35 }
 0x171   : > { %4767 = vmatmul.msk.bf16.vlgmr.msra.gmra.mxu3 %vm658_vm4, %v3497_v60  ;;  %v3116_v60 = vsel %vm5023_vm3, %v3111_v28, %v3115_v50  ;;  %v3760_v50 = vrot.slane %v3758_v35, 4  ;;  %v4574_v28 = vrot.slane %v4558_v58, 9  ;;  %v3130_v11 = vrot.slane %v3128_v44, 4 }
 0x172   : > { %v3467_v62 = vunpack.c.l.b16 %v3116_v60  ;;  %v3133_v22 = vrot.slane %v3131_v55, 5  ;;  %v2430_v60 = vsel %vm5197_vm7, %v2428_v63, %v2429_v7  ;;  %v3865_v58 = vunpack.c.l.b16 %v3759_v4 }
 0x173   : > { %v2274_v12 = vpop.f32.mrf.mxu0  ;;  %v3762_v53 = vsel %vm5197_vm7, %v3760_v50, %v3761_v23  ;;  %v2529_v23 = vunpack.c.l.b16 %v2430_v60  ;;  %v3149_v63 = vrot.slane %v3147_v59, 5 }
 0x174   : > { %v1620_v54 = vpop.f32.mrf.mxu3  ;;  %v985_v0 = vpop.f32.mrf.mxu1  ;;  %v3134_v44 = vor.u32 %v3133_v22, %v3130_v11  ;;  %v3765_v11 = vrot.slane %v5701_v33, 5  ;;  %v5740_v22 = vld [vmem:[%s5011_s27 + $0x40] sm:$0xf] }
 0x175   : > { %v1676_v61 = vadd.f32 %v1620_v54, %v1389_v8  ;;  %v4868_v8 = vld [vmem:[%s5011_s27 + $0x24] sm:$0xff]  ;;  %v3139_v54 = vrot.slane %v3137_v19, 5  ;;  %v986_v55 = vadd.f32 %v985_v0, %v5350_v24 }
 0x176   : > { %4816 = vmatmul.msk.bf16.vlgmr.msra.gmra.mxu0 %vm658_vm4, %v3895_v29  ;;  %v3468_v29 = vunpack.c.l.b16 %v3126_v39  ;;  %v3866_v39 = vunpack.c.l.b16 %v3762_v53  ;;  %v3135_v7 = vrot.slane %v3134_v44, 4 }
 0x177   : > { %v1335_v17 = vpop.f32.mrf.mxu2  ;;  %4590 = vmatmul.msk.bf16.gmra.mxu1 %vm658_vm4, %v2557_v40  ;;  %v5717_v42 = vadd.f32 %v2274_v12, %v1676_v61  ;;  %v2427_v61 = vsel %vm5197_vm7, %v4574_v28, %v2426_v15  ;;  %v3144_v19 = vor.u32 %v3143_v27, %v3139_v54 }
 0x178   : > { %v1390_v3 = vadd.f32 %v1335_v17, %v983_v2  ;;  %v3498_v34 = vpack.c.b16 %v3468_v29, %v3467_v62  ;;  %v2528_v50 = vunpack.c.l.b16 %v2427_v61  ;;  %v4727_v62 = vld [vmem:[%s5011_s27 + $0x3c] sm:$0xf] }
 0x179   : > { %v3145_v28 = vrot.slane %v3144_v19, 4  ;;  %v4922_v19 = vld [vmem:[%s5011_s27 + $0x38] sm:$0x1] }
 0x17a   : > { %v2558_v29 = vpack.c.b16 %v2529_v23, %v2528_v50  ;;  %v2436_v59 = vrot.slane %v4922_v19, 5  ;;  %v3768_v50 = vrot.slane %v5724_v52, 5  ;;  %v5763_v52 = vld [vmem:[%s5011_s27 + $0x44] sm:$0x1] }
 0x17b   : > { %v2276_v40 = vpop.f32.mrf.mxu0  ;;  %v3150_v44 = vsel %vm5023_vm3, %v3145_v28, %v3149_v63 }
 0x17c   : > { %v1622_v2 = vpop.f32.mrf.mxu3  ;;  %4703 = vmatmul.msk.bf16.gmra.mxu2 %vm658_vm4, %v4868_v8  ;;  %v987_v12 = vpop.f32.mrf.mxu1  ;;  %v3896_v8 = vpack.c.b16 %v3866_v39, %v3865_v58  ;;  %v4559_v58 = vld [vmem:[%s5011_s27 + $0x30] sm:$0xe]  ;;  %v3165_v39 = vshrl.u32 %v5740_v22, 16 }
 0x17d   : > { %v1677_v35 = vadd.f32 %v1622_v2, %v1390_v3  ;;  %v4785_v3 = vld [vmem:[%s5011_s27 + $0x30] sm:$0xe]  ;;  %v4921_v2 = vld [vmem:[%s5011_s27 + $0x34] sm:$0xf]  ;;  %v988_v33 = vadd.f32 %v987_v12, %v5369_v57 }
 0x17e   : > { %v4801_v53 = vrot.slane %v4785_v3, 9  ;;  %v2433_v61 = vrot.slane %v4921_v2, 5  ;;  %v3167_v2 = vrot.slane %v3165_v39, 4  ;;  %v3171_v39 = vshll.u32 %v5763_v52, 16 }
 0x17f   : > { %v1338_v17 = vpop.f32.mrf.mxu2  ;;  %v5736_v24 = vadd.f32 %v2276_v40, %v1677_v35  ;;  %v3152_v40 = vshrl.u32 %v4727_v62, 16  ;;  %v3155_v35 = vshll.u32 %v4727_v62, 16 }
 0x180   : > { %v1391_v15 = vadd.f32 %v1338_v17, %v986_v55  ;;  %v3161_v55 = vshll.u32 %v5740_v22, 16  ;;  %v2435_v57 = vrot.slane %v2433_v61, 4  ;;  %v3766_v62 = vsel %vm5197_vm7, %v4801_v53, %v3765_v11 }
 0x181   : > { %4768 = vmatmul.msk.bf16.gmra.mxu3 %vm658_vm4, %v3498_v34  ;;  %v3140_v34 = vsel %vm5023_vm3, %v3135_v7, %v3139_v54  ;;  %v3767_v54 = vrot.slane %v3765_v11, 4  ;;  %v4575_v7 = vrot.slane %v4559_v58, 9  ;;  %v3154_v28 = vrot.slane %v3152_v40, 4 }
 0x182   : > { %v3469_v3 = vunpack.c.l.b16 %v3140_v34  ;;  %v3157_v63 = vrot.slane %v3155_v35, 5  ;;  %v2437_v34 = vsel %vm5197_vm7, %v2435_v57, %v2436_v59  ;;  %v3867_v58 = vunpack.c.l.b16 %v3766_v62 }
 0x183   : > { %v2279_v0 = vpop.f32.mrf.mxu0  ;;  %v3769_v19 = vsel %vm5197_vm7, %v3767_v54, %v3768_v50  ;;  %v2531_v50 = vunpack.c.l.b16 %v2437_v34  ;;  %v3173_v57 = vrot.slane %v3171_v39, 5 }
 0x184   : > { %v1625_v4 = vpop.f32.mrf.mxu3  ;;  %v990_v27 = vpop.f32.mrf.mxu1  ;;  %v3158_v40 = vor.u32 %v3157_v63, %v3154_v28  ;;  %v3772_v28 = vrot.slane %v5740_v22, 5  ;;  %v5779_v63 = vld [vmem:[%s5011_s27 + $0x4c] sm:$0xf] }
 0x185   : > { %v1678_v60 = vadd.f32 %v1625_v4, %v1391_v15  ;;  %v4869_v15 = vld [vmem:[%s5011_s27 + $0x30] sm:$0xff]  ;;  %v3163_v4 = vrot.slane %v3161_v55, 5  ;;  %v991_v35 = vadd.f32 %v990_v27, %v5392_v26 }
 0x186   : > { %4817 = vmatmul.msk.bf16.gmra.mxu0 %vm658_vm4, %v3896_v8  ;;  %v3470_v8 = vunpack.c.l.b16 %v3150_v44  ;;  %v3868_v44 = vunpack.c.l.b16 %v3769_v19  ;;  %v3159_v59 = vrot.slane %v3158_v40, 4 }
 0x187   : > { %v1340_v17 = vpop.f32.mrf.mxu2  ;;  %4591 = vmatmul.msk.bf16.gmra.mxu1 %vm658_vm4, %v2558_v29  ;;  %v5756_v12 = vadd.f32 %v2279_v0, %v1678_v60  ;;  %v2434_v60 = vsel %vm5197_vm7, %v4575_v7, %v2433_v61  ;;  %v3168_v55 = vor.u32 %v3167_v2, %v3163_v4 }
 0x188   : > { %v1392_v23 = vadd.f32 %v1340_v17, %v988_v33  ;;  %v3499_v53 = vpack.c.b16 %v3470_v8, %v3469_v3  ;;  %v2530_v54 = vunpack.c.l.b16 %v2434_v60  ;;  %v4730_v3 = vld [vmem:[%s5011_s27 + $0x48] sm:$0xf] }
 0x189   : > { %v3169_v7 = vrot.slane %v3168_v55, 4  ;;  %v4924_v55 = vld [vmem:[%s5011_s27 + $0x44] sm:$0x1] }
 0x18a   : > { %v2559_v8 = vpack.c.b16 %v2531_v50, %v2530_v54  ;;  %v2443_v39 = vrot.slane %v4924_v55, 5  ;;  %v3775_v54 = vrot.slane %v5763_v52, 5  ;;  %v5802_v52 = vld [vmem:[%s5011_s27 + $0x50] sm:$0x1] }
 0x18b   : > { %v2281_v29 = vpop.f32.mrf.mxu0  ;;  %v3174_v40 = vsel %vm5023_vm3, %v3169_v7, %v3173_v57 }
 0x18c   : > { %v1627_v33 = vpop.f32.mrf.mxu3  ;;  %4704 = vmatmul.msk.bf16.gmra.mxu2 %vm658_vm4, %v4869_v15  ;;  %v992_v0 = vpop.f32.mrf.mxu1  ;;  %v3897_v15 = vpack.c.b16 %v3868_v44, %v3867_v58  ;;  %v4560_v58 = vld [vmem:[%s5011_s27 + $0x3c] sm:$0xe]  ;;  %v3189_v44 = vshrl.u32 %v5779_v63, 16 }
 0x18d   : > { %v1679_v11 = vadd.f32 %v1627_v33, %v1392_v23  ;;  %v4786_v23 = vld [vmem:[%s5011_s27 + $0x3c] sm:$0xe]  ;;  %v4923_v33 = vld [vmem:[%s5011_s27 + $0x40] sm:$0xf]  ;;  %v993_v22 = vadd.f32 %v992_v0, %v5410_v56 }
 0x18e   : > { %v4802_v19 = vrot.slane %v4786_v23, 9  ;;  %v2440_v60 = vrot.slane %v4923_v33, 5  ;;  %v3191_v33 = vrot.slane %v3189_v44, 4  ;;  %v3195_v44 = vshll.u32 %v5802_v52, 16 }
 0x18f   : > { %v1343_v17 = vpop.f32.mrf.mxu2  ;;  %v5775_v26 = vadd.f32 %v2281_v29, %v1679_v11  ;;  %v3176_v29 = vshrl.u32 %v4730_v3, 16  ;;  %v3179_v11 = vshll.u32 %v4730_v3, 16 }
 0x190   : > { %v1393_v61 = vadd.f32 %v1343_v17, %v991_v35  ;;  %v3185_v35 = vshll.u32 %v5779_v63, 16  ;;  %v2442_v56 = vrot.slane %v2440_v60, 4  ;;  %v3773_v3 = vsel %vm5197_vm7, %v4802_v19, %v3772_v28 }
 0x191   : > { %4769 = vmatmul.msk.bf16.gmra.mxu3 %vm658_vm4, %v3499_v53  ;;  %v3164_v53 = vsel %vm5023_vm3, %v3159_v59, %v3163_v4  ;;  %v3774_v4 = vrot.slane %v3772_v28, 4  ;;  %v4576_v59 = vrot.slane %v4560_v58, 9  ;;  %v3178_v7 = vrot.slane %v3176_v29, 4 }
 0x192   : > { %v3471_v23 = vunpack.c.l.b16 %v3164_v53  ;;  %v3181_v57 = vrot.slane %v3179_v11, 5  ;;  %v2444_v53 = vsel %vm5197_vm7, %v2442_v56, %v2443_v39  ;;  %v3869_v58 = vunpack.c.l.b16 %v3773_v3 }
 0x193   : > { %v2284_v27 = vpop.f32.mrf.mxu0  ;;  %v3776_v55 = vsel %vm5197_vm7, %v3774_v4, %v3775_v54  ;;  %v2533_v54 = vunpack.c.l.b16 %v2444_v53  ;;  %v3197_v56 = vrot.slane %v3195_v44, 5 }
 0x194   : > { %v1630_v62 = vpop.f32.mrf.mxu3  ;;  %v995_v2 = vpop.f32.mrf.mxu1  ;;  %v3182_v29 = vor.u32 %v3181_v57, %v3178_v7  ;;  %v3779_v7 = vrot.slane %v5779_v63, 5  ;;  %v5818_v57 = vld [vmem:[%s5011_s27 + $0x58] sm:$0xf] }
 0x195   : > { %v1680_v34 = vadd.f32 %v1630_v62, %v1393_v61  ;;  %v4870_v61 = vld [vmem:[%s5011_s27 + $0x3c] sm:$0xff]  ;;  %v3187_v62 = vrot.slane %v3185_v35, 5  ;;  %v996_v11 = vadd.f32 %v995_v2, %v5431_v32 }
 0x196   : > { %4818 = vmatmul.msk.bf16.gmra.mxu0 %vm658_vm4, %v3897_v15  ;;  %v3472_v15 = vunpack.c.l.b16 %v3174_v40  ;;  %v3870_v40 = vunpack.c.l.b16 %v3776_v55  ;;  %v3183_v39 = vrot.slane %v3182_v29, 4 }
 0x197   : > { %v1345_v17 = vpop.f32.mrf.mxu2  ;;  %4592 = vmatmul.msk.bf16.gmra.mxu1 %vm658_vm4, %v2559_v8  ;;  %v5795_v0 = vadd.f32 %v2284_v27, %v1680_v34  ;;  %v2441_v34 = vsel %vm5197_vm7, %v4576_v59, %v2440_v60  ;;  %v3192_v35 = vor.u32 %v3191_v33, %v3187_v62 }
 0x198   : > { %v1394_v50 = vadd.f32 %v1345_v17, %v993_v22  ;;  %v3500_v19 = vpack.c.b16 %v3472_v15, %v3471_v23  ;;  %v2532_v4 = vunpack.c.l.b16 %v2441_v34  ;;  %v4733_v23 = vld [vmem:[%s5011_s27 + $0x54] sm:$0xf] }
 0x199   : > { %v3193_v59 = vrot.slane %v3192_v35, 4  ;;  %v4926_v35 = vld [vmem:[%s5011_s27 + $0x50] sm:$0x1] }
 0x19a   : > { %v2560_v15 = vpack.c.b16 %v2533_v54, %v2532_v4  ;;  %v2450_v44 = vrot.slane %v4926_v35, 5  ;;  %v3782_v4 = vrot.slane %v5802_v52, 5  ;;  %v5841_v52 = vld [vmem:[%s5011_s27 + $0x5c] sm:$0x1] }
 0x19b   : > { %v2286_v8 = vpop.f32.mrf.mxu0  ;;  %v3198_v29 = vsel %vm5023_vm3, %v3193_v59, %v3197_v56 }
 0x19c   : > { %v1632_v22 = vpop.f32.mrf.mxu3  ;;  %4705 = vmatmul.msk.bf16.gmra.mxu2 %vm658_vm4, %v4870_v61  ;;  %v997_v27 = vpop.f32.mrf.mxu1  ;;  %v3898_v61 = vpack.c.b16 %v3870_v40, %v3869_v58  ;;  %v4561_v58 = vld [vmem:[%s5011_s27 + $0x48] sm:$0xe]  ;;  %v3213_v40 = vshrl.u32 %v5818_v57, 16 }
 0x19d   : > { %v1681_v28 = vadd.f32 %v1632_v22, %v1394_v50  ;;  %v4787_v50 = vld [vmem:[%s5011_s27 + $0x48] sm:$0xe]  ;;  %v4925_v22 = vld [vmem:[%s5011_s27 + $0x4c] sm:$0xf]  ;;  %v998_v63 = vadd.f32 %v997_v27, %v5446_v5 }
 0x19e   : > { %v4803_v55 = vrot.slane %v4787_v50, 9  ;;  %v2447_v34 = vrot.slane %v4925_v22, 5  ;;  %v3215_v22 = vrot.slane %v3213_v40, 4  ;;  %v3219_v40 = vshll.u32 %v5841_v52, 16 }
 0x19f   : > { %v1348_v17 = vpop.f32.mrf.mxu2  ;;  %v5814_v32 = vadd.f32 %v2286_v8, %v1681_v28  ;;  %v3200_v8 = vshrl.u32 %v4733_v23, 16  ;;  %v3203_v28 = vshll.u32 %v4733_v23, 16 }
 0x1a0   : > { %v1395_v60 = vadd.f32 %v1348_v17, %v996_v11  ;;  %v3209_v11 = vshll.u32 %v5818_v57, 16  ;;  %v2449_v5 = vrot.slane %v2447_v34, 4  ;;  %v3780_v23 = vsel %vm5197_vm7, %v4803_v55, %v3779_v7 }
 0x1a1   : > { %4770 = vmatmul.msk.bf16.gmra.mxu3 %vm658_vm4, %v3500_v19  ;;  %v3188_v19 = vsel %vm5023_vm3, %v3183_v39, %v3187_v62  ;;  %v3781_v62 = vrot.slane %v3779_v7, 4  ;;  %v4577_v39 = vrot.slane %v4561_v58, 9  ;;  %v3202_v59 = vrot.slane %v3200_v8, 4 }
 0x1a2   : > { %v3473_v50 = vunpack.c.l.b16 %v3188_v19  ;;  %v3205_v56 = vrot.slane %v3203_v28, 5  ;;  %v2451_v19 = vsel %vm5197_vm7, %v2449_v5, %v2450_v44  ;;  %v3871_v58 = vunpack.c.l.b16 %v3780_v23 }
 0x1a3   : > { %v2289_v2 = vpop.f32.mrf.mxu0  ;;  %v3783_v35 = vsel %vm5197_vm7, %v3781_v62, %v3782_v4  ;;  %v2535_v4 = vunpack.c.l.b16 %v2451_v19  ;;  %v3221_v5 = vrot.slane %v3219_v40, 5 }
 0x1a4   : > { %v1635_v3 = vpop.f32.mrf.mxu3  ;;  %v1000_v33 = vpop.f32.mrf.mxu1  ;;  %v3206_v8 = vor.u32 %v3205_v56, %v3202_v59  ;;  %v3786_v59 = vrot.slane %v5818_v57, 5  ;;  %v5857_v56 = vld [vmem:[%s5011_s27 + $0x64] sm:$0xf] }
 0x1a5   : > { %v1682_v53 = vadd.f32 %v1635_v3, %v1395_v60  ;;  %v4871_v60 = vld [vmem:[%s5011_s27 + $0x48] sm:$0xff]  ;;  %v3211_v3 = vrot.slane %v3209_v11, 5  ;;  %v1001_v28 = vadd.f32 %v1000_v33, %v5318_v45 }
 0x1a6   : > { %4819 = vmatmul.msk.bf16.gmra.mxu0 %vm658_vm4, %v3898_v61  ;;  %v3474_v61 = vunpack.c.l.b16 %v3198_v29  ;;  %v3872_v29 = vunpack.c.l.b16 %v3783_v35  ;;  %v3207_v44 = vrot.slane %v3206_v8, 4 }
 0x1a7   : > { %v1350_v17 = vpop.f32.mrf.mxu2  ;;  %4593 = vmatmul.msk.bf16.gmra.mxu1 %vm658_vm4, %v2560_v15  ;;  %v5834_v27 = vadd.f32 %v2289_v2, %v1682_v53  ;;  %v2448_v53 = vsel %vm5197_vm7, %v4577_v39, %v2447_v34  ;;  %v3216_v11 = vor.u32 %v3215_v22, %v3211_v3 }
 0x1a8   : > { %v1396_v54 = vadd.f32 %v1350_v17, %v998_v63  ;;  %v3501_v55 = vpack.c.b16 %v3474_v61, %v3473_v50  ;;  %v2534_v62 = vunpack.c.l.b16 %v2448_v53  ;;  %v4736_v50 = vld [vmem:[%s5011_s27 + $0x60] sm:$0xf] }
 0x1a9   : > { %v3217_v39 = vrot.slane %v3216_v11, 4  ;;  %v4928_v11 = vld [vmem:[%s5011_s27 + $0x5c] sm:$0x1] }
 0x1aa   : > { %v2561_v61 = vpack.c.b16 %v2535_v4, %v2534_v62  ;;  %v2457_v40 = vrot.slane %v4928_v11, 5  ;;  %v3789_v62 = vrot.slane %v5841_v52, 5  ;;  %v5880_v52 = vld [vmem:[%s5011_s27 + $0x68] sm:$0x1] }
 0x1ab   : > { %v2291_v15 = vpop.f32.mrf.mxu0  ;;  %v3222_v8 = vsel %vm5023_vm3, %v3217_v39, %v3221_v5 }
 0x1ac   : > { %v1637_v63 = vpop.f32.mrf.mxu3  ;;  %4706 = vmatmul.msk.bf16.gmra.mxu2 %vm658_vm4, %v4871_v60  ;;  %v1002_v2 = vpop.f32.mrf.mxu1  ;;  %v3899_v60 = vpack.c.b16 %v3872_v29, %v3871_v58  ;;  %v4562_v58 = vld [vmem:[%s5011_s27 + $0x54] sm:$0xe]  ;;  %v3237_v29 = vshrl.u32 %v5857_v56, 16 }
 0x1ad   : > { %v1683_v7 = vadd.f32 %v1637_v63, %v1396_v54  ;;  %v4788_v54 = vld [vmem:[%s5011_s27 + $0x54] sm:$0xe]  ;;  %v4927_v63 = vld [vmem:[%s5011_s27 + $0x58] sm:$0xf]  ;;  %v1003_v57 = vadd.f32 %v1002_v2, %v5341_v9 }
 0x1ae   : > { %v4804_v35 = vrot.slane %v4788_v54, 9  ;;  %v2454_v53 = vrot.slane %v4927_v63, 5  ;;  %v3239_v63 = vrot.slane %v3237_v29, 4  ;;  %v3243_v29 = vshll.u32 %v5880_v52, 16 }
 0x1af   : > { %v1353_v17 = vpop.f32.mrf.mxu2  ;;  %v5853_v45 = vadd.f32 %v2291_v15, %v1683_v7  ;;  %v3224_v15 = vshrl.u32 %v4736_v50, 16  ;;  %v3227_v7 = vshll.u32 %v4736_v50, 16 }
 0x1b0   : > { %v1397_v34 = vadd.f32 %v1353_v17, %v1001_v28  ;;  %v3233_v28 = vshll.u32 %v5857_v56, 16  ;;  %v2456_v9 = vrot.slane %v2454_v53, 4  ;;  %v3787_v50 = vsel %vm5197_vm7, %v4804_v35, %v3786_v59 }
 0x1b1   : > { %4771 = vmatmul.msk.bf16.gmra.mxu3 %vm658_vm4, %v3501_v55  ;;  %v3212_v55 = vsel %vm5023_vm3, %v3207_v44, %v3211_v3  ;;  %v3788_v3 = vrot.slane %v3786_v59, 4  ;;  %v4578_v44 = vrot.slane %v4562_v58, 9  ;;  %v3226_v39 = vrot.slane %v3224_v15, 4 }
 0x1b2   : > { %v3475_v54 = vunpack.c.l.b16 %v3212_v55  ;;  %v3229_v5 = vrot.slane %v3227_v7, 5  ;;  %v2458_v55 = vsel %vm5197_vm7, %v2456_v9, %v2457_v40  ;;  %v3873_v58 = vunpack.c.l.b16 %v3787_v50 }
 0x1b3   : > { %v2294_v33 = vpop.f32.mrf.mxu0  ;;  %v3790_v11 = vsel %vm5197_vm7, %v3788_v3, %v3789_v62  ;;  %v2537_v62 = vunpack.c.l.b16 %v2458_v55  ;;  %v3245_v9 = vrot.slane %v3243_v29, 5 }
 0x1b4   : > { %v1640_v23 = vpop.f32.mrf.mxu3  ;;  %v1005_v22 = vpop.f32.mrf.mxu1  ;;  %v3230_v15 = vor.u32 %v3229_v5, %v3226_v39  ;;  %v3793_v39 = vrot.slane %v5857_v56, 5  ;;  %v5896_v5 = vld [vmem:[%s5011_s27 + $0x70] sm:$0xf] }
 0x1b5   : > { %v1684_v19 = vadd.f32 %v1640_v23, %v1397_v34  ;;  %v4872_v34 = vld [vmem:[%s5011_s27 + $0x54] sm:$0xff]  ;;  %v3235_v23 = vrot.slane %v3233_v28, 5  ;;  %v1006_v7 = vadd.f32 %v1005_v22, %v5362_v46 }
 0x1b6   : > { %4820 = vmatmul.msk.bf16.gmra.mxu0 %vm658_vm4, %v3899_v60  ;;  %v3476_v60 = vunpack.c.l.b16 %v3222_v8  ;;  %v3874_v8 = vunpack.c.l.b16 %v3790_v11  ;;  %v3231_v40 = vrot.slane %v3230_v15, 4 }
 0x1b7   : > { %v1355_v17 = vpop.f32.mrf.mxu2  ;;  %4594 = vmatmul.msk.bf16.gmra.mxu1 %vm658_vm4, %v2561_v61  ;;  %v5873_v2 = vadd.f32 %v2294_v33, %v1684_v19  ;;  %v2455_v19 = vsel %vm5197_vm7, %v4578_v44, %v2454_v53  ;;  %v3240_v28 = vor.u32 %v3239_v63, %v3235_v23 }
 0x1b8   : > { %v1398_v4 = vadd.f32 %v1355_v17, %v1003_v57  ;;  %v3502_v35 = vpack.c.b16 %v3476_v60, %v3475_v54  ;;  %v2536_v3 = vunpack.c.l.b16 %v2455_v19  ;;  %v4739_v54 = vld [vmem:[%s5011_s27 + $0x6c] sm:$0xf] }
 0x1b9   : > { %v3241_v44 = vrot.slane %v3240_v28, 4  ;;  %v4930_v28 = vld [vmem:[%s5011_s27 + $0x68] sm:$0x1] }
 0x1ba   : > { %v2562_v60 = vpack.c.b16 %v2537_v62, %v2536_v3  ;;  %v2464_v29 = vrot.slane %v4930_v28, 5  ;;  %v3796_v3 = vrot.slane %v5880_v52, 5  ;;  %v5919_v52 = vld [vmem:[%s5011_s27 + $0x74] sm:$0x1] }
 0x1bb   : > { %v2296_v61 = vpop.f32.mrf.mxu0  ;;  %v3246_v15 = vsel %vm5023_vm3, %v3241_v44, %v3245_v9 }
 0x1bc   : > { %v1642_v57 = vpop.f32.mrf.mxu3  ;;  %4707 = vmatmul.msk.bf16.gmra.mxu2 %vm658_vm4, %v4872_v34  ;;  %v1007_v33 = vpop.f32.mrf.mxu1  ;;  %v3900_v34 = vpack.c.b16 %v3874_v8, %v3873_v58  ;;  %v4563_v58 = vld [vmem:[%s5011_s27 + $0x60] sm:$0xe]  ;;  %v3261_v8 = vshrl.u32 %v5896_v5, 16 }
 0x1bd   : > { %v1685_v59 = vadd.f32 %v1642_v57, %v1398_v4  ;;  %v4789_v4 = vld [vmem:[%s5011_s27 + $0x60] sm:$0xe]  ;;  %v4929_v57 = vld [vmem:[%s5011_s27 + $0x64] sm:$0xf]  ;;  %v1008_v56 = vadd.f32 %v1007_v33, %v5379_v25 }
 0x1be   : > { %v4805_v11 = vrot.slane %v4789_v4, 9  ;;  %v2461_v19 = vrot.slane %v4929_v57, 5  ;;  %v3263_v57 = vrot.slane %v3261_v8, 4  ;;  %v3267_v8 = vshll.u32 %v5919_v52, 16 }
 0x1bf   : > { %v1358_v17 = vpop.f32.mrf.mxu2  ;;  %v5892_v46 = vadd.f32 %v2296_v61, %v1685_v59  ;;  %v3248_v61 = vshrl.u32 %v4739_v54, 16  ;;  %v3251_v59 = vshll.u32 %v4739_v54, 16 }
 0x1c0   : > { %v1399_v53 = vadd.f32 %v1358_v17, %v1006_v7  ;;  %v3257_v7 = vshll.u32 %v5896_v5, 16  ;;  %v2463_v25 = vrot.slane %v2461_v19, 4  ;;  %v3794_v54 = vsel %vm5197_vm7, %v4805_v11, %v3793_v39 }
 0x1c1   : > { %4772 = vmatmul.msk.bf16.gmra.mxu3 %vm658_vm4, %v3502_v35  ;;  %v3236_v35 = vsel %vm5023_vm3, %v3231_v40, %v3235_v23  ;;  %v3795_v23 = vrot.slane %v3793_v39, 4  ;;  %v4579_v40 = vrot.slane %v4563_v58, 9  ;;  %v3250_v44 = vrot.slane %v3248_v61, 4 }
 0x1c2   : > { %v3477_v4 = vunpack.c.l.b16 %v3236_v35  ;;  %v3253_v9 = vrot.slane %v3251_v59, 5  ;;  %v2465_v35 = vsel %vm5197_vm7, %v2463_v25, %v2464_v29  ;;  %v3875_v58 = vunpack.c.l.b16 %v3794_v54 }
 0x1c3   : > { %v2299_v22 = vpop.f32.mrf.mxu0  ;;  %v3797_v28 = vsel %vm5197_vm7, %v3795_v23, %v3796_v3  ;;  %v2539_v3 = vunpack.c.l.b16 %v2465_v35  ;;  %v3269_v25 = vrot.slane %v3267_v8, 5  ;;  %v4931_v35 = vld [vmem:[%s5011_s27 + $0x70] sm:$0xf] }
 0x1c4   : > { %v1645_v50 = vpop.f32.mrf.mxu3  ;;  %v1010_v63 = vpop.f32.mrf.mxu1  ;;  %v3254_v61 = vor.u32 %v3253_v9, %v3250_v44  ;;  %v3800_v9 = vrot.slane %v5896_v5, 5 }
 0x1c5   : > { %v1686_v55 = vadd.f32 %v1645_v50, %v1399_v53  ;;  %v4873_v53 = vld [vmem:[%s5011_s27 + $0x60] sm:$0xff]  ;;  %v3259_v50 = vrot.slane %v3257_v7, 5  ;;  %v1011_v59 = vadd.f32 %v1010_v63, %v5400_v47 }
 0x1c6   : > { %4821 = vmatmul.msk.bf16.gmra.mxu0 %vm658_vm4, %v3900_v34  ;;  %v3478_v34 = vunpack.c.l.b16 %v3246_v15  ;;  %v3876_v15 = vunpack.c.l.b16 %v3797_v28  ;;  %v3255_v29 = vrot.slane %v3254_v61, 4 }
 0x1c7   : > { %v1360_v17 = vpop.f32.mrf.mxu2  ;;  %4595 = vmatmul.msk.bf16.gmra.mxu1 %vm658_vm4, %v2562_v60  ;;  %v5912_v33 = vadd.f32 %v2299_v22, %v1686_v55  ;;  %v2462_v55 = vsel %vm5197_vm7, %v4579_v40, %v2461_v19  ;;  %v3264_v7 = vor.u32 %v3263_v57, %v3259_v50  ;;  %v4742_v19 = vld [vmem:[%s5011_s27 + $0x78] sm:$0xf] }
 0x1c8   : > { %v1400_v62 = vadd.f32 %v1360_v17, %v1008_v56  ;;  %v3503_v11 = vpack.c.b16 %v3478_v34, %v3477_v4  ;;  %v2538_v23 = vunpack.c.l.b16 %v2462_v55  ;;  %v4790_v4 = vld [vmem:[%s5011_s27 + $0x6c] sm:$0xe]  ;;  %v5932_v34 = vld [vmem:[%s5011_s27 + $0x7c] sm:$0xf]  ;;  %v3272_v54 = vshrl.u32 %v4742_v19, 16 }
 0x1c9   : > { %v3265_v40 = vrot.slane %v3264_v7, 4  ;;  %v3275_v57 = vshll.u32 %v4742_v19, 16  ;;  %v4564_v55 = vld [vmem:[%s5011_s27 + $0x6c] sm:$0xe]  ;;  %v3260_v5 = vsel %vm5023_vm3, %v3255_v29, %v3259_v50  ;;  %v3803_v7 = vrot.slane %v5919_v52, 5 }
 0x1ca   : > { %v2563_v44 = vpack.c.b16 %v2539_v3, %v2538_v23  ;;  %v4580_v23 = vrot.slane %v4564_v55, 9  ;;  %v3274_v3 = vrot.slane %v3272_v54, 4  ;;  %v3479_v50 = vunpack.c.l.b16 %v3260_v5  ;;  %v5958_v54 = vld [vmem:[%s5011_s27 + $0x80] sm:$0x1] }
 0x1cb   : > { %v2301_v60 = vpop.f32.mrf.mxu0 }
 0x1cc   : > { %v1647_v56 = vpop.f32.mrf.mxu3  ;;  %4708 = vmatmul.msk.bf16.gmra.mxu2 %vm658_vm4, %v4873_v53  ;;  %v1012_v22 = vpop.f32.mrf.mxu1 }
 0x1cd   : > { %v1687_v39 = vadd.f32 %v1647_v56, %v1400_v62  ;;  %v3901_v62 = vpack.c.b16 %v3876_v15, %v3875_v58  ;;  %v4806_v58 = vrot.slane %v4790_v4, 9  ;;  %v3270_v15 = vsel %vm5023_vm3, %v3265_v40, %v3269_v25 }
 0x1ce   : > { %v3480_v29 = vunpack.c.l.b16 %v3270_v15 }
 0x1cf   : > { %v1363_v17 = vpop.f32.mrf.mxu2  ;;  %v5934_v47 = vadd.f32 %v2301_v60, %v1687_v39  ;;  %v3285_v60 = vshrl.u32 %v5932_v34, 16  ;;  %v1013_v39 = vadd.f32 %v1012_v22, %v5419_v10  ;;  %v4932_v10 = vld [vmem:[%s5011_s27 + $0x74] sm:$0x1] }
 0x1d0   : > { %v1401_v53 = vadd.f32 %v1363_v17, %v1011_v59  ;;  %v3281_v59 = vshll.u32 %v5932_v34, 16  ;;  %v3802_v17 = vrot.slane %v3800_v9, 4  ;;  %v2471_v22 = vrot.slane %v4932_v10, 5 }
 0x1d1   : > { %4773 = vmatmul.msk.bf16.gmra.mxu3 %vm658_vm4, %v3503_v11  ;;  %v2468_v11 = vrot.slane %v4931_v35, 5  ;;  %v3287_v25 = vrot.slane %v3285_v60, 4 }
 0x1d2   : > { %v3283_v40 = vrot.slane %v3281_v59, 5  ;;  %v3804_v55 = vsel %vm5197_vm7, %v3802_v17, %v3803_v7  ;;  %v3291_v7 = vshll.u32 %v5958_v54, 16 }
 0x1d3   : > { %v2304_v63 = vpop.f32.mrf.mxu0  ;;  %v2470_v4 = vrot.slane %v2468_v11, 4  ;;  %v3878_v15 = vunpack.c.l.b16 %v3804_v55 }
 0x1d4   : > { %v1650_v28 = vpop.f32.mrf.mxu3  ;;  %v1015_v56 = vpop.f32.mrf.mxu1 }
 0x1d5   : > { %v1688_v61 = vadd.f32 %v1650_v28, %v1401_v53  ;;  %v3277_v53 = vrot.slane %v3275_v57, 5 }
 0x1d6   : > { %4822 = vmatmul.msk.bf16.gmra.mxu0 %vm658_vm4, %v3901_v62  ;;  %v4874_v62 = vld [vmem:[%s5011_s27 + $0x6c] sm:$0xff] }
 0x1d7   : > { %v1365_v8 = vpop.f32.mrf.mxu2  ;;  %4596 = vmatmul.msk.bf16.gmra.mxu1 %vm658_vm4, %v2563_v44  ;;  %v5951_v28 = vadd.f32 %v2304_v63, %v1688_v61  ;;  %v3801_v44 = vsel %vm5197_vm7, %v4806_v58, %v3800_v9  ;;  %v2469_v63 = vsel %vm5197_vm7, %v4580_v23, %v2468_v11  ;;  %v2472_v61 = vsel %vm5197_vm7, %v2470_v4, %v2471_v22  ;;  %v4745_v23 = vld [vmem:[%s5011_s27 + $0x84] sm:$0xf]  ;;  %v4791_v4 = vld [vmem:[%s5011_s27 + $0x78] sm:$0xe] }
 0x1d8   : > { %v1402_v19 = vadd.f32 %v1365_v8, %v1013_v39  ;;  %v3278_v59 = vor.u32 %v3277_v53, %v3274_v3  ;;  %v3504_v39 = vpack.c.b16 %v3480_v29, %v3479_v50  ;;  %v3288_v9 = vor.u32 %v3287_v25, %v3283_v40 }
 0x1d9   : > { %v1016_v58 = vadd.f32 %v1015_v56, %v5442_v43  ;;  %v3877_v5 = vunpack.c.l.b16 %v3801_v44  ;;  %v2540_v17 = vunpack.c.l.b16 %v2469_v63  ;;  %v3807_v43 = vrot.slane %v5932_v34, 5  ;;  %v5972_v56 = vld [vmem:[%s5011_s27 + $0x88] sm:$0xf] }
 0x1da   : > { %v3279_v11 = vrot.slane %v3278_v59, 4  ;;  %v3289_v3 = vrot.slane %v3288_v9, 4  ;;  %v3296_v25 = vshrl.u32 %v4745_v23, 16  ;;  %v3299_v44 = vshll.u32 %v4745_v23, 16  ;;  %v4933_v59 = vld [vmem:[%s5011_s27 + $0x7c] sm:$0xf] }
 0x1db   : > { %v2306_v52 = vpop.f32.mrf.mxu0  ;;  %v3902_v53 = vpack.c.b16 %v3878_v15, %v3877_v5  ;;  %v3305_v34 = vshll.u32 %v5972_v56, 16  ;;  %v3809_v15 = vrot.slane %v3807_v43, 4  ;;  %v4875_v23 = vld [vmem:[%s5011_s27 + $0x78] sm:$0xff] }
 0x1dc   : > { %v1652_v57 = vpop.f32.mrf.mxu3  ;;  %4709 = vmatmul.msk.bf16.gmra.mxu2 %vm658_vm4, %v4874_v62  ;;  %v1017_v35 = vpop.f32.mrf.mxu1  ;;  %v2541_v62 = vunpack.c.l.b16 %v2472_v61  ;;  %v3284_v63 = vsel %vm5023_vm3, %v3279_v11, %v3283_v40  ;;  %v4565_v61 = vld [vmem:[%s5011_s27 + $0x78] sm:$0xe]  ;;  %v3810_v40 = vrot.slane %v5958_v54, 5 }
 0x1dd   : > { %v1689_v60 = vadd.f32 %v1652_v57, %v1402_v19  ;;  %v3293_v19 = vrot.slane %v3291_v7, 5  ;;  %v3307_v54 = vrot.slane %v3305_v34, 5 }
 0x1de   : > { %v2564_v29 = vpack.c.b16 %v2541_v62, %v2540_v17  ;;  %v4581_v17 = vrot.slane %v4565_v61, 9  ;;  %v3298_v62 = vrot.slane %v3296_v25, 4  ;;  %v5997_v61 = vld [vmem:[%s5011_s27 + $0x8c] sm:$0x1] }
 0x1df   : > { %v1368_v8 = vpop.f32.mrf.mxu2  ;;  %v5974_v22 = vadd.f32 %v2306_v52, %v1689_v60  ;;  %v3309_v52 = vshrl.u32 %v5972_v56, 16  ;;  %v1018_v60 = vadd.f32 %v1017_v35, %v5459_v21  ;;  %v3294_v5 = vsel %vm5023_vm3, %v3289_v3, %v3293_v19 }
 0x1e0   : > { %v1403_v10 = vadd.f32 %v1368_v8, %v1016_v58  ;;  %v4807_v58 = vrot.slane %v4791_v4, 9  ;;  %v3481_v8 = vunpack.c.l.b16 %v3284_v63  ;;  %v3482_v35 = vunpack.c.l.b16 %v3294_v5 }
 0x1e1   : > { %4774 = vmatmul.msk.bf16.gmra.mxu3 %vm658_vm4, %v3504_v39  ;;  %v2475_v39 = vrot.slane %v4933_v59, 5  ;;  %v3311_v19 = vrot.slane %v3309_v52, 4  ;;  %v3315_v5 = vshll.u32 %v5997_v61, 16 }
 0x1e2   : > { %v3808_v3 = vsel %vm5197_vm7, %v4807_v58, %v3807_v43  ;;  %v3505_v34 = vpack.c.b16 %v3482_v35, %v3481_v8  ;;  %v3814_v8 = vrot.slane %v5972_v56, 5  ;;  %v6021_v56 = vld [vmem:[%s6480_s2] ss:$0 sm:$0xff] }
 0x1e3   : > { %v2309_v50 = vpop.f32.mrf.mxu0  ;;  %v2477_v4 = vrot.slane %v2475_v39, 4  ;;  %v2476_v43 = vsel %vm5197_vm7, %v4581_v17, %v2475_v39 }
 0x1e4   : > { %v1655_v55 = vpop.f32.mrf.mxu3  ;;  %v2632_v57 = vpop.f32.mrf.mxu1 }
 0x1e5   : > { %v1690_v9 = vadd.f32 %v1655_v55, %v1403_v10  ;;  %v3301_v10 = vrot.slane %v3299_v44, 5 }
 0x1e6   : > { %4823 = vmatmul.msk.bf16.gmra.mxu0 %vm658_vm4, %v3902_v53  ;;  %v4934_v53 = vld [vmem:[%s5011_s27 + $0x80] sm:$0x1] }
 0x1e7   : > { %v1370_v7 = vpop.f32.mrf.mxu2  ;;  %4597 = vmatmul.msk.bf16.gmra.mxu1 %vm658_vm4, %v2564_v29  ;;  %v2478_v55 = vrot.slane %v4934_v53, 5  ;;  %v5990_v21 = vadd.f32 %v2309_v50, %v1690_v9  ;;  %v3811_v29 = vsel %vm5197_vm7, %v3809_v15, %v3810_v40  ;;  %v3302_v25 = vor.u32 %v3301_v10, %v3298_v62  ;;  %v4748_v53 = vld [vmem:[%s5011_s27 + $0x90] sm:$0xf] }
 0x1e8   : > { %v1404_v11 = vadd.f32 %v1370_v7, %v1018_v60  ;;  %v3879_v50 = vunpack.c.l.b16 %v3808_v3  ;;  %v3880_v52 = vunpack.c.l.b16 %v3811_v29  ;;  %v3312_v60 = vor.u32 %v3311_v19, %v3307_v54  ;;  %v6009_v3 = vld [vmem:[%s5011_s27 + $0x94] sm:$0xf] }
 0x1e9   : > { %v2479_v9 = vsel %vm5197_vm7, %v2477_v4, %v2478_v55  ;;  %v2712_v15 = vadd.f32 %v2632_v57, %v5476_v49  ;;  %v2542_v7 = vunpack.c.l.b16 %v2476_v43  ;;  %v3303_v10 = vrot.slane %v3302_v25, 4 }
 0x1ea   : > { %v2543_v62 = vunpack.c.l.b16 %v2479_v9  ;;  %v3903_v39 = vpack.c.b16 %v3880_v52, %v3879_v50  ;;  %v3317_v4 = vrot.slane %v3315_v5, 5  ;;  %v3320_v49 = vshrl.u32 %v4748_v53, 16 }
 0x1eb   : > { %v2311_v63 = vpop.f32.mrf.mxu0  ;;  %v3308_v29 = vsel %vm5023_vm3, %v3303_v10, %v3307_v54  ;;  %v3323_v25 = vshll.u32 %v4748_v53, 16  ;;  %v3816_v54 = vrot.slane %v3814_v8, 4  ;;  %v3817_v52 = vrot.slane %v5997_v61, 5 }
 0x1ec   : > { %v1657_v44 = vpop.f32.mrf.mxu3  ;;  %4710 = vmatmul.msk.bf16.gmra.mxu2 %vm658_vm4, %v4875_v23  ;;  %v2634_v59 = vpop.f32.mrf.mxu1  ;;  %v4792_v23 = vld [vmem:[%s5011_s27 + $0x84] sm:$0xe]  ;;  %v2565_v19 = vpack.c.b16 %v2543_v62, %v2542_v7  ;;  %v3322_v7 = vrot.slane %v3320_v49, 4 }
 0x1ed   : > { %v1691_v58 = vadd.f32 %v1657_v44, %v1404_v11  ;;  %v3313_v11 = vrot.slane %v3312_v60, 4  ;;  %v4808_v55 = vrot.slane %v4792_v23, 9  ;;  %v3329_v44 = vshll.u32 %v6009_v3, 16  ;;  %v4566_v60 = vld [vmem:[%s5011_s27 + $0x84] sm:$0xe] }
 0x1ee   : > { %v2713_v10 = vadd.f32 %v2634_v59, %v5489_v1  ;;  %v3325_v61 = vrot.slane %v3323_v25, 5 }
 0x1ef   : > { %v2919_v40 = vpop.f32.mrf.mxu2  ;;  %v6013_v57 = vadd.f32 %v2311_v63, %v1691_v58  ;;  %v4935_v63 = vld [vmem:[%s5011_s27 + $0x88] sm:$0xf]  ;;  %v3333_v58 = vshrl.u32 %v6009_v3, 16  ;;  %v3318_v5 = vsel %vm5023_vm3, %v3313_v11, %v3317_v4  ;;  %v6035_v53 = vrot.slane %v3329_v44, 5 }
 0x1f0   : > { %v2999_v17 = vadd.f32 %v2919_v40, %v2712_v15  ;;  %v2482_v9 = vrot.slane %v4935_v63, 5  ;;  %v3483_v15 = vunpack.c.l.b16 %v3308_v29  ;;  %v3815_v40 = vsel %vm5197_vm7, %v4808_v55, %v3814_v8  ;;  %v4936_v8 = vld [vmem:[%s5011_s27 + $0x8c] sm:$0x1] }
 0x1f1   : > { %4775 = vmatmul.msk.bf16.gmra.mxu3 %vm658_vm4, %v3505_v34  ;;  %v2485_v4 = vrot.slane %v4936_v8, 5  ;;  %v3335_v1 = vrot.slane %v3333_v58, 4  ;;  %v3484_v49 = vunpack.c.l.b16 %v3318_v5  ;;  %v3881_v25 = vunpack.c.l.b16 %v3815_v40  ;;  %v4751_v8 = vld [vmem:[%s5011_s27 + $0x9c] sm:$0xf] }
 0x1f2   : > { %v2484_v11 = vrot.slane %v2482_v9, 4  ;;  %v3326_v44 = vor.u32 %v3325_v61, %v3322_v7 }
 0x1f3   : > { %v3971_v35 = vpop.f32.mrf.mxu0  ;;  %v3506_v40 = vpack.c.b16 %v3484_v49, %v3483_v15  ;;  %v3347_v49 = vshll.u32 %v4751_v8, 16 }
 0x1f4   : > { %v3573_v50 = vpop.f32.mrf.mxu3  ;;  %v2637_v43 = vpop.f32.mrf.mxu1 }
 0x1f5   : > { %v3653_v34 = vadd.f32 %v3573_v50, %v2999_v17  ;;  %v4582_v17 = vrot.slane %v4566_v60, 9  ;;  %v4956_v50 = vmov 0.0   ;;  %v3336_v60 = vor.u32 %v3335_v1, %v6035_v53 }
 0x1f6   : > { %4824 = vmatmul.msk.bf16.gmra.mxu0 %vm658_vm4, %v3903_v39  ;;  %v4876_v39 = vld [vmem:[%s5011_s27 + $0x84] sm:$0xff] }
 0x1f7   : > { %v4051_v62 = vadd.f32 %v3971_v35, %v3653_v34  ;;  %v2921_v23 = vpop.f32.mrf.mxu2  ;;  %4598 = vmatmul.msk.bf16.gmra.mxu1 %vm658_vm4, %v2565_v19  ;;  %v3818_v35 = vsel %vm5197_vm7, %v3816_v54, %v3817_v52  ;;  %v6048_v19 = vld [vmem:[%s5011_s27 + $0x98] sm:$0x1]  ;;  %v2483_v54 = vsel %vm5197_vm7, %v4582_v17, %v2482_v9  ;;  %v2486_v52 = vsel %vm5197_vm7, %v2484_v11, %v2485_v4 }
 0x1f8   : > { %v3000_v55 = vadd.f32 %v2921_v23, %v2713_v10  ;;  %v3882_v58 = vunpack.c.l.b16 %v3818_v35  ;;  %v3339_v7 = vshll.u32 %v6048_v19, 16  ;;  %v2714_v10 = vadd.f32 %v2637_v43, %v5502_v16 }
 0x1f9   : > { %v4087_v59 = vadd.f32 %v6021_v56, %v4051_v62  ;;  %v2544_v61 = vunpack.c.l.b16 %v2483_v54  ;;  %v3327_v17 = vrot.slane %v3326_v44, 4  ;;  %v3337_v11 = vrot.slane %v3336_v60, 4 }
 0x1fa   : > { %v3904_v9 = vpack.c.b16 %v3882_v58, %v3881_v25  ;;  %v3341_v1 = vrot.slane %v3339_v7, 5  ;;  %v3821_v16 = vrot.slane %v6009_v3, 5  ;;  %v3344_v43 = vshrl.u32 %v4751_v8, 16  ;;  %v4937_v3 = vld [vmem:[%s5011_s27 + $0x94] sm:$0xf] }
 0x1fb   : > { %4120 = vst.msk [vmem:[%s6040_s15] sm:$0xff] %vm4119_vm8, %v4087_v59  ;;  %v3973_v29 = vpop.f32.mrf.mxu0  ;;  %v6065_v59 = vld [vmem:[%s5011_s27 + $0xa0] sm:$0xf]  ;;  %v2489_v60 = vrot.slane %v4937_v3, 5 }
 0x1fc   : > { %4153 = vst.msk [vmem:[%s6040_s15] sm:$0xff] %vm4152_vm9, %v4956_v50  ;;  %v3575_v63 = vpop.f32.mrf.mxu3  ;;  %4711 = vmatmul.msk.bf16.gmra.mxu2 %vm658_vm4, %v4876_v39  ;;  %v2639_v34 = vpop.f32.mrf.mxu1  ;;  %v2545_v39 = vunpack.c.l.b16 %v2486_v52  ;;  %v3353_v35 = vshll.u32 %v6065_v59, 16  ;;  %v3824_v52 = vrot.slane %v6048_v19, 5  ;;  %v3342_v7 = vsel %vm5023_vm3, %v3337_v11, %v3341_v1 }
 0x1fd   : > { %v3654_v5 = vadd.f32 %v3575_v63, %v3000_v55  ;;  %v4793_v55 = vld [vmem:[%s5011_s27 + $0x90] sm:$0xe] }
 0x1fe   : > { %v2566_v44 = vpack.c.b16 %v2545_v39, %v2544_v61  ;;  %v4809_v54 = vrot.slane %v4793_v55, 9  ;;  %v3349_v61 = vrot.slane %v3347_v49, 5  ;;  %v6087_v19 = vrot.slane %v3353_v35, 5 }
 0x1ff   : > { %v4052_v62 = vadd.f32 %v3973_v29, %v3654_v5  ;;  %v2924_v23 = vpop.f32.mrf.mxu2  ;;  %v3357_v29 = vshrl.u32 %v6065_v59, 16  ;;  %v2491_v55 = vrot.slane %v2489_v60, 4 }
 0x200   : > { %v3001_v15 = vadd.f32 %v2924_v23, %v2714_v10  ;;  %v4567_v10 = vld [vmem:[%s5011_s27 + $0x90] sm:$0xe]  ;;  %v3346_v23 = vrot.slane %v3344_v43, 4 }
 0x201   : > { %v4088_v4 = vadd.f32 %v6021_v56, %v4052_v62  ;;  %4776 = vmatmul.msk.bf16.gmra.mxu3 %vm658_vm4, %v3506_v40  ;;  %v3332_v40 = vsel %vm5023_vm3, %v3327_v17, %v6035_v53  ;;  %v3823_v62 = vrot.slane %v3821_v16, 4  ;;  %v3359_v39 = vrot.slane %v3357_v29, 4  ;;  %v6092_v53 = vld [vmem:[%s5011_s27 + $0xa4] sm:$0x1]  ;;  %v4877_v17 = vld [vmem:[%s5011_s27 + $0x90] sm:$0xff] }
 0x202   : > { %v3485_v11 = vunpack.c.l.b16 %v3332_v40  ;;  %v4583_v1 = vrot.slane %v4567_v10, 9  ;;  %v3486_v29 = vunpack.c.l.b16 %v3342_v7 }
 0x203   : > { %4121 = vst.msk [vmem:[%s6040_s15 + $0x8] sm:$0xff] %vm4119_vm8, %v4088_v4  ;;  %v3976_v25 = vpop.f32.mrf.mxu0  ;;  %v2715_v4 = vadd.f32 %v2639_v34, %v5515_v13  ;;  %v3822_v13 = vsel %vm5197_vm7, %v4809_v54, %v3821_v16  ;;  %v3825_v34 = vsel %vm5197_vm7, %v3823_v62, %v3824_v52 }
 0x204   : > { %4154 = vst.msk [vmem:[%s6040_s15 + $0x8] sm:$0xff] %vm4152_vm9, %v4956_v50  ;;  %v3578_v63 = vpop.f32.mrf.mxu3  ;;  %v2642_v58 = vpop.f32.mrf.mxu1  ;;  %v2490_v16 = vsel %vm5197_vm7, %v4583_v1, %v2489_v60  ;;  %v3507_v7 = vpack.c.b16 %v3486_v29, %v3485_v11  ;;  %v3883_v62 = vunpack.c.l.b16 %v3822_v13  ;;  %v3884_v10 = vunpack.c.l.b16 %v3825_v34 }
 0x205   : > { %v3655_v5 = vadd.f32 %v3578_v63, %v3001_v15  ;;  %v3363_v63 = vshll.u32 %v6092_v53, 16  ;;  %v2546_v60 = vunpack.c.l.b16 %v2490_v16 }
 0x206   : > { %4825 = vmatmul.msk.bf16.gmra.mxu0 %vm658_vm4, %v3904_v9  ;;  %v4938_v9 = vld [vmem:[%s5011_s27 + $0x98] sm:$0x1] }
 0x207   : > { %v4053_v8 = vadd.f32 %v3976_v25, %v3655_v5  ;;  %v2926_v15 = vpop.f32.mrf.mxu2  ;;  %4599 = vmatmul.msk.bf16.gmra.mxu1 %vm658_vm4, %v2566_v44  ;;  %v2492_v43 = vrot.slane %v4938_v9, 5  ;;  %v3350_v25 = vor.u32 %v3349_v61, %v3346_v23  ;;  %v3360_v44 = vor.u32 %v3359_v39, %v6087_v19  ;;  %v4794_v9 = vld [vmem:[%s5011_s27 + $0x9c] sm:$0xe] }
 0x208   : > { %v3002_v35 = vadd.f32 %v2926_v15, %v2715_v4  ;;  %v3365_v39 = vrot.slane %v3363_v63, 5  ;;  %v2716_v15 = vadd.f32 %v2642_v58, %v5528_v20  ;;  %v4810_v58 = vrot.slane %v4794_v9, 9 }
 0x209   : > { %v4089_v49 = vadd.f32 %v6021_v56, %v4053_v8  ;;  %v2493_v54 = vsel %vm5197_vm7, %v2491_v55, %v2492_v43  ;;  %v3351_v23 = vrot.slane %v3350_v25, 4  ;;  %v3361_v61 = vrot.slane %v3360_v44, 4  ;;  %v4754_v55 = vld [vmem:[%s5011_s27 + $0xa8] sm:$0xf] }
 0x20a   : > { %v3828_v8 = vrot.slane %v6065_v59, 5  ;;  %v2547_v1 = vunpack.c.l.b16 %v2493_v54  ;;  %v3831_v25 = vrot.slane %v6092_v53, 5  ;;  %v3368_v44 = vshrl.u32 %v4754_v55, 16 }
 0x20b   : > { %4122 = vst.msk [vmem:[%s6040_s15 + $0x10] sm:$0xff] %vm4119_vm8, %v4089_v49  ;;  %v3978_v3 = vpop.f32.mrf.mxu0  ;;  %v3905_v49 = vpack.c.b16 %v3884_v10, %v3883_v62  ;;  %v3356_v59 = vsel %vm5023_vm3, %v3351_v23, %v6087_v19  ;;  %v3366_v20 = vsel %vm5023_vm3, %v3361_v61, %v3365_v39  ;;  %v3371_v16 = vshll.u32 %v4754_v55, 16  ;;  %v4940_v55 = vld [vmem:[%s5011_s27 + $0xa4] sm:$0x1] }
 0x20c   : > { %4155 = vst.msk [vmem:[%s6040_s15 + $0x10] sm:$0xff] %vm4152_vm9, %v4956_v50  ;;  %v3580_v5 = vpop.f32.mrf.mxu3  ;;  %4712 = vmatmul.msk.bf16.gmra.mxu2 %vm658_vm4, %v4877_v17  ;;  %v2644_v40 = vpop.f32.mrf.mxu1  ;;  %v2567_v13 = vpack.c.b16 %v2547_v1, %v2546_v60  ;;  %v3830_v34 = vrot.slane %v3828_v8, 4  ;;  %v3487_v53 = vunpack.c.l.b16 %v3356_v59  ;;  %v3488_v10 = vunpack.c.l.b16 %v3366_v20  ;;  %v4878_v60 = vld [vmem:[%s5011_s27 + $0x9c] sm:$0xff] }
 0x20d   : > { %v3656_v52 = vadd.f32 %v3580_v5, %v3002_v35  ;;  %v6125_v35 = vld [vmem:[%s5011_s27 + $0xac] sm:$0xf]  ;;  %v3829_v23 = vsel %vm5197_vm7, %v4810_v58, %v3828_v8  ;;  %v2717_v39 = vadd.f32 %v2644_v40, %v5541_v38  ;;  %v6150_v40 = vld [vmem:[%s5011_s27 + $0xb0] sm:$0x1] }
 0x20e   : > { %v3381_v62 = vshrl.u32 %v6125_v35, 16  ;;  %v3885_v58 = vunpack.c.l.b16 %v3829_v23 }
 0x20f   : > { %v4054_v4 = vadd.f32 %v3978_v3, %v3656_v52  ;;  %v2929_v17 = vpop.f32.mrf.mxu2  ;;  %v4939_v3 = vld [vmem:[%s5011_s27 + $0xa0] sm:$0xf]  ;;  %v4568_v52 = vld [vmem:[%s5011_s27 + $0x9c] sm:$0xe] }
 0x210   : > { %v3003_v43 = vadd.f32 %v2929_v17, %v2716_v15  ;;  %v2496_v5 = vrot.slane %v4939_v3, 5  ;;  %v3832_v15 = vsel %vm5197_vm7, %v3830_v34, %v3831_v25  ;;  %v3370_v17 = vrot.slane %v3368_v44, 4 }
 0x211   : > { %v4090_v11 = vadd.f32 %v6021_v56, %v4054_v4  ;;  %4777 = vmatmul.msk.bf16.gmra.mxu3 %vm658_vm4, %v3507_v7  ;;  %v3377_v7 = vshll.u32 %v6125_v35, 16  ;;  %v4584_v1 = vrot.slane %v4568_v52, 9  ;;  %v3383_v38 = vrot.slane %v3381_v62, 4 }
 0x212   : > { %v2498_v9 = vrot.slane %v2496_v5, 4  ;;  %v3387_v52 = vshll.u32 %v6150_v40, 16 }
 0x213   : > { %4123 = vst.msk [vmem:[%s6040_s15 + $0x18] sm:$0xff] %vm4119_vm8, %v4090_v11  ;;  %v3981_v29 = vpop.f32.mrf.mxu0  ;;  %v2499_v11 = vrot.slane %v4940_v55, 5  ;;  %v6147_v59 = vrot.slane %v3377_v7, 5  ;;  %v2497_v25 = vsel %vm5197_vm7, %v4584_v1, %v2496_v5  ;;  %v6167_v5 = vld [vmem:[%s5011_s27 + $0xb8] sm:$0xf] }
 0x214   : > { %4156 = vst.msk [vmem:[%s6040_s15 + $0x18] sm:$0xff] %vm4152_vm9, %v4956_v50  ;;  %v3583_v63 = vpop.f32.mrf.mxu3  ;;  %v2647_v19 = vpop.f32.mrf.mxu1  ;;  %v3389_v1 = vrot.slane %v3387_v52, 5  ;;  %v3401_v55 = vshll.u32 %v6167_v5, 16 }
 0x215   : > { %v3657_v54 = vadd.f32 %v3583_v63, %v3003_v43  ;;  %v3373_v43 = vrot.slane %v3371_v16, 5  ;;  %v2500_v44 = vsel %vm5197_vm7, %v2498_v9, %v2499_v11  ;;  %v3508_v16 = vpack.c.b16 %v3488_v10, %v3487_v53  ;;  %v4795_v9 = vld [vmem:[%s5011_s27 + $0xa8] sm:$0xe] }
 0x216   : > { %4826 = vmatmul.msk.bf16.gmra.mxu0 %vm658_vm4, %v3905_v49  ;;  %v2718_v62 = vadd.f32 %v2647_v19, %v5553_v41  ;;  %v3405_v11 = vshrl.u32 %v6167_v5, 16 }
 0x217   : > { %v4055_v61 = vadd.f32 %v3981_v29, %v3657_v54  ;;  %v2931_v4 = vpop.f32.mrf.mxu2  ;;  %4600 = vmatmul.msk.bf16.gmra.mxu1 %vm658_vm4, %v2567_v13  ;;  %v3886_v13 = vunpack.c.l.b16 %v3832_v15  ;;  %v3374_v63 = vor.u32 %v3373_v43, %v3370_v17  ;;  %v3384_v54 = vor.u32 %v3383_v38, %v6147_v59 }
 0x218   : > { %v3004_v49 = vadd.f32 %v2931_v4, %v2717_v39  ;;  %v2549_v39 = vunpack.c.l.b16 %v2500_v44  ;;  %v4757_v4 = vld [vmem:[%s5011_s27 + $0xb4] sm:$0xf]  ;;  %v3407_v52 = vrot.slane %v3405_v11, 4 }
 0x219   : > { %v4091_v8 = vadd.f32 %v6021_v56, %v4055_v61  ;;  %v2548_v61 = vunpack.c.l.b16 %v2497_v25  ;;  %v3906_v15 = vpack.c.b16 %v3886_v13, %v3885_v58  ;;  %v3375_v17 = vrot.slane %v3374_v63, 4  ;;  %v4941_v58 = vld [vmem:[%s5011_s27 + $0xac] sm:$0xf] }
 0x21a   : > { %v3392_v41 = vshrl.u32 %v4757_v4, 16  ;;  %v3395_v19 = vshll.u32 %v4757_v4, 16  ;;  %v4811_v63 = vrot.slane %v4795_v9, 9  ;;  %v4879_v4 = vld [vmem:[%s5011_s27 + $0xa8] sm:$0xff] }
 0x21b   : > { %4124 = vst.msk [vmem:[%s6040_s15 + $0x20] sm:$0xff] %vm4119_vm8, %v4091_v8  ;;  %v3983_v20 = vpop.f32.mrf.mxu0  ;;  %v2568_v8 = vpack.c.b16 %v2549_v39, %v2548_v61  ;;  %v3380_v25 = vsel %vm5023_vm3, %v3375_v17, %v6147_v59  ;;  %v3838_v61 = vrot.slane %v6150_v40, 5  ;;  %v6194_v39 = vld [vmem:[%s5011_s27 + $0xbc] sm:$0x1] }
 0x21c   : > { %4157 = vst.msk [vmem:[%s6040_s15 + $0x20] sm:$0xff] %vm4152_vm9, %v4956_v50  ;;  %v3585_v29 = vpop.f32.mrf.mxu3  ;;  %4713 = vmatmul.msk.bf16.gmra.mxu2 %vm658_vm4, %v4878_v60  ;;  %v2649_v34 = vpop.f32.mrf.mxu1  ;;  %v3385_v60 = vrot.slane %v3384_v54, 4  ;;  %v6188_v54 = vrot.slane %v3401_v55, 5  ;;  %v3489_v9 = vunpack.c.l.b16 %v3380_v25  ;;  %v3411_v40 = vshll.u32 %v6194_v39, 16 }
 0x21d   : > { %v3658_v3 = vadd.f32 %v3585_v29, %v3004_v49  ;;  %v3835_v49 = vrot.slane %v6125_v35, 5  ;;  %v2503_v29 = vrot.slane %v4941_v58, 5  ;;  %v3394_v35 = vrot.slane %v3392_v41, 4 }
 0x21e   : > { %v3390_v44 = vsel %vm5023_vm3, %v3385_v60, %v3389_v1 }
 0x21f   : > { %v4056_v7 = vadd.f32 %v3983_v20, %v3658_v3  ;;  %v2934_v23 = vpop.f32.mrf.mxu2  ;;  %v4569_v3 = vld [vmem:[%s5011_s27 + $0xa8] sm:$0xe]  ;;  %v3837_v59 = vrot.slane %v3835_v49, 4  ;;  %v2505_v17 = vrot.slane %v2503_v29, 4 }
 0x220   : > { %v3005_v10 = vadd.f32 %v2934_v23, %v2718_v62  ;;  %v2719_v62 = vadd.f32 %v2649_v34, %v5566_v31  ;;  %v3490_v31 = vunpack.c.l.b16 %v3390_v44  ;;  %v3836_v34 = vsel %vm5197_vm7, %v4811_v63, %v3835_v49 }
 0x221   : > { %v4092_v53 = vadd.f32 %v6021_v56, %v4056_v7  ;;  %4778 = vmatmul.msk.bf16.gmra.mxu3 %vm658_vm4, %v3508_v16  ;;  %v3397_v16 = vrot.slane %v3395_v19, 5  ;;  %v3408_v19 = vor.u32 %v3407_v52, %v6188_v54  ;;  %v3839_v11 = vsel %vm5197_vm7, %v3837_v59, %v3838_v61 }
 0x222   : > { %v3887_v25 = vunpack.c.l.b16 %v3836_v34  ;;  %v3888_v44 = vunpack.c.l.b16 %v3839_v11 }
 0x223   : > { %4125 = vst.msk [vmem:[%s6040_s15 + $0x28] sm:$0xff] %vm4119_vm8, %v4092_v53  ;;  %v3986_v43 = vpop.f32.mrf.mxu0  ;;  %v4942_v53 = vld [vmem:[%s5011_s27 + $0xb0] sm:$0x1]  ;;  %v3398_v41 = vor.u32 %v3397_v16, %v3394_v35  ;;  %v3413_v35 = vrot.slane %v3411_v40, 5  ;;  %v4570_v40 = vld [vmem:[%s5011_s27 + $0xb4] sm:$0xe] }
 0x224   : > { %4158 = vst.msk [vmem:[%s6040_s15 + $0x28] sm:$0xff] %vm4152_vm9, %v4956_v50  ;;  %v3588_v38 = vpop.f32.mrf.mxu3  ;;  %v2652_v20 = vpop.f32.mrf.mxu1 }
 0x225   : > { %v3659_v13 = vadd.f32 %v3588_v38, %v3005_v10  ;;  %v2506_v10 = vrot.slane %v4942_v53, 5  ;;  %v3399_v63 = vrot.slane %v3398_v41, 4  ;;  %v2720_v52 = vadd.f32 %v2652_v20, %v5580_v30 }
 0x226   : > { %4827 = vmatmul.msk.bf16.gmra.mxu0 %vm658_vm4, %v3906_v15  ;;  %v4585_v15 = vrot.slane %v4569_v3, 9  ;;  %v3409_v3 = vrot.slane %v3408_v19, 4 }
 0x227   : > { %v4057_v7 = vadd.f32 %v3986_v43, %v3659_v13  ;;  %v2936_v23 = vpop.f32.mrf.mxu2  ;;  %4601 = vmatmul.msk.bf16.gmra.mxu1 %vm658_vm4, %v2568_v8  ;;  %v2507_v38 = vsel %vm5197_vm7, %v2505_v17, %v2506_v10  ;;  %v3509_v13 = vpack.c.b16 %v3490_v31, %v3489_v9  ;;  %v6221_v17 = vld [vmem:[%s5011_s27 + $0xc4] sm:$0xf]  ;;  %v3404_v53 = vsel %vm5023_vm3, %v3399_v63, %v6188_v54  ;;  %v4943_v31 = vld [vmem:[%s5011_s27 + $0xb8] sm:$0xf] }
 0x228   : > { %v3006_v1 = vadd.f32 %v2936_v23, %v2719_v62  ;;  %v2504_v49 = vsel %vm5197_vm7, %v4585_v15, %v2503_v29  ;;  %v2551_v29 = vunpack.c.l.b16 %v2507_v38  ;;  %v4760_v23 = vld [vmem:[%s5011_s27 + $0xc0] sm:$0xf]  ;;  %v3842_v15 = vrot.slane %v6167_v5, 5 }
 0x229   : > { %v4093_v60 = vadd.f32 %v6021_v56, %v4057_v7  ;;  %v2550_v62 = vunpack.c.l.b16 %v2504_v49  ;;  %v3414_v10 = vsel %vm5023_vm3, %v3409_v3, %v3413_v35  ;;  %v2510_v34 = vrot.slane %v4943_v31, 5  ;;  %v4880_v3 = vld [vmem:[%s5011_s27 + $0xb4] sm:$0xff] }
 0x22a   : > { %v3419_v41 = vshll.u32 %v4760_v23, 16  ;;  %v3429_v54 = vshrl.u32 %v6221_v17, 16  ;;  %v3491_v11 = vunpack.c.l.b16 %v3404_v53  ;;  %v3844_v38 = vrot.slane %v3842_v15, 4 }
 0x22b   : > { %4126 = vst.msk [vmem:[%s6040_s15 + $0x30] sm:$0xff] %vm4119_vm8, %v4093_v60  ;;  %v3988_v55 = vpop.f32.mrf.mxu0  ;;  %v2569_v20 = vpack.c.b16 %v2551_v29, %v2550_v62  ;;  %v4796_v60 = vld [vmem:[%s5011_s27 + $0xb4] sm:$0xe]  ;;  %v4586_v35 = vrot.slane %v4570_v40, 9 }
 0x22c   : > { %4159 = vst.msk [vmem:[%s6040_s15 + $0x30] sm:$0xff] %vm4152_vm9, %v4956_v50  ;;  %v3590_v43 = vpop.f32.mrf.mxu3  ;;  %4714 = vmatmul.msk.bf16.gmra.mxu2 %vm658_vm4, %v4879_v4  ;;  %v2654_v8 = vpop.f32.mrf.mxu1  ;;  %v3907_v4 = vpack.c.b16 %v3888_v44, %v3887_v25  ;;  %v4812_v49 = vrot.slane %v4796_v60, 9  ;;  %v3845_v44 = vrot.slane %v6194_v39, 5  ;;  %v3421_v62 = vrot.slane %v3419_v41, 5 }
 0x22d   : > { %v3660_v58 = vadd.f32 %v3590_v43, %v3006_v1  ;;  %v3416_v1 = vshrl.u32 %v4760_v23, 16  ;;  %v3492_v43 = vunpack.c.l.b16 %v3414_v10  ;;  %v2511_v53 = vsel %vm5197_vm7, %v4586_v35, %v2510_v34  ;;  %v6272_v35 = vld [vmem:[%s5011_s27 + $0xd0] sm:$0xf] }
 0x22e   : > { %v3843_v39 = vsel %vm5197_vm7, %v4812_v49, %v3842_v15 }
 0x22f   : > { %v4058_v16 = vadd.f32 %v3988_v55, %v3660_v58  ;;  %v2939_v7 = vpop.f32.mrf.mxu2  ;;  %v3425_v55 = vshll.u32 %v6221_v17, 16  ;;  %v3418_v63 = vrot.slane %v3416_v1, 4  ;;  %v3889_v41 = vunpack.c.l.b16 %v3843_v39 }
 0x230   : > { %v3007_v61 = vadd.f32 %v2939_v7, %v2720_v52  ;;  %v4944_v52 = vld [vmem:[%s5011_s27 + $0xbc] sm:$0x1] }
 0x231   : > { %v4094_v59 = vadd.f32 %v6021_v56, %v4058_v16  ;;  %4779 = vmatmul.msk.bf16.gmra.mxu3 %vm658_vm4, %v3509_v13  ;;  %v2721_v13 = vadd.f32 %v2654_v8, %v5593_v48  ;;  %v2512_v16 = vrot.slane %v2510_v34, 4  ;;  %v2513_v7 = vrot.slane %v4944_v52, 5  ;;  %v6246_v48 = vld [vmem:[%s5011_s27 + $0xc8] sm:$0x1] }
 0x232   : > { %v3422_v60 = vor.u32 %v3421_v62, %v3418_v63  ;;  %v3435_v31 = vshll.u32 %v6246_v48, 16  ;;  %v2552_v34 = vunpack.c.l.b16 %v2511_v53  ;;  %v3849_v63 = vrot.slane %v6221_v17, 5  ;;  %v4571_v17 = vld [vmem:[%s5011_s27 + $0xc0] sm:$0xe] }
 0x233   : > { %4127 = vst.msk [vmem:[%s6040_s15 + $0x38] sm:$0xff] %vm4119_vm8, %v4094_v59  ;;  %v3991_v30 = vpop.f32.mrf.mxu0  ;;  %v3427_v59 = vrot.slane %v3425_v55, 5  ;;  %v2514_v10 = vsel %vm5197_vm7, %v2512_v16, %v2513_v7  ;;  %v4945_v7 = vld [vmem:[%s5011_s27 + $0xc4] sm:$0xf]  ;;  %v3453_v53 = vshrl.u32 %v6272_v35, 16 }
 0x234   : > { %4160 = vst.msk [vmem:[%s6040_s15 + $0x38] sm:$0xff] %vm4152_vm9, %v4956_v50  ;;  %v3593_v5 = vpop.f32.mrf.mxu3  ;;  %v2657_v9 = vpop.f32.mrf.mxu1  ;;  %v2553_v49 = vunpack.c.l.b16 %v2514_v10  ;;  %v2517_v62 = vrot.slane %v4945_v7, 5 }
 0x235   : > { %v3661_v19 = vadd.f32 %v3593_v5, %v3007_v61  ;;  %v3431_v61 = vrot.slane %v3429_v54, 4  ;;  %v3510_v5 = vpack.c.b16 %v3492_v43, %v3491_v11  ;;  %v2722_v55 = vadd.f32 %v2657_v9, %v5609_v14 }
 0x236   : > { %4828 = vmatmul.msk.bf16.gmra.mxu0 %vm658_vm4, %v3907_v4  ;;  %v3846_v4 = vsel %vm5197_vm7, %v3844_v38, %v3845_v44  ;;  %v3423_v38 = vrot.slane %v3422_v60, 4  ;;  %v4797_v44 = vld [vmem:[%s5011_s27 + $0xc0] sm:$0xe]  ;;  %v2570_v9 = vpack.c.b16 %v2553_v49, %v2552_v34 }
 0x237   : > { %v4059_v58 = vadd.f32 %v3991_v30, %v3661_v19  ;;  %v2941_v25 = vpop.f32.mrf.mxu2  ;;  %4602 = vmatmul.msk.bf16.gmra.mxu1 %vm658_vm4, %v2569_v20  ;;  %v3432_v15 = vor.u32 %v3431_v61, %v3427_v59  ;;  %v3890_v19 = vunpack.c.l.b16 %v3846_v4 }
 0x238   : > { %v3008_v23 = vadd.f32 %v2941_v25, %v2721_v13  ;;  %v3437_v13 = vrot.slane %v3435_v31, 5 }
 0x239   : > { %v4095_v29 = vadd.f32 %v6021_v56, %v4059_v58  ;;  %v3433_v43 = vrot.slane %v3432_v15, 4  ;;  %v3908_v25 = vpack.c.b16 %v3890_v19, %v3889_v41  ;;  %v4881_v15 = vld [vmem:[%s5011_s27 + $0xc0] sm:$0xff]  ;;  %v4587_v41 = vrot.slane %v4571_v17, 9 }
 0x23a   : > { %v2519_v19 = vrot.slane %v2517_v62, 4  ;;  %v6488_v17 = vld [vmem:[#allocation2_spill] sm:$0xff] }
 0x23b   : > { %4128 = vst.msk [vmem:[%s6040_s15 + $0x40] sm:$0xff] %vm4119_vm8, %v4095_v29  ;;  %v3993_v8 = vpop.f32.mrf.mxu0  ;;  %v3438_v61 = vsel %vm5023_vm3, %v3433_v43, %v3437_v13  ;;  %v4765_v13 = vld [vmem:[%s5011_s27 + $0xd4] sm:$0x1] }
 0x23c   : > { %4161 = vst.msk [vmem:[%s6040_s15 + $0x40] sm:$0xff] %vm4152_vm9, %v4956_v50  ;;  %v3595_v30 = vpop.f32.mrf.mxu3  ;;  %4715 = vmatmul.msk.bf16.gmra.mxu2 %vm658_vm4, %v4880_v3  ;;  %v2659_v20 = vpop.f32.mrf.mxu1  ;;  %v4763_v3 = vld [vmem:[%s5011_s27 + $0xcc] sm:$0xf]  ;;  %v3494_v49 = vunpack.c.l.b16 %v3438_v61  ;;  %v3459_v61 = vshll.u32 %v4765_v13, 16 }
 0x23d   : > { %v3662_v1 = vadd.f32 %v3595_v30, %v3008_v23  ;;  %v3428_v23 = vsel %vm5023_vm3, %v3423_v38, %v3427_v59  ;;  %v3440_v39 = vshrl.u32 %v4763_v3, 16  ;;  %v3443_v4 = vshll.u32 %v4763_v3, 16 }
 0x23e   : > { %v3449_v30 = vshll.u32 %v6272_v35, 16  ;;  %v2723_v60 = vadd.f32 %v2659_v20, %v5634_v51  ;;  %v3851_v59 = vrot.slane %v3849_v63, 4  ;;  %v3493_v31 = vunpack.c.l.b16 %v3428_v23 }
 0x23f   : > { %v4060_v40 = vadd.f32 %v3993_v8, %v3662_v1  ;;  %v2944_v54 = vpop.f32.mrf.mxu2  ;;  %v4813_v8 = vrot.slane %v4797_v44, 9  ;;  %v3442_v20 = vrot.slane %v3440_v39, 4  ;;  %v3445_v38 = vrot.slane %v3443_v4, 5 }
 0x240   : > { %v3009_v11 = vadd.f32 %v2944_v54, %v2722_v55  ;;  %v3511_v3 = vpack.c.b16 %v3494_v49, %v3493_v31 }
 0x241   : > { %v4096_v58 = vadd.f32 %v6021_v56, %v4060_v40  ;;  %4780 = vmatmul.msk.bf16.gmra.mxu3 %vm658_vm4, %v3510_v5  ;;  %v3852_v5 = vrot.slane %v6246_v48, 5  ;;  %v4946_v40 = vld [vmem:[%s5011_s27 + $0xc8] sm:$0x1]  ;;  %v3850_v51 = vsel %vm5197_vm7, %v4813_v8, %v3849_v63 }
 0x242   : > { %v2520_v55 = vrot.slane %v4946_v40, 5 }
 0x243   : > { %4129 = vst.msk [vmem:[%s6040_s15 + $0x48] sm:$0xff] %vm4119_vm8, %v4096_v58  ;;  %v3996_v14 = vpop.f32.mrf.mxu0  ;;  %v3451_v58 = vrot.slane %v3449_v30, 5  ;;  %v3853_v43 = vsel %vm5197_vm7, %v3851_v59, %v3852_v5  ;;  %v3461_v5 = vrot.slane %v3459_v61, 5 }
 0x244   : > { %4162 = vst.msk [vmem:[%s6040_s15 + $0x48] sm:$0xff] %vm4152_vm9, %v4956_v50  ;;  %v3598_v16 = vpop.f32.mrf.mxu3  ;;  %v2662_v52 = vpop.f32.mrf.mxu1  ;;  %v3892_v7 = vunpack.c.l.b16 %v3853_v43  ;;  %v4882_v43 = vld [vmem:[%s5011_s27 + $0xcc] sm:$0xff] }
 0x245   : > { %v3663_v29 = vadd.f32 %v3598_v16, %v3009_v11  ;;  %v3455_v11 = vrot.slane %v3453_v53, 4  ;;  %v3891_v16 = vunpack.c.l.b16 %v3850_v51  ;;  %v2724_v39 = vadd.f32 %v2662_v52, %v6488_v17 }
 0x246   : > { %4829 = vmatmul.msk.bf16.gmra.mxu0 %vm658_vm4, %v3908_v25  ;;  %v3856_v52 = vrot.slane %v6272_v35, 5 }
 0x247   : > { %v4061_v10 = vadd.f32 %v3996_v14, %v3663_v29  ;;  %v2946_v1 = vpop.f32.mrf.mxu2  ;;  %4603 = vmatmul.msk.bf16.gmra.mxu1 %vm658_vm4, %v2570_v9  ;;  %v2518_v14 = vsel %vm5197_vm7, %v4587_v41, %v2517_v62  ;;  %v2521_v9 = vsel %vm5197_vm7, %v2519_v19, %v2520_v55  ;;  %v3446_v29 = vor.u32 %v3445_v38, %v3442_v20  ;;  %v4798_v41 = vld [vmem:[%s5011_s27 + $0xcc] sm:$0xe] }
 0x248   : > { %v3010_v34 = vadd.f32 %v2946_v1, %v2723_v60  ;;  %v3456_v23 = vor.u32 %v3455_v11, %v3451_v58  ;;  %v2554_v30 = vunpack.c.l.b16 %v2518_v14  ;;  %v2555_v53 = vunpack.c.l.b16 %v2521_v9  ;;  %v6489_v20 = vld [vmem:[#allocation3_spill] sm:$0xff] }
 0x249   : > { %v4097_v54 = vadd.f32 %v6021_v56, %v4061_v10  ;;  %v3909_v60 = vpack.c.b16 %v3892_v7, %v3891_v16  ;;  %v3447_v1 = vrot.slane %v3446_v29, 4  ;;  %v4814_v49 = vrot.slane %v4798_v41, 9 }
 0x24a   : > { %v3457_v59 = vrot.slane %v3456_v23, 4  ;;  %v2571_v31 = vpack.c.b16 %v2555_v53, %v2554_v30  ;;  %v3858_v11 = vrot.slane %v3856_v52, 4 }
 0x24b   : > { %4130 = vst.msk [vmem:[%s6040_s15 + $0x50] sm:$0xff] %vm4119_vm8, %v4097_v54  ;;  %v3998_v48 = vpop.f32.mrf.mxu0  ;;  %v3452_v54 = vsel %vm5023_vm3, %v3447_v1, %v3451_v58  ;;  %v3857_v58 = vsel %vm5197_vm7, %v4814_v49, %v3856_v52 }
 0x24c   : > { %4163 = vst.msk [vmem:[%s6040_s15 + $0x50] sm:$0xff] %vm4152_vm9, %v4956_v50  ;;  %v3600_v25 = vpop.f32.mrf.mxu3  ;;  %4716 = vmatmul.msk.bf16.gmra.mxu2 %vm658_vm4, %v4881_v15  ;;  %v2664_v44 = vpop.f32.mrf.mxu1  ;;  %v3495_v9 = vunpack.c.l.b16 %v3452_v54  ;;  %v3893_v29 = vunpack.c.l.b16 %v3857_v58 }
 0x24d   : > { %v3664_v63 = vadd.f32 %v3600_v25, %v3010_v34  ;;  %v3462_v34 = vsel %vm5023_vm3, %v3457_v59, %v3461_v5  ;;  %v2725_v35 = vadd.f32 %v2664_v44, %v6489_v20 }
 0x24f   : > { %v4062_v8 = vadd.f32 %v3998_v48, %v3664_v63  ;;  %v2949_v4 = vpop.f32.mrf.mxu2  ;;  %v3859_v48 = vrot.slane %v4765_v13, 5  ;;  %v3496_v63 = vunpack.c.l.b16 %v3462_v34 }
 0x250   : > { %v3011_v10 = vadd.f32 %v2949_v4, %v2724_v39 }
 0x251   : > { %v4098_v62 = vadd.f32 %v6021_v56, %v4062_v8  ;;  %4781 = vmatmul.msk.bf16.gmra.mxu3 %vm658_vm4, %v3511_v3  ;;  %v3860_v44 = vsel %vm5197_vm7, %v3858_v11, %v3859_v48  ;;  %v3512_v7 = vpack.c.b16 %v3496_v63, %v3495_v9 }
 0x252   : > { %v3894_v23 = vunpack.c.l.b16 %v3860_v44 }
 0x253   : > { %4131 = vst.msk [vmem:[%s6040_s15 + $0x58] sm:$0xff] %vm4119_vm8, %v4098_v62  ;;  %v4001_v15 = vpop.f32.mrf.mxu0 }
 0x254   : > { %4164 = vst.msk [vmem:[%s6040_s15 + $0x58] sm:$0xff] %vm4152_vm9, %v4956_v50  ;;  %v3603_v19 = vpop.f32.mrf.mxu3  ;;  %v2667_v40 = vpop.f32.mrf.mxu1  ;;  %v3910_v4 = vpack.c.b16 %v3894_v23, %v3893_v29 }
 0x255   : > { %v3665_v55 = vadd.f32 %v3603_v19, %v3011_v10  ;;  %v2726_v8 = vadd.f32 %v2667_v40, %v5678_v6 }
 0x256   : > { %4830 = vmatmul.msk.bf16.gmra.mxu0 %vm658_vm4, %v3909_v60 }
 0x257   : > { %v4063_v51 = vadd.f32 %v4001_v15, %v3665_v55  ;;  %v2951_v38 = vpop.f32.mrf.mxu2  ;;  %4604 = vmatmul.msk.bf16.gmra.mxu1 %vm658_vm4, %v2571_v31 }
 0x258   : > { %v3012_v14 = vadd.f32 %v2951_v38, %v2725_v35 }
 0x259   : > { %v4099_v25 = vadd.f32 %v6021_v56, %v4063_v51 }
 0x25b   : > { %4132 = vst.msk [vmem:[%s6040_s15 + $0x60] sm:$0xff] %vm4119_vm8, %v4099_v25  ;;  %v4003_v36 = vpop.f32.mrf.mxu0 }
 0x25c   : > { %4165 = vst.msk [vmem:[%s6040_s15 + $0x60] sm:$0xff] %vm4152_vm9, %v4956_v50  ;;  %v3605_v13 = vpop.f32.mrf.mxu3  ;;  %4717 = vmatmul.msk.bf16.gmra.mxu2 %vm658_vm4, %v4882_v43  ;;  %v2669_v3 = vpop.f32.mrf.mxu1 }
 0x25d   : > { %v3666_v16 = vadd.f32 %v3605_v13, %v3012_v14  ;;  %v2727_v60 = vadd.f32 %v2669_v3, %v5697_v37 }
 0x25f   : > { %v4064_v61 = vadd.f32 %v4003_v36, %v3666_v16  ;;  %v2954_v17 = vpop.f32.mrf.mxu2 }
 0x260   : > { %v3013_v39 = vadd.f32 %v2954_v17, %v2726_v8 }
 0x261   : > { %v4100_v18 = vadd.f32 %v6021_v56, %v4064_v61  ;;  %4782 = vmatmul.msk.bf16.gmra.mxu3 %vm658_vm4, %v3512_v7 }
 0x263   : > { %4133 = vst.msk [vmem:[%s6040_s15 + $0x68] sm:$0xff] %vm4119_vm8, %v4100_v18  ;;  %v4006_v30 = vpop.f32.mrf.mxu0 }
 0x264   : > { %4166 = vst.msk [vmem:[%s6040_s15 + $0x68] sm:$0xff] %vm4152_vm9, %v4956_v50  ;;  %v3608_v53 = vpop.f32.mrf.mxu3  ;;  %v2672_v62 = vpop.f32.mrf.mxu1 }
 0x265   : > { %v3667_v10 = vadd.f32 %v3608_v53, %v3013_v39  ;;  %v2728_v40 = vadd.f32 %v2672_v62, %v5717_v42 }
 0x266   : > { %4831 = vmatmul.msk.bf16.gmra.mxu0 %vm658_vm4, %v3910_v4 }
 0x267   : > { %v4065_v6 = vadd.f32 %v4006_v30, %v3667_v10  ;;  %v2956_v1 = vpop.f32.mrf.mxu2 }
 0x268   : > { %v3014_v5 = vadd.f32 %v2956_v1, %v2727_v60 }
 0x269   : > { %v4101_v59 = vadd.f32 %v6021_v56, %v4065_v6 }
 0x26b   : > { %4134 = vst.msk [vmem:[%s6040_s15 + $0x70] sm:$0xff] %vm4119_vm8, %v4101_v59  ;;  %v4008_v15 = vpop.f32.mrf.mxu0 }
 0x26c   : > { %4167 = vst.msk [vmem:[%s6040_s15 + $0x70] sm:$0xff] %vm4152_vm9, %v4956_v50  ;;  %v3610_v31 = vpop.f32.mrf.mxu3  ;;  %v2674_v41 = vpop.f32.mrf.mxu1 }
 0x26d   : > { %v3668_v52 = vadd.f32 %v3610_v31, %v3014_v5  ;;  %v2729_v38 = vadd.f32 %v2674_v41, %v5736_v24 }
 0x26f   : > { %v4066_v19 = vadd.f32 %v4008_v15, %v3668_v52  ;;  %v2959_v55 = vpop.f32.mrf.mxu2 }
 0x270   : > { %v3015_v54 = vadd.f32 %v2959_v55, %v2728_v40 }
 0x271   : > { %v4102_v37 = vadd.f32 %v6021_v56, %v4066_v19 }
 0x273   : > { %4135 = vst.msk [vmem:[%s6040_s15 + $0x78] sm:$0xff] %vm4119_vm8, %v4102_v37  ;;  %v4011_v34 = vpop.f32.mrf.mxu0 }
 0x274   : > { %4168 = vst.msk [vmem:[%s6040_s15 + $0x78] sm:$0xff] %vm4152_vm9, %v4956_v50  ;;  %v3613_v49 = vpop.f32.mrf.mxu3  ;;  %v2677_v51 = vpop.f32.mrf.mxu1 }
 0x275   : > { %v3669_v20 = vadd.f32 %v3613_v49, %v3015_v54  ;;  %v2730_v36 = vadd.f32 %v2677_v51, %v5756_v12 }
 0x277   : > { %v4067_v35 = vadd.f32 %v4011_v34, %v3669_v20  ;;  %v2961_v11 = vpop.f32.mrf.mxu2 }
 0x278   : > { %v3016_v48 = vadd.f32 %v2961_v11, %v2729_v38 }
 0x279   : > { %v4103_v42 = vadd.f32 %v6021_v56, %v4067_v35 }
 0x27b   : > { %4136 = vst.msk [vmem:[%s6040_s15 + $0x80] sm:$0xff] %vm4119_vm8, %v4103_v42  ;;  %v4013_v43 = vpop.f32.mrf.mxu0 }
 0x27c   : > { %4169 = vst.msk [vmem:[%s6040_s15 + $0x80] sm:$0xff] %vm4152_vm9, %v4956_v50  ;;  %v3615_v25 = vpop.f32.mrf.mxu3  ;;  %v2679_v14 = vpop.f32.mrf.mxu1 }
 0x27d   : > { %v3670_v9 = vadd.f32 %v3615_v25, %v3016_v48  ;;  %v2731_v23 = vadd.f32 %v2679_v14, %v5775_v26 }
 0x27f   : > { %v4068_v63 = vadd.f32 %v4013_v43, %v3670_v9  ;;  %v2964_v58 = vpop.f32.mrf.mxu2 }
 0x280   : > { %v3017_v44 = vadd.f32 %v2964_v58, %v2730_v36 }
 0x281   : > { %v4104_v24 = vadd.f32 %v6021_v56, %v4068_v63 }
 0x283   : > { %4137 = vst.msk [vmem:[%s6040_s15 + $0x88] sm:$0xff] %vm4119_vm8, %v4104_v24  ;;  %v4016_v13 = vpop.f32.mrf.mxu0 }
 0x284   : > { %4170 = vst.msk [vmem:[%s6040_s15 + $0x88] sm:$0xff] %vm4152_vm9, %v4956_v50  ;;  %v3618_v3 = vpop.f32.mrf.mxu3  ;;  %v2682_v16 = vpop.f32.mrf.mxu1 }
 0x285   : > { %v3671_v7 = vadd.f32 %v3618_v3, %v3017_v44  ;;  %v2732_v53 = vadd.f32 %v2682_v16, %v5795_v0 }
 0x287   : > { %v4069_v29 = vadd.f32 %v4016_v13, %v3671_v7  ;;  %v2966_v61 = vpop.f32.mrf.mxu2 }
 0x288   : > { %v3018_v8 = vadd.f32 %v2966_v61, %v2731_v23 }
 0x289   : > { %v4105_v12 = vadd.f32 %v6021_v56, %v4069_v29  ;;  %v6384_v56 = vld [vmem:[%s6480_s2] ss:$0 sm:$0xff] }
 0x28b   : > { %4138 = vst.msk [vmem:[%s6040_s15 + $0x90] sm:$0xff] %vm4119_vm8, %v4105_v12  ;;  %v4018_v17 = vpop.f32.mrf.mxu0 }
 0x28c   : > { %4171 = vst.msk [vmem:[%s6040_s15 + $0x90] sm:$0xff] %vm4152_vm9, %v4956_v50  ;;  %v3620_v18 = vpop.f32.mrf.mxu3  ;;  %v2684_v39 = vpop.f32.mrf.mxu1 }
 0x28d   : > { %v3672_v4 = vadd.f32 %v3620_v18, %v3018_v8  ;;  %v2733_v5 = vadd.f32 %v2684_v39, %v5814_v32 }
 0x28f   : > { %v4070_v30 = vadd.f32 %v4018_v17, %v3672_v4  ;;  %v2969_v26 = vpop.f32.mrf.mxu2 }
 0x290   : > { %v3019_v10 = vadd.f32 %v2969_v26, %v2732_v53 }
 0x291   : > { %v4106_v62 = vadd.f32 %v6384_v56, %v4070_v30 }
 0x293   : > { %4139 = vst.msk [vmem:[%s6040_s15 + $0x98] sm:$0xff] %vm4119_vm8, %v4106_v62  ;;  %v4021_v6 = vpop.f32.mrf.mxu0 }
 0x294   : > { %4172 = vst.msk [vmem:[%s6040_s15 + $0x98] sm:$0xff] %vm4152_vm9, %v4956_v50  ;;  %v3623_v60 = vpop.f32.mrf.mxu3  ;;  %v2687_v1 = vpop.f32.mrf.mxu1 }
 0x295   : > { %v3673_v0 = vadd.f32 %v3623_v60, %v3019_v10  ;;  %v2734_v54 = vadd.f32 %v2687_v1, %v5834_v27 }
 0x297   : > { %v4071_v59 = vadd.f32 %v4021_v6, %v3673_v0  ;;  %v2971_v15 = vpop.f32.mrf.mxu2 }
 0x298   : > { %v3020_v41 = vadd.f32 %v2971_v15, %v2733_v5 }
 0x299   : > { %v4107_v31 = vadd.f32 %v6384_v56, %v4071_v59 }
 0x29b   : > { %4140 = vst.msk [vmem:[%s6040_s15 + $0xa0] sm:$0xff] %vm4119_vm8, %v4107_v31  ;;  %v4023_v52 = vpop.f32.mrf.mxu0 }
 0x29c   : > { %4173 = vst.msk [vmem:[%s6040_s15 + $0xa0] sm:$0xff] %vm4152_vm9, %v4956_v50  ;;  %v3625_v19 = vpop.f32.mrf.mxu3  ;;  %v2689_v40 = vpop.f32.mrf.mxu1 }
 0x29d   : > { %v3674_v55 = vadd.f32 %v3625_v19, %v3020_v41  ;;  %v2735_v42 = vadd.f32 %v2689_v40, %v5853_v45 }
 0x29f   : > { %v4072_v37 = vadd.f32 %v4023_v52, %v3674_v55  ;;  %v2974_v34 = vpop.f32.mrf.mxu2 }
 0x2a0   : > { %v3021_v49 = vadd.f32 %v2974_v34, %v2734_v54 }
 0x2a1   : > { %v4108_v32 = vadd.f32 %v6384_v56, %v4072_v37 }
 0x2a3   : > { %4141 = vst.msk [vmem:[%s6040_s15 + $0xa8] sm:$0xff] %vm4119_vm8, %v4108_v32  ;;  %v4026_v51 = vpop.f32.mrf.mxu0 }
 0x2a4   : > { %4174 = vst.msk [vmem:[%s6040_s15 + $0xa8] sm:$0xff] %vm4152_vm9, %v4956_v50  ;;  %v3628_v20 = vpop.f32.mrf.mxu3  ;;  %v2692_v35 = vpop.f32.mrf.mxu1 }
 0x2a5   : > { %v3675_v38 = vadd.f32 %v3628_v20, %v3021_v49  ;;  %v2736_v58 = vadd.f32 %v2692_v35, %v5873_v2 }
 0x2a7   : > { %v4073_v11 = vadd.f32 %v4026_v51, %v3675_v38  ;;  %v2976_v48 = vpop.f32.mrf.mxu2 }
 0x2a8   : > { %v3022_v43 = vadd.f32 %v2976_v48, %v2735_v42 }
 0x2a9   : > { %v4109_v27 = vadd.f32 %v6384_v56, %v4073_v11 }
 0x2ab   : > { %4142 = vst.msk [vmem:[%s6040_s15 + $0xb0] sm:$0xff] %vm4119_vm8, %v4109_v27  ;;  %v4028_v25 = vpop.f32.mrf.mxu0 }
 0x2ac   : > { %4175 = vst.msk [vmem:[%s6040_s15 + $0xb0] sm:$0xff] %vm4152_vm9, %v4956_v50  ;;  %v3630_v14 = vpop.f32.mrf.mxu3  ;;  %v2694_v9 = vpop.f32.mrf.mxu1 }
 0x2ad   : > { %v3676_v63 = vadd.f32 %v3630_v14, %v3022_v43  ;;  %v2737_v23 = vadd.f32 %v2694_v9, %v5892_v46 }
 0x2af   : > { %v4074_v36 = vadd.f32 %v4028_v25, %v3676_v63  ;;  %v2979_v24 = vpop.f32.mrf.mxu2 }
 0x2b0   : > { %v3023_v44 = vadd.f32 %v2979_v24, %v2736_v58 }
 0x2b1   : > { %v4110_v45 = vadd.f32 %v6384_v56, %v4074_v36 }
 0x2b3   : > { %4143 = vst.msk [vmem:[%s6040_s15 + $0xb8] sm:$0xff] %vm4119_vm8, %v4110_v45  ;;  %v4031_v13 = vpop.f32.mrf.mxu0 }
 0x2b4   : > { %4176 = vst.msk [vmem:[%s6040_s15 + $0xb8] sm:$0xff] %vm4152_vm9, %v4956_v50  ;;  %v3633_v3 = vpop.f32.mrf.mxu3  ;;  %v2697_v16 = vpop.f32.mrf.mxu1 }
 0x2b5   : > { %v3677_v7 = vadd.f32 %v3633_v3, %v3023_v44  ;;  %v2738_v30 = vadd.f32 %v2697_v16, %v5912_v33 }
 0x2b7   : > { %v4075_v29 = vadd.f32 %v4031_v13, %v3677_v7  ;;  %v2981_v61 = vpop.f32.mrf.mxu2 }
 0x2b8   : > { %v3024_v12 = vadd.f32 %v2981_v61, %v2737_v23 }
 0x2b9   : > { %v4111_v2 = vadd.f32 %v6384_v56, %v4075_v29 }
 0x2bb   : > { %4144 = vst.msk [vmem:[%s6040_s15 + $0xc0] sm:$0xff] %vm4119_vm8, %v4111_v2  ;;  %v4033_v8 = vpop.f32.mrf.mxu0 }
 0x2bc   : > { %4177 = vst.msk [vmem:[%s6040_s15 + $0xc0] sm:$0xff] %vm4152_vm9, %v4956_v50  ;;  %v3635_v17 = vpop.f32.mrf.mxu3  ;;  %v2699_v18 = vpop.f32.mrf.mxu1 }
 0x2bd   : > { %v3678_v39 = vadd.f32 %v3635_v17, %v3024_v12  ;;  %v2739_v0 = vadd.f32 %v2699_v18, %v5934_v47 }
 0x2bf   : > { %v4076_v4 = vadd.f32 %v4033_v8, %v3678_v39  ;;  %v2984_v53 = vpop.f32.mrf.mxu2 }
 0x2c0   : > { %v3025_v26 = vadd.f32 %v2984_v53, %v2738_v30 }
 0x2c1   : > { %v4112_v46 = vadd.f32 %v6384_v56, %v4076_v4 }
 0x2c3   : > { %4145 = vst.msk [vmem:[%s6040_s15 + $0xc8] sm:$0xff] %vm4119_vm8, %v4112_v46  ;;  %v4036_v62 = vpop.f32.mrf.mxu0 }
 0x2c4   : > { %4178 = vst.msk [vmem:[%s6040_s15 + $0xc8] sm:$0xff] %vm4152_vm9, %v4956_v50  ;;  %v3638_v10 = vpop.f32.mrf.mxu3  ;;  %v2702_v60 = vpop.f32.mrf.mxu1 }
 0x2c5   : > { %v3679_v6 = vadd.f32 %v3638_v10, %v3025_v26  ;;  %v2740_v19 = vadd.f32 %v2702_v60, %v5951_v28 }
 0x2c7   : > { %v4077_v1 = vadd.f32 %v4036_v62, %v3679_v6  ;;  %v2986_v59 = vpop.f32.mrf.mxu2 }
 0x2c8   : > { %v3026_v5 = vadd.f32 %v2986_v59, %v2739_v0 }
 0x2c9   : > { %v4113_v33 = vadd.f32 %v6384_v56, %v4077_v1 }
 0x2cb   : > { %4146 = vst.msk [vmem:[%s6040_s15 + $0xd0] sm:$0xff] %vm4119_vm8, %v4113_v33  ;;  %v4038_v15 = vpop.f32.mrf.mxu0 }
 0x2cc   : > { %4179 = vst.msk [vmem:[%s6040_s15 + $0xd0] sm:$0xff] %vm4152_vm9, %v4956_v50  ;;  %v3640_v31 = vpop.f32.mrf.mxu3  ;;  %v2704_v55 = vpop.f32.mrf.mxu1 }
 0x2cd   : > { %v3680_v41 = vadd.f32 %v3640_v31, %v3026_v5  ;;  %v2741_v51 = vadd.f32 %v2704_v55, %v5974_v22 }
 0x2cf   : > { %v4078_v52 = vadd.f32 %v4038_v15, %v3680_v41  ;;  %v2989_v40 = vpop.f32.mrf.mxu2 }
 0x2d0   : > { %v3027_v37 = vadd.f32 %v2989_v40, %v2740_v19 }
 0x2d1   : > { %v4114_v47 = vadd.f32 %v6384_v56, %v4078_v52 }
 0x2d3   : > { %4147 = vst.msk [vmem:[%s6040_s15 + $0xd8] sm:$0xff] %vm4119_vm8, %v4114_v47  ;;  %v4041_v54 = vpop.f32.mrf.mxu0 }
 0x2d4   : > { %4180 = vst.msk [vmem:[%s6040_s15 + $0xd8] sm:$0xff] %vm4152_vm9, %v4956_v50  ;;  %v3643_v34 = vpop.f32.mrf.mxu3  ;;  %v2707_v38 = vpop.f32.mrf.mxu1 }
 0x2d5   : > { %v3681_v32 = vadd.f32 %v3643_v34, %v3027_v37  ;;  %v2742_v43 = vadd.f32 %v2707_v38, %v5990_v21 }
 0x2d7   : > { %v4079_v49 = vadd.f32 %v4041_v54, %v3681_v32  ;;  %v2991_v28 = vpop.f32.mrf.mxu2 }
 0x2d8   : > { %v3028_v35 = vadd.f32 %v2991_v28, %v2741_v51 }
 0x2d9   : > { %v4115_v20 = vadd.f32 %v6384_v56, %v4079_v49 }
 0x2db   : > { %4148 = vst.msk [vmem:[%s6040_s15 + $0xe0] sm:$0xff] %vm4119_vm8, %v4115_v20  ;;  %v4043_v11 = vpop.f32.mrf.mxu0 }
 0x2dc   : > { %4181 = vst.msk [vmem:[%s6040_s15 + $0xe0] sm:$0xff] %vm4152_vm9, %v4956_v50  ;;  %v3645_v42 = vpop.f32.mrf.mxu3  ;;  %v2709_v9 = vpop.f32.mrf.mxu1 }
 0x2dd   : > { %v3682_v48 = vadd.f32 %v3645_v42, %v3028_v35  ;;  %v2743_v45 = vadd.f32 %v2709_v9, %v6013_v57 }
 0x2df   : > { %v4080_v27 = vadd.f32 %v4043_v11, %v3682_v48  ;;  %v2994_v22 = vpop.f32.mrf.mxu2 }
 0x2e0   : > { %v3029_v14 = vadd.f32 %v2994_v22, %v2742_v43 }
 0x2e1   : > { %v4116_v25 = vadd.f32 %v6384_v56, %v4080_v27 }
 0x2e3   : > { %4149 = vst.msk [vmem:[%s6040_s15 + $0xe8] sm:$0xff] %vm4119_vm8, %v4116_v25  ;;  %v4046_v63 = vpop.f32.mrf.mxu0 }
 0x2e4   : > { %4182 = vst.msk [vmem:[%s6040_s15 + $0xe8] sm:$0xff] %vm4152_vm9, %v4956_v50  ;;  %v3648_v36 = vpop.f32.mrf.mxu3 }
 0x2e5   : > { %v3683_v58 = vadd.f32 %v3648_v36, %v3029_v14 }
 0x2e7   : > { %v4081_v24 = vadd.f32 %v4046_v63, %v3683_v58  ;;  %v2996_v21 = vpop.f32.mrf.mxu2 }
 0x2e8   : > { %v3030_v13 = vadd.f32 %v2996_v21, %v2743_v45 }
 0x2e9   : > { %v4117_v44 = vadd.f32 %v6384_v56, %v4081_v24 }
 0x2eb   : > { %4150 = vst.msk [vmem:[%s6040_s15 + $0xf0] sm:$0xff] %vm4119_vm8, %v4117_v44  ;;  %v4048_v7 = vpop.f32.mrf.mxu0 }
 0x2ec   : > { %4183 = vst.msk [vmem:[%s6040_s15 + $0xf0] sm:$0xff] %vm4152_vm9, %v4956_v50  ;;  %v3650_v3 = vpop.f32.mrf.mxu3 }
 0x2ed   : > { %v3684_v16 = vadd.f32 %v3650_v3, %v3030_v13 }
 0x2ef   : > { %v4082_v29 = vadd.f32 %v4048_v7, %v3684_v16 }
 0x2f1   : > { %v4118_v23 = vadd.f32 %v6384_v56, %v4082_v29 }
 0x2f3   : > { %4151 = vst.msk [vmem:[%s6040_s15 + $0xf8] sm:$0xff] %vm4119_vm8, %v4118_v23 }
 0x2f4   : > { %4184 = vst.msk [vmem:[%s6040_s15 + $0xf8] sm:$0xff] %vm4152_vm9, %v4956_v50 }
 0x2f5 PF: > { %s13_s12 = sadd.s32 1, %s4954_s12  }
 0x2f6   : > { %p10_p4 = scmp.ge.s32.totalorder %s13_s12, 4  }
 0x2f8   :  { %12 = sbr.rel (!%p10_p4) target bundleno = 1 (0x1), region = 72 }

</bundles_post_ra>
